<compile_context>
chip_gen: v6e
topology: v6e:2x2x1
jax: 0.10.0
libtpu: 0.0.40
codegen_flags: <defaults>
</compile_context>

<pallas_src>
import jax
import jax.numpy as jnp
from jax.experimental import pallas as pl
from jax.experimental.pallas import tpu as pltpu


# ----------------------------------------------------------------------------
# Hoisted weight preparation (runs once, outside the per-call path)
# ----------------------------------------------------------------------------
def _fq_weight_codes(w, bits=3):
    """3-bit signed narrow-range fake quant -> (integer codes, per-tensor scale)."""
    qmax = 2.0 ** (bits - 1) - 1.0                       # 3
    amax = jnp.max(jnp.abs(w))
    scale = jnp.maximum(amax, 1e-8) / qmax
    codes = jnp.clip(jnp.round(w / scale), -qmax, qmax)
    return codes, scale


def _build_conv_pool_toeplitz(w_codes_oihw, w_in, ow2):
    """Per-output-row Toeplitz matrices with the W-direction 2x2 maxpool folded in.

    Returns T of shape (KH, 2, 128, 128) bf16 integer codes (zero padded), with
      T[kh, ew, w*IC + c, o*OC + oc] = w[oc, c, kh, w - (2*o + ew)]   (0 if OOB)
    so that for conv output row r = 2*oh + eo:
      conv[r, 2*o + ew, oc] = sum_kh x_row[r + kh, :] @ T[kh, ew]
    where x_row flattens pixels channels-last (lane index w*IC + c).
    """
    oc_n, ic, kh_n, kw_n = w_codes_oihw.shape
    wt = jnp.transpose(w_codes_oihw, (2, 3, 1, 0))       # (KH, KW, IC, OC)
    w_pos = jnp.arange(w_in)
    o_pos = jnp.arange(ow2)
    mats = []
    for ew in range(2):
        kw = w_pos[:, None] - 2 * o_pos[None, :] - ew    # (w_in, ow2)
        valid = (kw >= 0) & (kw < kw_n)
        kwc = jnp.clip(kw, 0, kw_n - 1)
        g = wt[:, kwc, :, :]                             # (KH, w_in, ow2, IC, OC)
        g = jnp.where(valid[None, :, :, None, None], g, 0.0)
        g = jnp.transpose(g, (0, 1, 3, 2, 4))            # (KH, w_in, IC, ow2, OC)
        mats.append(g.reshape(kh_n, w_in * ic, ow2 * oc_n))
    t = jnp.stack(mats, axis=1)                          # (KH, 2, w_in*IC, ow2*OC)
    t = jnp.pad(t, ((0, 0), (0, 0),
                    (0, 128 - w_in * ic), (0, 128 - ow2 * oc_n)))
    return t.astype(jnp.bfloat16)


def prepare_params(params):
    """One-time preparation of all kernel operands (codes, Toeplitz, padding)."""
    wq1, s_w1 = _fq_weight_codes(params["w_conv1"])
    wq2, s_w2 = _fq_weight_codes(params["w_conv2"])
    wq_f1, s_f1 = _fq_weight_codes(params["w_fc1"])
    wq_f2, s_f2 = _fq_weight_codes(params["w_fc2"])
    wq_f3, s_f3 = _fq_weight_codes(params["w_fc3"])

    t1 = _build_conv_pool_toeplitz(wq1, 32, 14)          # (5, 2, 128, 128)
    t2 = _build_conv_pool_toeplitz(wq2, 14, 5)           # (5, 2, 128, 128)

    # fc1: permute rows from PyTorch NCHW-flatten order (c*25 + h*5 + w) to the
    # kernel's conv2-output layout (5 h-blocks, lane = w*16 + c); pad to 128.
    wf1 = wq_f1.reshape(16, 5, 5, 120).transpose(1, 2, 0, 3).reshape(5, 80, 120)
    wf1 = jnp.pad(wf1, ((0, 0), (0, 48), (0, 8))).astype(jnp.bfloat16)   # (5,128,128)
    wf2 = jnp.pad(wq_f2, ((0, 8), (0, 44))).astype(jnp.bfloat16)         # (128,128)
    wf3 = jnp.pad(wq_f3, ((0, 44), (0, 118))).astype(jnp.bfloat16)       # (128,128)

    # Biases laid out to match the matmul column orders (zero padded to 128;
    # zero pads keep the padded lanes exactly 0 so per-tensor maxima are exact).
    b1 = jnp.pad(jnp.tile(params["b_conv1"], 14), (0, 44)).reshape(1, 128)
    b2 = jnp.pad(jnp.tile(params["b_conv2"], 5), (0, 48)).reshape(1, 128)
    bf1 = jnp.pad(params["b_fc1"], (0, 8)).reshape(1, 128)
    bf2 = jnp.pad(params["b_fc2"], (0, 44)).reshape(1, 128)

    scales = jnp.stack([s_w1, s_w2, s_f1, s_f2, s_f3,
                        jnp.float32(0.0), jnp.float32(0.0), jnp.float32(0.0)])
    return dict(scales=scales.astype(jnp.float32),
                t1=t1, b1=b1.astype(jnp.float32),
                t2=t2, b2=b2.astype(jnp.float32),
                wf1=wf1, bf1=bf1.astype(jnp.float32),
                wf2=wf2, bf2=bf2.astype(jnp.float32),
                wf3=wf3)


# ----------------------------------------------------------------------------
# The single fused kernel
# ----------------------------------------------------------------------------
def _gather_parity_rows(x, b, n_groups, parity):
    """Rows of x are ordered (row_index*b + batch); return the rows whose
    row_index has the given parity, keeping (group_index*b + batch) order."""
    parts = [x[(2 * j + parity) * b:(2 * j + parity) * b + b, :]
             for j in range(n_groups)]
    return jnp.concatenate(parts, axis=0)


def _lenet_kernel(scales_ref,                 # SMEM (8,) f32 weight scales
                  x_ref,                      # (32B, 128) f32 parity-split rows
                  t1_ref, b1_ref,             # (5,2,128,128) bf16, (1,128) f32
                  t2_ref, b2_ref,             # (5,2,128,128) bf16, (1,128) f32
                  wf1_ref, bf1_ref,           # (5,128,128) bf16, (1,128) f32
                  wf2_ref, bf2_ref,           # (128,128) bf16, (1,128) f32
                  wf3_ref,                    # (128,128) bf16
                  out_ref):                   # (B, 128) f32 (cols >= 10 are zero)
    f32 = jnp.float32
    bf16 = jnp.bfloat16
    B = out_ref.shape[0]

    s_w1 = scales_ref[0]
    s_w2 = scales_ref[1]
    s_f1 = scales_ref[2]
    s_f2 = scales_ref[3]
    s_f3 = scales_ref[4]

    # Batch-invariant loads hoisted (read once).
    b1 = b1_ref[...]
    b2 = b2_ref[...]
    bf1 = bf1_ref[...]
    bf2 = bf2_ref[...]

    def conv_pool(planes, t_ref, n_rows):
        """Toeplitz conv with the 2x2 maxpool folded in (integer-code domain).

        planes = (even_rows, odd_rows), each with row layout idx*B + batch.
        Batch and conv-row parity are stacked into M so each of the 10 dots
        reuses a single latched 128x128 RHS tile.  Returns (n_rows*B, 128) f32.
        """
        m = n_rows * B
        acc0 = jnp.zeros((2 * m, 128), f32)
        acc1 = jnp.zeros((2 * m, 128), f32)
        for kh in range(5):
            blocks = []
            for eo in range(2):                       # conv-row parity (pool rows)
                d = eo + kh
                start = (d >> 1) * B
                blocks.append(planes[d & 1][start:start + m, :])
            lhs = jnp.concatenate(blocks, axis=0).astype(bf16)        # (2m, 128)
            acc0 = acc0 + jnp.dot(lhs, t_ref[kh, 0], preferred_element_type=f32)
            acc1 = acc1 + jnp.dot(lhs, t_ref[kh, 1], preferred_element_type=f32)
        conv = jnp.maximum(acc0, acc1)                # pool over output columns
        return jnp.maximum(conv[:m, :], conv[m:, :])  # pool over output rows

    # ---- QuantIdentity(4): signed per-tensor fake quant of the input --------
    x = x_ref[...]                                        # (32B, 128) f32
    s_in = jnp.maximum(jnp.max(jnp.abs(x)), 1e-8) / 7.0
    xq = jnp.clip(jnp.round(x * (1.0 / s_in)), -8.0, 7.0)
    x_planes = (xq[:16 * B, :], xq[16 * B:, :])           # even / odd image rows

    # ---- conv1 + bias + ReLU + maxpool2x2 + QuantReLU(4) ---------------------
    conv1 = conv_pool(x_planes, t1_ref, 14)               # (14B, 128) int domain
    act1 = jnp.maximum(conv1 * (s_in * s_w1) + b1, 0.0)
    s1 = jnp.maximum(jnp.max(act1), 1e-8) / 15.0
    q1 = jnp.clip(jnp.round(act1 * (1.0 / s1)), 0.0, 15.0)
    q1_planes = (_gather_parity_rows(q1, B, 7, 0),        # even / odd pooled rows
                 _gather_parity_rows(q1, B, 7, 1))

    # ---- conv2 + bias + ReLU + maxpool2x2 + QuantReLU(4) ---------------------
    conv2 = conv_pool(q1_planes, t2_ref, 5)               # (5B, 128)
    act2 = jnp.maximum(conv2 * (s1 * s_w2) + b2, 0.0)
    s2 = jnp.maximum(jnp.max(act2), 1e-8) / 15.0
    q2 = jnp.clip(jnp.round(act2 * (1.0 / s2)), 0.0, 15.0)

    # ---- fc1 + ReLU + quant (NCHW flatten folded into permuted weight blocks)
    acc3 = jnp.zeros((B, 128), f32)
    for h in range(5):
        lhs = q2[h * B:(h + 1) * B, :].astype(bf16)       # (B, 128)
        acc3 = acc3 + jnp.dot(lhs, wf1_ref[h], preferred_element_type=f32)
    act3 = jnp.maximum(acc3 * (s2 * s_f1) + bf1, 0.0)
    s3 = jnp.maximum(jnp.max(act3), 1e-8) / 15.0
    q3 = jnp.clip(jnp.round(act3 * (1.0 / s3)), 0.0, 15.0).astype(bf16)

    # ---- fc2 + ReLU + quant ---------------------------------------------------
    act4 = jnp.dot(q3, wf2_ref[...], preferred_element_type=f32)
    act4 = jnp.maximum(act4 * (s3 * s_f2) + bf2, 0.0)
    s4 = jnp.maximum(jnp.max(act4), 1e-8) / 15.0
    q4 = jnp.clip(jnp.round(act4 * (1.0 / s4)), 0.0, 15.0).astype(bf16)

    # ---- fc3 (no bias, no ReLU); one lane-dense (B, 128) store ----------------
    logits = jnp.dot(q4, wf3_ref[...], preferred_element_type=f32)
    out_ref[...] = logits * (s4 * s_f3)


def _full_spec(shape):
    return pl.BlockSpec(shape, lambda *_: (0,) * len(shape))


# ----------------------------------------------------------------------------
# Public model
# ----------------------------------------------------------------------------
def init_params(key):
    ks = jax.random.split(key, 9)
    p = {}
    p["w_conv1"] = 0.1 * jax.random.normal(ks[0], (6, 3, 5, 5), jnp.float32)
    p["b_conv1"] = 0.1 * jax.random.normal(ks[1], (6,), jnp.float32)
    p["w_conv2"] = 0.1 * jax.random.normal(ks[2], (16, 6, 5, 5), jnp.float32)
    p["b_conv2"] = 0.1 * jax.random.normal(ks[3], (16,), jnp.float32)
    # FC weights stored (in, out); PyTorch stores (out, in) -- semantics identical.
    p["w_fc1"] = 0.05 * jax.random.normal(ks[4], (16 * 5 * 5, 120), jnp.float32)
    p["b_fc1"] = 0.05 * jax.random.normal(ks[5], (120,), jnp.float32)
    p["w_fc2"] = 0.05 * jax.random.normal(ks[6], (120, 84), jnp.float32)
    p["b_fc2"] = 0.05 * jax.random.normal(ks[7], (84,), jnp.float32)
    p["w_fc3"] = 0.05 * jax.random.normal(ks[8], (84, 10), jnp.float32)  # bias=False
    return p


@jax.jit
def lenet_forward(prep, x_nchw):
    """x_nchw: (B, 3, 32, 32) float32, NCHW like PyTorch. Returns (B, 10) logits."""
    B = x_nchw.shape[0]
    # Rows flattened channels-last (lane = w*3 + c), lane padded 96 -> 128,
    # rows parity-split and batch-interleaved (plane row = (h//2)*B + b).
    x = jnp.transpose(x_nchw, (0, 2, 3, 1)).reshape(B, 32, 96)
    x = jnp.pad(x, ((0, 0), (0, 0), (0, 32))).astype(jnp.float32)        # (B,32,128)

    def plane(parity):
        xp = x[:, parity::2, :]                                          # (B,16,128)
        return jnp.transpose(xp, (1, 0, 2)).reshape(16 * B, 128)

    x_prep = jnp.concatenate([plane(0), plane(1)], axis=0)               # (32B,128)

    out = pl.pallas_call(
        _lenet_kernel,
        out_shape=jax.ShapeDtypeStruct((B, 128), jnp.float32),
        in_specs=[
            pl.BlockSpec(memory_space=pltpu.MemorySpace.SMEM),           # scales
            _full_spec((32 * B, 128)),                                   # x
            _full_spec((5, 2, 128, 128)),                                # t1
            _full_spec((1, 128)),                                        # b1
            _full_spec((5, 2, 128, 128)),                                # t2
            _full_spec((1, 128)),                                        # b2
            _full_spec((5, 128, 128)),                                   # wf1
            _full_spec((1, 128)),                                        # bf1
            _full_spec((128, 128)),                                      # wf2
            _full_spec((1, 128)),                                        # bf2
            _full_spec((128, 128)),                                      # wf3
        ],
        out_specs=_full_spec((B, 128)),
    )(prep["scales"], x_prep, prep["t1"], prep["b1"], prep["t2"], prep["b2"],
      prep["wf1"], prep["bf1"], prep["wf2"], prep["bf2"], prep["wf3"])

    return out[:, :10]


if __name__ == "__main__":
    key = jax.random.PRNGKey(0)
    k_params, k_x = jax.random.split(key)
    params = init_params(k_params)
    prep = prepare_params(params)            # hoisted weight prep: runs once
    # CIFAR-10 geometry is required by the 16*5*5 flatten; small batch of 2.
    x = jax.random.normal(k_x, (2, 3, 32, 32), jnp.float32)

    logits = lenet_forward(prep, x)
    logits = jax.block_until_ready(logits)
    assert logits.shape == (2, 10), logits.shape
    assert bool(jnp.all(jnp.isfinite(logits)))
    print("KERNEL_OK")
</pallas_src>

<mosaic_0001>
module attributes {stable_mosaic.version = 11 : i64} {
  func.func @_lenet_kernel(%arg0: memref<8xf32, #tpu.memory_space<smem>>, %arg1: memref<64x128xf32, #tpu.memory_space<vmem>>, %arg2: memref<5x2x128x128xbf16, #tpu.memory_space<vmem>>, %arg3: memref<1x128xf32, #tpu.memory_space<vmem>>, %arg4: memref<5x2x128x128xbf16, #tpu.memory_space<vmem>>, %arg5: memref<1x128xf32, #tpu.memory_space<vmem>>, %arg6: memref<5x128x128xbf16, #tpu.memory_space<vmem>>, %arg7: memref<1x128xf32, #tpu.memory_space<vmem>>, %arg8: memref<128x128xbf16, #tpu.memory_space<vmem>>, %arg9: memref<1x128xf32, #tpu.memory_space<vmem>>, %arg10: memref<128x128xbf16, #tpu.memory_space<vmem>>, %arg11: memref<2x128xf32, #tpu.memory_space<vmem>>) attributes {dimension_semantics = [], scalar_prefetch = 0 : i64, scratch_operands = 0 : i64, tpu.core_type = #tpu.core_type<tc>} {
    %c0 = arith.constant 0 : index
    %0 = memref.load %arg0[%c0] : memref<8xf32, #tpu.memory_space<smem>>
    %c1 = arith.constant 1 : index
    %1 = memref.load %arg0[%c1] : memref<8xf32, #tpu.memory_space<smem>>
    %c2 = arith.constant 2 : index
    %2 = memref.load %arg0[%c2] : memref<8xf32, #tpu.memory_space<smem>>
    %c3 = arith.constant 3 : index
    %3 = memref.load %arg0[%c3] : memref<8xf32, #tpu.memory_space<smem>>
    %c4 = arith.constant 4 : index
    %4 = memref.load %arg0[%c4] : memref<8xf32, #tpu.memory_space<smem>>
    %c0_0 = arith.constant 0 : index
    %c0_1 = arith.constant 0 : index
    %5 = vector.load %arg3[%c0_0, %c0_1] : memref<1x128xf32, #tpu.memory_space<vmem>>, vector<1x128xf32>
    %c0_2 = arith.constant 0 : index
    %c0_3 = arith.constant 0 : index
    %6 = vector.load %arg5[%c0_2, %c0_3] : memref<1x128xf32, #tpu.memory_space<vmem>>, vector<1x128xf32>
    %c0_4 = arith.constant 0 : index
    %c0_5 = arith.constant 0 : index
    %7 = vector.load %arg7[%c0_4, %c0_5] : memref<1x128xf32, #tpu.memory_space<vmem>>, vector<1x128xf32>
    %c0_6 = arith.constant 0 : index
    %c0_7 = arith.constant 0 : index
    %8 = vector.load %arg9[%c0_6, %c0_7] : memref<1x128xf32, #tpu.memory_space<vmem>>, vector<1x128xf32>
    %c0_8 = arith.constant 0 : index
    %c0_9 = arith.constant 0 : index
    %9 = vector.load %arg1[%c0_8, %c0_9] : memref<64x128xf32, #tpu.memory_space<vmem>>, vector<64x128xf32>
    %10 = math.absf %9 : vector<64x128xf32>
    %11 = vector.shape_cast %10 : vector<64x128xf32> to vector<1x64x128xf32>
    %cst = arith.constant dense<0xFF800000> : vector<1xf32>
    %12 = vector.multi_reduction <maximumf>, %11, %cst [1, 2] : vector<1x64x128xf32> to vector<1xf32>
    %13 = vector.shape_cast %12 : vector<1xf32> to vector<1x1x1xf32>
    %14 = vector.extract %13[0, 0, 0] : f32 from vector<1x1x1xf32>
    %cst_10 = arith.constant 9.99999993E-9 : f32
    %15 = arith.maximumf %14, %cst_10 : f32
    %cst_11 = arith.constant 7.000000e+00 : f32
    %16 = arith.divf %15, %cst_11 : f32
    %cst_12 = arith.constant 1.000000e+00 : f32
    %17 = arith.divf %cst_12, %16 : f32
    %18 = vector.broadcast %17 : f32 to vector<64x128xf32>
    %19 = arith.mulf %9, %18 : vector<64x128xf32>
    %20 = math.roundeven %19 : vector<64x128xf32>
    %cst_13 = arith.constant -8.000000e+00 : f32
    %cst_14 = arith.constant 7.000000e+00 : f32
    %21 = vector.broadcast %cst_13 : f32 to vector<64x128xf32>
    %22 = arith.maximumf %21, %20 : vector<64x128xf32>
    %23 = vector.broadcast %cst_14 : f32 to vector<64x128xf32>
    %24 = arith.minimumf %23, %22 : vector<64x128xf32>
    %25 = vector.extract_strided_slice %24 {offsets = [0, 0], sizes = [32, 128], strides = [1, 1]} : vector<64x128xf32> to vector<32x128xf32>
    %26 = vector.extract_strided_slice %24 {offsets = [32, 0], sizes = [32, 128], strides = [1, 1]} : vector<64x128xf32> to vector<32x128xf32>
    %cst_15 = arith.constant 0.000000e+00 : f32
    %27 = vector.broadcast %cst_15 : f32 to vector<56x128xf32>
    %cst_16 = arith.constant 0.000000e+00 : f32
    %28 = vector.broadcast %cst_16 : f32 to vector<56x128xf32>
    %29 = vector.extract_strided_slice %25 {offsets = [0, 0], sizes = [28, 128], strides = [1, 1]} : vector<32x128xf32> to vector<28x128xf32>
    %30 = vector.extract_strided_slice %26 {offsets = [0, 0], sizes = [28, 128], strides = [1, 1]} : vector<32x128xf32> to vector<28x128xf32>
    %31 = tpu.concatenate %29, %30 in 0 : vector<28x128xf32>, vector<28x128xf32> -> vector<56x128xf32>
    %32 = arith.truncf %31 : vector<56x128xf32> to vector<56x128xbf16>
    %c0_17 = arith.constant 0 : index
    %c0_18 = arith.constant 0 : index
    %c0_19 = arith.constant 0 : index
    %c0_20 = arith.constant 0 : index
    %33 = vector.load %arg2[%c0_17, %c0_18, %c0_19, %c0_20] : memref<5x2x128x128xbf16, #tpu.memory_space<vmem>>, vector<1x1x128x128xbf16>
    %34 = vector.shape_cast %33 : vector<1x1x128x128xbf16> to vector<128x128xbf16>
    %cst_21 = arith.constant dense<0.000000e+00> : vector<56x128xf32>
    %35 = tpu.matmul %32, %34, %cst_21 {dimension_numbers = #tpu.dot_dimension_numbers<[1], [0], [0], [1], [0, 0, 1, 1], [], []>} : vector<56x128xbf16>, vector<128x128xbf16>, vector<56x128xf32> -> vector<56x128xf32>
    %36 = arith.addf %27, %35 : vector<56x128xf32>
    %c0_22 = arith.constant 0 : index
    %c1_23 = arith.constant 1 : index
    %c0_24 = arith.constant 0 : index
    %c0_25 = arith.constant 0 : index
    %37 = vector.load %arg2[%c0_22, %c1_23, %c0_24, %c0_25] : memref<5x2x128x128xbf16, #tpu.memory_space<vmem>>, vector<1x1x128x128xbf16>
    %38 = vector.shape_cast %37 : vector<1x1x128x128xbf16> to vector<128x128xbf16>
    %cst_26 = arith.constant dense<0.000000e+00> : vector<56x128xf32>
    %39 = tpu.matmul %32, %38, %cst_26 {dimension_numbers = #tpu.dot_dimension_numbers<[1], [0], [0], [1], [0, 0, 1, 1], [], []>} : vector<56x128xbf16>, vector<128x128xbf16>, vector<56x128xf32> -> vector<56x128xf32>
    %40 = arith.addf %28, %39 : vector<56x128xf32>
    %41 = vector.extract_strided_slice %26 {offsets = [0, 0], sizes = [28, 128], strides = [1, 1]} : vector<32x128xf32> to vector<28x128xf32>
    %42 = vector.extract_strided_slice %25 {offsets = [2, 0], sizes = [28, 128], strides = [1, 1]} : vector<32x128xf32> to vector<28x128xf32>
    %43 = tpu.concatenate %41, %42 in 0 : vector<28x128xf32>, vector<28x128xf32> -> vector<56x128xf32>
    %44 = arith.truncf %43 : vector<56x128xf32> to vector<56x128xbf16>
    %c1_27 = arith.constant 1 : index
    %c0_28 = arith.constant 0 : index
    %c0_29 = arith.constant 0 : index
    %c0_30 = arith.constant 0 : index
    %45 = vector.load %arg2[%c1_27, %c0_28, %c0_29, %c0_30] : memref<5x2x128x128xbf16, #tpu.memory_space<vmem>>, vector<1x1x128x128xbf16>
    %46 = vector.shape_cast %45 : vector<1x1x128x128xbf16> to vector<128x128xbf16>
    %cst_31 = arith.constant dense<0.000000e+00> : vector<56x128xf32>
    %47 = tpu.matmul %44, %46, %cst_31 {dimension_numbers = #tpu.dot_dimension_numbers<[1], [0], [0], [1], [0, 0, 1, 1], [], []>} : vector<56x128xbf16>, vector<128x128xbf16>, vector<56x128xf32> -> vector<56x128xf32>
    %48 = arith.addf %36, %47 : vector<56x128xf32>
    %c1_32 = arith.constant 1 : index
    %c1_33 = arith.constant 1 : index
    %c0_34 = arith.constant 0 : index
    %c0_35 = arith.constant 0 : index
    %49 = vector.load %arg2[%c1_32, %c1_33, %c0_34, %c0_35] : memref<5x2x128x128xbf16, #tpu.memory_space<vmem>>, vector<1x1x128x128xbf16>
    %50 = vector.shape_cast %49 : vector<1x1x128x128xbf16> to vector<128x128xbf16>
    %cst_36 = arith.constant dense<0.000000e+00> : vector<56x128xf32>
    %51 = tpu.matmul %44, %50, %cst_36 {dimension_numbers = #tpu.dot_dimension_numbers<[1], [0], [0], [1], [0, 0, 1, 1], [], []>} : vector<56x128xbf16>, vector<128x128xbf16>, vector<56x128xf32> -> vector<56x128xf32>
    %52 = arith.addf %40, %51 : vector<56x128xf32>
    %53 = vector.extract_strided_slice %25 {offsets = [2, 0], sizes = [28, 128], strides = [1, 1]} : vector<32x128xf32> to vector<28x128xf32>
    %54 = vector.extract_strided_slice %26 {offsets = [2, 0], sizes = [28, 128], strides = [1, 1]} : vector<32x128xf32> to vector<28x128xf32>
    %55 = tpu.concatenate %53, %54 in 0 : vector<28x128xf32>, vector<28x128xf32> -> vector<56x128xf32>
    %56 = arith.truncf %55 : vector<56x128xf32> to vector<56x128xbf16>
    %c2_37 = arith.constant 2 : index
    %c0_38 = arith.constant 0 : index
    %c0_39 = arith.constant 0 : index
    %c0_40 = arith.constant 0 : index
    %57 = vector.load %arg2[%c2_37, %c0_38, %c0_39, %c0_40] : memref<5x2x128x128xbf16, #tpu.memory_space<vmem>>, vector<1x1x128x128xbf16>
    %58 = vector.shape_cast %57 : vector<1x1x128x128xbf16> to vector<128x128xbf16>
    %cst_41 = arith.constant dense<0.000000e+00> : vector<56x128xf32>
    %59 = tpu.matmul %56, %58, %cst_41 {dimension_numbers = #tpu.dot_dimension_numbers<[1], [0], [0], [1], [0, 0, 1, 1], [], []>} : vector<56x128xbf16>, vector<128x128xbf16>, vector<56x128xf32> -> vector<56x128xf32>
    %60 = arith.addf %48, %59 : vector<56x128xf32>
    %c2_42 = arith.constant 2 : index
    %c1_43 = arith.constant 1 : index
    %c0_44 = arith.constant 0 : index
    %c0_45 = arith.constant 0 : index
    %61 = vector.load %arg2[%c2_42, %c1_43, %c0_44, %c0_45] : memref<5x2x128x128xbf16, #tpu.memory_space<vmem>>, vector<1x1x128x128xbf16>
    %62 = vector.shape_cast %61 : vector<1x1x128x128xbf16> to vector<128x128xbf16>
    %cst_46 = arith.constant dense<0.000000e+00> : vector<56x128xf32>
    %63 = tpu.matmul %56, %62, %cst_46 {dimension_numbers = #tpu.dot_dimension_numbers<[1], [0], [0], [1], [0, 0, 1, 1], [], []>} : vector<56x128xbf16>, vector<128x128xbf16>, vector<56x128xf32> -> vector<56x128xf32>
    %64 = arith.addf %52, %63 : vector<56x128xf32>
    %65 = vector.extract_strided_slice %26 {offsets = [2, 0], sizes = [28, 128], strides = [1, 1]} : vector<32x128xf32> to vector<28x128xf32>
    %66 = vector.extract_strided_slice %25 {offsets = [4, 0], sizes = [28, 128], strides = [1, 1]} : vector<32x128xf32> to vector<28x128xf32>
    %67 = tpu.concatenate %65, %66 in 0 : vector<28x128xf32>, vector<28x128xf32> -> vector<56x128xf32>
    %68 = arith.truncf %67 : vector<56x128xf32> to vector<56x128xbf16>
    %c3_47 = arith.constant 3 : index
    %c0_48 = arith.constant 0 : index
    %c0_49 = arith.constant 0 : index
    %c0_50 = arith.constant 0 : index
    %69 = vector.load %arg2[%c3_47, %c0_48, %c0_49, %c0_50] : memref<5x2x128x128xbf16, #tpu.memory_space<vmem>>, vector<1x1x128x128xbf16>
    %70 = vector.shape_cast %69 : vector<1x1x128x128xbf16> to vector<128x128xbf16>
    %cst_51 = arith.constant dense<0.000000e+00> : vector<56x128xf32>
    %71 = tpu.matmul %68, %70, %cst_51 {dimension_numbers = #tpu.dot_dimension_numbers<[1], [0], [0], [1], [0, 0, 1, 1], [], []>} : vector<56x128xbf16>, vector<128x128xbf16>, vector<56x128xf32> -> vector<56x128xf32>
    %72 = arith.addf %60, %71 : vector<56x128xf32>
    %c3_52 = arith.constant 3 : index
    %c1_53 = arith.constant 1 : index
    %c0_54 = arith.constant 0 : index
    %c0_55 = arith.constant 0 : index
    %73 = vector.load %arg2[%c3_52, %c1_53, %c0_54, %c0_55] : memref<5x2x128x128xbf16, #tpu.memory_space<vmem>>, vector<1x1x128x128xbf16>
    %74 = vector.shape_cast %73 : vector<1x1x128x128xbf16> to vector<128x128xbf16>
    %cst_56 = arith.constant dense<0.000000e+00> : vector<56x128xf32>
    %75 = tpu.matmul %68, %74, %cst_56 {dimension_numbers = #tpu.dot_dimension_numbers<[1], [0], [0], [1], [0, 0, 1, 1], [], []>} : vector<56x128xbf16>, vector<128x128xbf16>, vector<56x128xf32> -> vector<56x128xf32>
    %76 = arith.addf %64, %75 : vector<56x128xf32>
    %77 = vector.extract_strided_slice %25 {offsets = [4, 0], sizes = [28, 128], strides = [1, 1]} : vector<32x128xf32> to vector<28x128xf32>
    %78 = vector.extract_strided_slice %26 {offsets = [4, 0], sizes = [28, 128], strides = [1, 1]} : vector<32x128xf32> to vector<28x128xf32>
    %79 = tpu.concatenate %77, %78 in 0 : vector<28x128xf32>, vector<28x128xf32> -> vector<56x128xf32>
    %80 = arith.truncf %79 : vector<56x128xf32> to vector<56x128xbf16>
    %c4_57 = arith.constant 4 : index
    %c0_58 = arith.constant 0 : index
    %c0_59 = arith.constant 0 : index
    %c0_60 = arith.constant 0 : index
    %81 = vector.load %arg2[%c4_57, %c0_58, %c0_59, %c0_60] : memref<5x2x128x128xbf16, #tpu.memory_space<vmem>>, vector<1x1x128x128xbf16>
    %82 = vector.shape_cast %81 : vector<1x1x128x128xbf16> to vector<128x128xbf16>
    %cst_61 = arith.constant dense<0.000000e+00> : vector<56x128xf32>
    %83 = tpu.matmul %80, %82, %cst_61 {dimension_numbers = #tpu.dot_dimension_numbers<[1], [0], [0], [1], [0, 0, 1, 1], [], []>} : vector<56x128xbf16>, vector<128x128xbf16>, vector<56x128xf32> -> vector<56x128xf32>
    %84 = arith.addf %72, %83 : vector<56x128xf32>
    %c4_62 = arith.constant 4 : index
    %c1_63 = arith.constant 1 : index
    %c0_64 = arith.constant 0 : index
    %c0_65 = arith.constant 0 : index
    %85 = vector.load %arg2[%c4_62, %c1_63, %c0_64, %c0_65] : memref<5x2x128x128xbf16, #tpu.memory_space<vmem>>, vector<1x1x128x128xbf16>
    %86 = vector.shape_cast %85 : vector<1x1x128x128xbf16> to vector<128x128xbf16>
    %cst_66 = arith.constant dense<0.000000e+00> : vector<56x128xf32>
    %87 = tpu.matmul %80, %86, %cst_66 {dimension_numbers = #tpu.dot_dimension_numbers<[1], [0], [0], [1], [0, 0, 1, 1], [], []>} : vector<56x128xbf16>, vector<128x128xbf16>, vector<56x128xf32> -> vector<56x128xf32>
    %88 = arith.addf %76, %87 : vector<56x128xf32>
    %89 = arith.maximumf %84, %88 : vector<56x128xf32>
    %90 = vector.extract_strided_slice %89 {offsets = [0, 0], sizes = [28, 128], strides = [1, 1]} : vector<56x128xf32> to vector<28x128xf32>
    %91 = vector.extract_strided_slice %89 {offsets = [28, 0], sizes = [28, 128], strides = [1, 1]} : vector<56x128xf32> to vector<28x128xf32>
    %92 = arith.maximumf %90, %91 : vector<28x128xf32>
    %93 = arith.mulf %16, %0 : f32
    %94 = vector.broadcast %93 : f32 to vector<28x128xf32>
    %95 = arith.mulf %92, %94 : vector<28x128xf32>
    %96 = vector.broadcast %5 : vector<1x128xf32> to vector<28x128xf32>
    %97 = arith.addf %95, %96 : vector<28x128xf32>
    %cst_67 = arith.constant 0.000000e+00 : f32
    %98 = vector.broadcast %cst_67 : f32 to vector<28x128xf32>
    %99 = arith.maximumf %97, %98 : vector<28x128xf32>
    %100 = vector.shape_cast %99 : vector<28x128xf32> to vector<1x28x128xf32>
    %cst_68 = arith.constant dense<0xFF800000> : vector<1xf32>
    %101 = vector.multi_reduction <maximumf>, %100, %cst_68 [1, 2] : vector<1x28x128xf32> to vector<1xf32>
    %102 = vector.shape_cast %101 : vector<1xf32> to vector<1x1x1xf32>
    %103 = vector.extract %102[0, 0, 0] : f32 from vector<1x1x1xf32>
    %cst_69 = arith.constant 9.99999993E-9 : f32
    %104 = arith.maximumf %103, %cst_69 : f32
    %cst_70 = arith.constant 1.500000e+01 : f32
    %105 = arith.divf %104, %cst_70 : f32
    %cst_71 = arith.constant 1.000000e+00 : f32
    %106 = arith.divf %cst_71, %105 : f32
    %107 = vector.broadcast %106 : f32 to vector<28x128xf32>
    %108 = arith.mulf %99, %107 : vector<28x128xf32>
    %109 = math.roundeven %108 : vector<28x128xf32>
    %cst_72 = arith.constant 0.000000e+00 : f32
    %cst_73 = arith.constant 1.500000e+01 : f32
    %110 = vector.broadcast %cst_72 : f32 to vector<28x128xf32>
    %111 = arith.maximumf %110, %109 : vector<28x128xf32>
    %112 = vector.broadcast %cst_73 : f32 to vector<28x128xf32>
    %113 = arith.minimumf %112, %111 : vector<28x128xf32>
    %114 = vector.extract_strided_slice %113 {offsets = [0, 0], sizes = [2, 128], strides = [1, 1]} : vector<28x128xf32> to vector<2x128xf32>
    %115 = vector.extract_strided_slice %113 {offsets = [4, 0], sizes = [2, 128], strides = [1, 1]} : vector<28x128xf32> to vector<2x128xf32>
    %116 = vector.extract_strided_slice %113 {offsets = [8, 0], sizes = [2, 128], strides = [1, 1]} : vector<28x128xf32> to vector<2x128xf32>
    %117 = vector.extract_strided_slice %113 {offsets = [12, 0], sizes = [2, 128], strides = [1, 1]} : vector<28x128xf32> to vector<2x128xf32>
    %118 = vector.extract_strided_slice %113 {offsets = [16, 0], sizes = [2, 128], strides = [1, 1]} : vector<28x128xf32> to vector<2x128xf32>
    %119 = vector.extract_strided_slice %113 {offsets = [20, 0], sizes = [2, 128], strides = [1, 1]} : vector<28x128xf32> to vector<2x128xf32>
    %120 = vector.extract_strided_slice %113 {offsets = [24, 0], sizes = [2, 128], strides = [1, 1]} : vector<28x128xf32> to vector<2x128xf32>
    %121 = tpu.concatenate %114, %115, %116, %117, %118, %119, %120 in 0 : vector<2x128xf32>, vector<2x128xf32>, vector<2x128xf32>, vector<2x128xf32>, vector<2x128xf32>, vector<2x128xf32>, vector<2x128xf32> -> vector<14x128xf32>
    %122 = vector.extract_strided_slice %113 {offsets = [2, 0], sizes = [2, 128], strides = [1, 1]} : vector<28x128xf32> to vector<2x128xf32>
    %123 = vector.extract_strided_slice %113 {offsets = [6, 0], sizes = [2, 128], strides = [1, 1]} : vector<28x128xf32> to vector<2x128xf32>
    %124 = vector.extract_strided_slice %113 {offsets = [10, 0], sizes = [2, 128], strides = [1, 1]} : vector<28x128xf32> to vector<2x128xf32>
    %125 = vector.extract_strided_slice %113 {offsets = [14, 0], sizes = [2, 128], strides = [1, 1]} : vector<28x128xf32> to vector<2x128xf32>
    %126 = vector.extract_strided_slice %113 {offsets = [18, 0], sizes = [2, 128], strides = [1, 1]} : vector<28x128xf32> to vector<2x128xf32>
    %127 = vector.extract_strided_slice %113 {offsets = [22, 0], sizes = [2, 128], strides = [1, 1]} : vector<28x128xf32> to vector<2x128xf32>
    %128 = vector.extract_strided_slice %113 {offsets = [26, 0], sizes = [2, 128], strides = [1, 1]} : vector<28x128xf32> to vector<2x128xf32>
    %129 = tpu.concatenate %122, %123, %124, %125, %126, %127, %128 in 0 : vector<2x128xf32>, vector<2x128xf32>, vector<2x128xf32>, vector<2x128xf32>, vector<2x128xf32>, vector<2x128xf32>, vector<2x128xf32> -> vector<14x128xf32>
    %cst_74 = arith.constant 0.000000e+00 : f32
    %130 = vector.broadcast %cst_74 : f32 to vector<20x128xf32>
    %cst_75 = arith.constant 0.000000e+00 : f32
    %131 = vector.broadcast %cst_75 : f32 to vector<20x128xf32>
    %132 = vector.extract_strided_slice %121 {offsets = [0, 0], sizes = [10, 128], strides = [1, 1]} : vector<14x128xf32> to vector<10x128xf32>
    %133 = vector.extract_strided_slice %129 {offsets = [0, 0], sizes = [10, 128], strides = [1, 1]} : vector<14x128xf32> to vector<10x128xf32>
    %134 = tpu.concatenate %132, %133 in 0 : vector<10x128xf32>, vector<10x128xf32> -> vector<20x128xf32>
    %135 = arith.truncf %134 : vector<20x128xf32> to vector<20x128xbf16>
    %c0_76 = arith.constant 0 : index
    %c0_77 = arith.constant 0 : index
    %c0_78 = arith.constant 0 : index
    %c0_79 = arith.constant 0 : index
    %136 = vector.load %arg4[%c0_76, %c0_77, %c0_78, %c0_79] : memref<5x2x128x128xbf16, #tpu.memory_space<vmem>>, vector<1x1x128x128xbf16>
    %137 = vector.shape_cast %136 : vector<1x1x128x128xbf16> to vector<128x128xbf16>
    %cst_80 = arith.constant dense<0.000000e+00> : vector<20x128xf32>
    %138 = tpu.matmul %135, %137, %cst_80 {dimension_numbers = #tpu.dot_dimension_numbers<[1], [0], [0], [1], [0, 0, 1, 1], [], []>} : vector<20x128xbf16>, vector<128x128xbf16>, vector<20x128xf32> -> vector<20x128xf32>
    %139 = arith.addf %130, %138 : vector<20x128xf32>
    %c0_81 = arith.constant 0 : index
    %c1_82 = arith.constant 1 : index
    %c0_83 = arith.constant 0 : index
    %c0_84 = arith.constant 0 : index
    %140 = vector.load %arg4[%c0_81, %c1_82, %c0_83, %c0_84] : memref<5x2x128x128xbf16, #tpu.memory_space<vmem>>, vector<1x1x128x128xbf16>
    %141 = vector.shape_cast %140 : vector<1x1x128x128xbf16> to vector<128x128xbf16>
    %cst_85 = arith.constant dense<0.000000e+00> : vector<20x128xf32>
    %142 = tpu.matmul %135, %141, %cst_85 {dimension_numbers = #tpu.dot_dimension_numbers<[1], [0], [0], [1], [0, 0, 1, 1], [], []>} : vector<20x128xbf16>, vector<128x128xbf16>, vector<20x128xf32> -> vector<20x128xf32>
    %143 = arith.addf %131, %142 : vector<20x128xf32>
    %144 = vector.extract_strided_slice %129 {offsets = [0, 0], sizes = [10, 128], strides = [1, 1]} : vector<14x128xf32> to vector<10x128xf32>
    %145 = vector.extract_strided_slice %121 {offsets = [2, 0], sizes = [10, 128], strides = [1, 1]} : vector<14x128xf32> to vector<10x128xf32>
    %146 = tpu.concatenate %144, %145 in 0 : vector<10x128xf32>, vector<10x128xf32> -> vector<20x128xf32>
    %147 = arith.truncf %146 : vector<20x128xf32> to vector<20x128xbf16>
    %c1_86 = arith.constant 1 : index
    %c0_87 = arith.constant 0 : index
    %c0_88 = arith.constant 0 : index
    %c0_89 = arith.constant 0 : index
    %148 = vector.load %arg4[%c1_86, %c0_87, %c0_88, %c0_89] : memref<5x2x128x128xbf16, #tpu.memory_space<vmem>>, vector<1x1x128x128xbf16>
    %149 = vector.shape_cast %148 : vector<1x1x128x128xbf16> to vector<128x128xbf16>
    %cst_90 = arith.constant dense<0.000000e+00> : vector<20x128xf32>
    %150 = tpu.matmul %147, %149, %cst_90 {dimension_numbers = #tpu.dot_dimension_numbers<[1], [0], [0], [1], [0, 0, 1, 1], [], []>} : vector<20x128xbf16>, vector<128x128xbf16>, vector<20x128xf32> -> vector<20x128xf32>
    %151 = arith.addf %139, %150 : vector<20x128xf32>
    %c1_91 = arith.constant 1 : index
    %c1_92 = arith.constant 1 : index
    %c0_93 = arith.constant 0 : index
    %c0_94 = arith.constant 0 : index
    %152 = vector.load %arg4[%c1_91, %c1_92, %c0_93, %c0_94] : memref<5x2x128x128xbf16, #tpu.memory_space<vmem>>, vector<1x1x128x128xbf16>
    %153 = vector.shape_cast %152 : vector<1x1x128x128xbf16> to vector<128x128xbf16>
    %cst_95 = arith.constant dense<0.000000e+00> : vector<20x128xf32>
    %154 = tpu.matmul %147, %153, %cst_95 {dimension_numbers = #tpu.dot_dimension_numbers<[1], [0], [0], [1], [0, 0, 1, 1], [], []>} : vector<20x128xbf16>, vector<128x128xbf16>, vector<20x128xf32> -> vector<20x128xf32>
    %155 = arith.addf %143, %154 : vector<20x128xf32>
    %156 = vector.extract_strided_slice %121 {offsets = [2, 0], sizes = [10, 128], strides = [1, 1]} : vector<14x128xf32> to vector<10x128xf32>
    %157 = vector.extract_strided_slice %129 {offsets = [2, 0], sizes = [10, 128], strides = [1, 1]} : vector<14x128xf32> to vector<10x128xf32>
    %158 = tpu.concatenate %156, %157 in 0 : vector<10x128xf32>, vector<10x128xf32> -> vector<20x128xf32>
    %159 = arith.truncf %158 : vector<20x128xf32> to vector<20x128xbf16>
    %c2_96 = arith.constant 2 : index
    %c0_97 = arith.constant 0 : index
    %c0_98 = arith.constant 0 : index
    %c0_99 = arith.constant 0 : index
    %160 = vector.load %arg4[%c2_96, %c0_97, %c0_98, %c0_99] : memref<5x2x128x128xbf16, #tpu.memory_space<vmem>>, vector<1x1x128x128xbf16>
    %161 = vector.shape_cast %160 : vector<1x1x128x128xbf16> to vector<128x128xbf16>
    %cst_100 = arith.constant dense<0.000000e+00> : vector<20x128xf32>
    %162 = tpu.matmul %159, %161, %cst_100 {dimension_numbers = #tpu.dot_dimension_numbers<[1], [0], [0], [1], [0, 0, 1, 1], [], []>} : vector<20x128xbf16>, vector<128x128xbf16>, vector<20x128xf32> -> vector<20x128xf32>
    %163 = arith.addf %151, %162 : vector<20x128xf32>
    %c2_101 = arith.constant 2 : index
    %c1_102 = arith.constant 1 : index
    %c0_103 = arith.constant 0 : index
    %c0_104 = arith.constant 0 : index
    %164 = vector.load %arg4[%c2_101, %c1_102, %c0_103, %c0_104] : memref<5x2x128x128xbf16, #tpu.memory_space<vmem>>, vector<1x1x128x128xbf16>
    %165 = vector.shape_cast %164 : vector<1x1x128x128xbf16> to vector<128x128xbf16>
    %cst_105 = arith.constant dense<0.000000e+00> : vector<20x128xf32>
    %166 = tpu.matmul %159, %165, %cst_105 {dimension_numbers = #tpu.dot_dimension_numbers<[1], [0], [0], [1], [0, 0, 1, 1], [], []>} : vector<20x128xbf16>, vector<128x128xbf16>, vector<20x128xf32> -> vector<20x128xf32>
    %167 = arith.addf %155, %166 : vector<20x128xf32>
    %168 = vector.extract_strided_slice %129 {offsets = [2, 0], sizes = [10, 128], strides = [1, 1]} : vector<14x128xf32> to vector<10x128xf32>
    %169 = vector.extract_strided_slice %121 {offsets = [4, 0], sizes = [10, 128], strides = [1, 1]} : vector<14x128xf32> to vector<10x128xf32>
    %170 = tpu.concatenate %168, %169 in 0 : vector<10x128xf32>, vector<10x128xf32> -> vector<20x128xf32>
    %171 = arith.truncf %170 : vector<20x128xf32> to vector<20x128xbf16>
    %c3_106 = arith.constant 3 : index
    %c0_107 = arith.constant 0 : index
    %c0_108 = arith.constant 0 : index
    %c0_109 = arith.constant 0 : index
    %172 = vector.load %arg4[%c3_106, %c0_107, %c0_108, %c0_109] : memref<5x2x128x128xbf16, #tpu.memory_space<vmem>>, vector<1x1x128x128xbf16>
    %173 = vector.shape_cast %172 : vector<1x1x128x128xbf16> to vector<128x128xbf16>
    %cst_110 = arith.constant dense<0.000000e+00> : vector<20x128xf32>
    %174 = tpu.matmul %171, %173, %cst_110 {dimension_numbers = #tpu.dot_dimension_numbers<[1], [0], [0], [1], [0, 0, 1, 1], [], []>} : vector<20x128xbf16>, vector<128x128xbf16>, vector<20x128xf32> -> vector<20x128xf32>
    %175 = arith.addf %163, %174 : vector<20x128xf32>
    %c3_111 = arith.constant 3 : index
    %c1_112 = arith.constant 1 : index
    %c0_113 = arith.constant 0 : index
    %c0_114 = arith.constant 0 : index
    %176 = vector.load %arg4[%c3_111, %c1_112, %c0_113, %c0_114] : memref<5x2x128x128xbf16, #tpu.memory_space<vmem>>, vector<1x1x128x128xbf16>
    %177 = vector.shape_cast %176 : vector<1x1x128x128xbf16> to vector<128x128xbf16>
    %cst_115 = arith.constant dense<0.000000e+00> : vector<20x128xf32>
    %178 = tpu.matmul %171, %177, %cst_115 {dimension_numbers = #tpu.dot_dimension_numbers<[1], [0], [0], [1], [0, 0, 1, 1], [], []>} : vector<20x128xbf16>, vector<128x128xbf16>, vector<20x128xf32> -> vector<20x128xf32>
    %179 = arith.addf %167, %178 : vector<20x128xf32>
    %180 = vector.extract_strided_slice %121 {offsets = [4, 0], sizes = [10, 128], strides = [1, 1]} : vector<14x128xf32> to vector<10x128xf32>
    %181 = vector.extract_strided_slice %129 {offsets = [4, 0], sizes = [10, 128], strides = [1, 1]} : vector<14x128xf32> to vector<10x128xf32>
    %182 = tpu.concatenate %180, %181 in 0 : vector<10x128xf32>, vector<10x128xf32> -> vector<20x128xf32>
    %183 = arith.truncf %182 : vector<20x128xf32> to vector<20x128xbf16>
    %c4_116 = arith.constant 4 : index
    %c0_117 = arith.constant 0 : index
    %c0_118 = arith.constant 0 : index
    %c0_119 = arith.constant 0 : index
    %184 = vector.load %arg4[%c4_116, %c0_117, %c0_118, %c0_119] : memref<5x2x128x128xbf16, #tpu.memory_space<vmem>>, vector<1x1x128x128xbf16>
    %185 = vector.shape_cast %184 : vector<1x1x128x128xbf16> to vector<128x128xbf16>
    %cst_120 = arith.constant dense<0.000000e+00> : vector<20x128xf32>
    %186 = tpu.matmul %183, %185, %cst_120 {dimension_numbers = #tpu.dot_dimension_numbers<[1], [0], [0], [1], [0, 0, 1, 1], [], []>} : vector<20x128xbf16>, vector<128x128xbf16>, vector<20x128xf32> -> vector<20x128xf32>
    %187 = arith.addf %175, %186 : vector<20x128xf32>
    %c4_121 = arith.constant 4 : index
    %c1_122 = arith.constant 1 : index
    %c0_123 = arith.constant 0 : index
    %c0_124 = arith.constant 0 : index
    %188 = vector.load %arg4[%c4_121, %c1_122, %c0_123, %c0_124] : memref<5x2x128x128xbf16, #tpu.memory_space<vmem>>, vector<1x1x128x128xbf16>
    %189 = vector.shape_cast %188 : vector<1x1x128x128xbf16> to vector<128x128xbf16>
    %cst_125 = arith.constant dense<0.000000e+00> : vector<20x128xf32>
    %190 = tpu.matmul %183, %189, %cst_125 {dimension_numbers = #tpu.dot_dimension_numbers<[1], [0], [0], [1], [0, 0, 1, 1], [], []>} : vector<20x128xbf16>, vector<128x128xbf16>, vector<20x128xf32> -> vector<20x128xf32>
    %191 = arith.addf %179, %190 : vector<20x128xf32>
    %192 = arith.maximumf %187, %191 : vector<20x128xf32>
    %193 = vector.extract_strided_slice %192 {offsets = [0, 0], sizes = [10, 128], strides = [1, 1]} : vector<20x128xf32> to vector<10x128xf32>
    %194 = vector.extract_strided_slice %192 {offsets = [10, 0], sizes = [10, 128], strides = [1, 1]} : vector<20x128xf32> to vector<10x128xf32>
    %195 = arith.maximumf %193, %194 : vector<10x128xf32>
    %196 = arith.mulf %105, %1 : f32
    %197 = vector.broadcast %196 : f32 to vector<10x128xf32>
    %198 = arith.mulf %195, %197 : vector<10x128xf32>
    %199 = vector.broadcast %6 : vector<1x128xf32> to vector<10x128xf32>
    %200 = arith.addf %198, %199 : vector<10x128xf32>
    %cst_126 = arith.constant 0.000000e+00 : f32
    %201 = vector.broadcast %cst_126 : f32 to vector<10x128xf32>
    %202 = arith.maximumf %200, %201 : vector<10x128xf32>
    %203 = vector.shape_cast %202 : vector<10x128xf32> to vector<1x10x128xf32>
    %cst_127 = arith.constant dense<0xFF800000> : vector<1xf32>
    %204 = vector.multi_reduction <maximumf>, %203, %cst_127 [1, 2] : vector<1x10x128xf32> to vector<1xf32>
    %205 = vector.shape_cast %204 : vector<1xf32> to vector<1x1x1xf32>
    %206 = vector.extract %205[0, 0, 0] : f32 from vector<1x1x1xf32>
    %cst_128 = arith.constant 9.99999993E-9 : f32
    %207 = arith.maximumf %206, %cst_128 : f32
    %cst_129 = arith.constant 1.500000e+01 : f32
    %208 = arith.divf %207, %cst_129 : f32
    %cst_130 = arith.constant 1.000000e+00 : f32
    %209 = arith.divf %cst_130, %208 : f32
    %210 = vector.broadcast %209 : f32 to vector<10x128xf32>
    %211 = arith.mulf %202, %210 : vector<10x128xf32>
    %212 = math.roundeven %211 : vector<10x128xf32>
    %cst_131 = arith.constant 0.000000e+00 : f32
    %cst_132 = arith.constant 1.500000e+01 : f32
    %213 = vector.broadcast %cst_131 : f32 to vector<10x128xf32>
    %214 = arith.maximumf %213, %212 : vector<10x128xf32>
    %215 = vector.broadcast %cst_132 : f32 to vector<10x128xf32>
    %216 = arith.minimumf %215, %214 : vector<10x128xf32>
    %cst_133 = arith.constant 0.000000e+00 : f32
    %217 = vector.broadcast %cst_133 : f32 to vector<2x128xf32>
    %218 = vector.extract_strided_slice %216 {offsets = [0, 0], sizes = [2, 128], strides = [1, 1]} : vector<10x128xf32> to vector<2x128xf32>
    %219 = arith.truncf %218 : vector<2x128xf32> to vector<2x128xbf16>
    %c0_134 = arith.constant 0 : index
    %c0_135 = arith.constant 0 : index
    %c0_136 = arith.constant 0 : index
    %220 = vector.load %arg6[%c0_134, %c0_135, %c0_136] : memref<5x128x128xbf16, #tpu.memory_space<vmem>>, vector<1x128x128xbf16>
    %221 = vector.shape_cast %220 : vector<1x128x128xbf16> to vector<128x128xbf16>
    %cst_137 = arith.constant dense<0.000000e+00> : vector<2x128xf32>
    %222 = tpu.matmul %219, %221, %cst_137 {dimension_numbers = #tpu.dot_dimension_numbers<[1], [0], [0], [1], [0, 0, 1, 1], [], []>} : vector<2x128xbf16>, vector<128x128xbf16>, vector<2x128xf32> -> vector<2x128xf32>
    %223 = arith.addf %217, %222 : vector<2x128xf32>
    %224 = vector.extract_strided_slice %216 {offsets = [2, 0], sizes = [2, 128], strides = [1, 1]} : vector<10x128xf32> to vector<2x128xf32>
    %225 = arith.truncf %224 : vector<2x128xf32> to vector<2x128xbf16>
    %c1_138 = arith.constant 1 : index
    %c0_139 = arith.constant 0 : index
    %c0_140 = arith.constant 0 : index
    %226 = vector.load %arg6[%c1_138, %c0_139, %c0_140] : memref<5x128x128xbf16, #tpu.memory_space<vmem>>, vector<1x128x128xbf16>
    %227 = vector.shape_cast %226 : vector<1x128x128xbf16> to vector<128x128xbf16>
    %cst_141 = arith.constant dense<0.000000e+00> : vector<2x128xf32>
    %228 = tpu.matmul %225, %227, %cst_141 {dimension_numbers = #tpu.dot_dimension_numbers<[1], [0], [0], [1], [0, 0, 1, 1], [], []>} : vector<2x128xbf16>, vector<128x128xbf16>, vector<2x128xf32> -> vector<2x128xf32>
    %229 = arith.addf %223, %228 : vector<2x128xf32>
    %230 = vector.extract_strided_slice %216 {offsets = [4, 0], sizes = [2, 128], strides = [1, 1]} : vector<10x128xf32> to vector<2x128xf32>
    %231 = arith.truncf %230 : vector<2x128xf32> to vector<2x128xbf16>
    %c2_142 = arith.constant 2 : index
    %c0_143 = arith.constant 0 : index
    %c0_144 = arith.constant 0 : index
    %232 = vector.load %arg6[%c2_142, %c0_143, %c0_144] : memref<5x128x128xbf16, #tpu.memory_space<vmem>>, vector<1x128x128xbf16>
    %233 = vector.shape_cast %232 : vector<1x128x128xbf16> to vector<128x128xbf16>
    %cst_145 = arith.constant dense<0.000000e+00> : vector<2x128xf32>
    %234 = tpu.matmul %231, %233, %cst_145 {dimension_numbers = #tpu.dot_dimension_numbers<[1], [0], [0], [1], [0, 0, 1, 1], [], []>} : vector<2x128xbf16>, vector<128x128xbf16>, vector<2x128xf32> -> vector<2x128xf32>
    %235 = arith.addf %229, %234 : vector<2x128xf32>
    %236 = vector.extract_strided_slice %216 {offsets = [6, 0], sizes = [2, 128], strides = [1, 1]} : vector<10x128xf32> to vector<2x128xf32>
    %237 = arith.truncf %236 : vector<2x128xf32> to vector<2x128xbf16>
    %c3_146 = arith.constant 3 : index
    %c0_147 = arith.constant 0 : index
    %c0_148 = arith.constant 0 : index
    %238 = vector.load %arg6[%c3_146, %c0_147, %c0_148] : memref<5x128x128xbf16, #tpu.memory_space<vmem>>, vector<1x128x128xbf16>
    %239 = vector.shape_cast %238 : vector<1x128x128xbf16> to vector<128x128xbf16>
    %cst_149 = arith.constant dense<0.000000e+00> : vector<2x128xf32>
    %240 = tpu.matmul %237, %239, %cst_149 {dimension_numbers = #tpu.dot_dimension_numbers<[1], [0], [0], [1], [0, 0, 1, 1], [], []>} : vector<2x128xbf16>, vector<128x128xbf16>, vector<2x128xf32> -> vector<2x128xf32>
    %241 = arith.addf %235, %240 : vector<2x128xf32>
    %242 = vector.extract_strided_slice %216 {offsets = [8, 0], sizes = [2, 128], strides = [1, 1]} : vector<10x128xf32> to vector<2x128xf32>
    %243 = arith.truncf %242 : vector<2x128xf32> to vector<2x128xbf16>
    %c4_150 = arith.constant 4 : index
    %c0_151 = arith.constant 0 : index
    %c0_152 = arith.constant 0 : index
    %244 = vector.load %arg6[%c4_150, %c0_151, %c0_152] : memref<5x128x128xbf16, #tpu.memory_space<vmem>>, vector<1x128x128xbf16>
    %245 = vector.shape_cast %244 : vector<1x128x128xbf16> to vector<128x128xbf16>
    %cst_153 = arith.constant dense<0.000000e+00> : vector<2x128xf32>
    %246 = tpu.matmul %243, %245, %cst_153 {dimension_numbers = #tpu.dot_dimension_numbers<[1], [0], [0], [1], [0, 0, 1, 1], [], []>} : vector<2x128xbf16>, vector<128x128xbf16>, vector<2x128xf32> -> vector<2x128xf32>
    %247 = arith.addf %241, %246 : vector<2x128xf32>
    %248 = arith.mulf %208, %2 : f32
    %249 = vector.broadcast %248 : f32 to vector<2x128xf32>
    %250 = arith.mulf %247, %249 : vector<2x128xf32>
    %251 = vector.broadcast %7 : vector<1x128xf32> to vector<2x128xf32>
    %252 = arith.addf %250, %251 : vector<2x128xf32>
    %cst_154 = arith.constant 0.000000e+00 : f32
    %253 = vector.broadcast %cst_154 : f32 to vector<2x128xf32>
    %254 = arith.maximumf %252, %253 : vector<2x128xf32>
    %255 = vector.shape_cast %254 : vector<2x128xf32> to vector<1x2x128xf32>
    %cst_155 = arith.constant dense<0xFF800000> : vector<1xf32>
    %256 = vector.multi_reduction <maximumf>, %255, %cst_155 [1, 2] : vector<1x2x128xf32> to vector<1xf32>
    %257 = vector.shape_cast %256 : vector<1xf32> to vector<1x1x1xf32>
    %258 = vector.extract %257[0, 0, 0] : f32 from vector<1x1x1xf32>
    %cst_156 = arith.constant 9.99999993E-9 : f32
    %259 = arith.maximumf %258, %cst_156 : f32
    %cst_157 = arith.constant 1.500000e+01 : f32
    %260 = arith.divf %259, %cst_157 : f32
    %cst_158 = arith.constant 1.000000e+00 : f32
    %261 = arith.divf %cst_158, %260 : f32
    %262 = vector.broadcast %261 : f32 to vector<2x128xf32>
    %263 = arith.mulf %254, %262 : vector<2x128xf32>
    %264 = math.roundeven %263 : vector<2x128xf32>
    %cst_159 = arith.constant 0.000000e+00 : f32
    %cst_160 = arith.constant 1.500000e+01 : f32
    %265 = vector.broadcast %cst_159 : f32 to vector<2x128xf32>
    %266 = arith.maximumf %265, %264 : vector<2x128xf32>
    %267 = vector.broadcast %cst_160 : f32 to vector<2x128xf32>
    %268 = arith.minimumf %267, %266 : vector<2x128xf32>
    %269 = arith.truncf %268 : vector<2x128xf32> to vector<2x128xbf16>
    %c0_161 = arith.constant 0 : index
    %c0_162 = arith.constant 0 : index
    %270 = vector.load %arg8[%c0_161, %c0_162] : memref<128x128xbf16, #tpu.memory_space<vmem>>, vector<128x128xbf16>
    %cst_163 = arith.constant dense<0.000000e+00> : vector<2x128xf32>
    %271 = tpu.matmul %269, %270, %cst_163 {dimension_numbers = #tpu.dot_dimension_numbers<[1], [0], [0], [1], [0, 0, 1, 1], [], []>} : vector<2x128xbf16>, vector<128x128xbf16>, vector<2x128xf32> -> vector<2x128xf32>
    %272 = arith.mulf %260, %3 : f32
    %273 = vector.broadcast %272 : f32 to vector<2x128xf32>
    %274 = arith.mulf %271, %273 : vector<2x128xf32>
    %275 = vector.broadcast %8 : vector<1x128xf32> to vector<2x128xf32>
    %276 = arith.addf %274, %275 : vector<2x128xf32>
    %cst_164 = arith.constant 0.000000e+00 : f32
    %277 = vector.broadcast %cst_164 : f32 to vector<2x128xf32>
    %278 = arith.maximumf %276, %277 : vector<2x128xf32>
    %279 = vector.shape_cast %278 : vector<2x128xf32> to vector<1x2x128xf32>
    %cst_165 = arith.constant dense<0xFF800000> : vector<1xf32>
    %280 = vector.multi_reduction <maximumf>, %279, %cst_165 [1, 2] : vector<1x2x128xf32> to vector<1xf32>
    %281 = vector.shape_cast %280 : vector<1xf32> to vector<1x1x1xf32>
    %282 = vector.extract %281[0, 0, 0] : f32 from vector<1x1x1xf32>
    %cst_166 = arith.constant 9.99999993E-9 : f32
    %283 = arith.maximumf %282, %cst_166 : f32
    %cst_167 = arith.constant 1.500000e+01 : f32
    %284 = arith.divf %283, %cst_167 : f32
    %cst_168 = arith.constant 1.000000e+00 : f32
    %285 = arith.divf %cst_168, %284 : f32
    %286 = vector.broadcast %285 : f32 to vector<2x128xf32>
    %287 = arith.mulf %278, %286 : vector<2x128xf32>
    %288 = math.roundeven %287 : vector<2x128xf32>
    %cst_169 = arith.constant 0.000000e+00 : f32
    %cst_170 = arith.constant 1.500000e+01 : f32
    %289 = vector.broadcast %cst_169 : f32 to vector<2x128xf32>
    %290 = arith.maximumf %289, %288 : vector<2x128xf32>
    %291 = vector.broadcast %cst_170 : f32 to vector<2x128xf32>
    %292 = arith.minimumf %291, %290 : vector<2x128xf32>
    %293 = arith.truncf %292 : vector<2x128xf32> to vector<2x128xbf16>
    %c0_171 = arith.constant 0 : index
    %c0_172 = arith.constant 0 : index
    %294 = vector.load %arg10[%c0_171, %c0_172] : memref<128x128xbf16, #tpu.memory_space<vmem>>, vector<128x128xbf16>
    %cst_173 = arith.constant dense<0.000000e+00> : vector<2x128xf32>
    %295 = tpu.matmul %293, %294, %cst_173 {dimension_numbers = #tpu.dot_dimension_numbers<[1], [0], [0], [1], [0, 0, 1, 1], [], []>} : vector<2x128xbf16>, vector<128x128xbf16>, vector<2x128xf32> -> vector<2x128xf32>
    %296 = arith.mulf %284, %4 : f32
    %297 = vector.broadcast %296 : f32 to vector<2x128xf32>
    %298 = arith.mulf %295, %297 : vector<2x128xf32>
    %c0_174 = arith.constant 0 : index
    %c0_175 = arith.constant 0 : index
    %299 = vector.load %arg11[%c0_174, %c0_175] : memref<2x128xf32, #tpu.memory_space<vmem>>, vector<2x128xf32>
    tpu.vector_store %arg11[%c0_174, %c0_175], %298 {strides = array<i32>} : memref<2x128xf32, #tpu.memory_space<vmem>>, vector<2x128xf32>,
    return
  }
}

</mosaic_0001>

<bundles_post_ra>
// kernel: lenet_forward.1
= control target key start
LH: loop header
LB: loop body
LE: loop exit
PB: predicated region body
PF: predicated region fallthrough
CT: control target
= control target key end

     0   :  { %16 = vsyncpa [#allocation4], 0  ;;  %s6841_s0 = inlined_call_operand.vmem [shape: f32[8], index: 0, kind: input, shape index: {}]   ;;  %s6842_s1 = inlined_call_operand.vmem [shape: f32[64,128], index: 1, kind: input, shape index: {}]   ;;  %s6843_s2 = inlined_call_operand.vmem [shape: bf16[5,2,128,128], index: 2, kind: input, shape index: {}]   ;;  %s6844_s3 = inlined_call_operand.vmem [shape: f32[1,128], index: 3, kind: input, shape index: {}]   ;;  %s6845_s4 = inlined_call_operand.vmem [shape: bf16[5,2,128,128], index: 4, kind: input, shape index: {}]   ;;  %s6846_s5 = inlined_call_operand.vmem [shape: f32[1,128], index: 5, kind: input, shape index: {}]   ;;  %s6847_s6 = inlined_call_operand.vmem [shape: bf16[5,128,128], index: 6, kind: input, shape index: {}]   ;;  %s6848_s7 = inlined_call_operand.vmem [shape: f32[1,128], index: 7, kind: input, shape index: {}]   ;;  %s6849_s8 = inlined_call_operand.vmem [shape: bf16[128,128], index: 8, kind: input, shape index: {}]   ;;  %s6850_s9 = inlined_call_operand.vmem [shape: f32[1,128], index: 9, kind: input, shape index: {}]   ;;  %s6851_s10 = inlined_call_operand.vmem [shape: bf16[128,128], index: 10, kind: input, shape index: {}]   ;;  %s6852_s11 = inlined_call_operand.hbm [shape: f32[2,128], index: 11, kind: output, shape index: {}]  }
   0x1   :  { %17 = vsyncpa [#allocation3], 0  ;;  %s24_s19 = sshll.u32 %s6841_s0, 4  ;;  %s25_s19 = int_to_ptr.vmem [resolvable:$true] %s24_s19 }
   0x2   :  { %s5576_s20 = scalar_lea.vmem %s25_s19, 16  ;;  %p5581_p1 = scmp.lt.s32.totalorder %s25_s19, %s25_s19 }
   0x3   :  { %p5577_p0 = scmp.ne.s32.totalorder %s25_s19, %s5576_s20  ;;  %p5582_p2 = scmp.lt.s32.totalorder %s5576_s20, %s5576_s20 }
   0x5   :  { %p5583_p3 = por %p5582_p2, %p5581_p1 }
   0x7   :  { %p5584_p4 = pnand %p5583_p3, %p5577_p0 }
   0x9   :  { %5587 = shalt.err (!%p5584_p4)
}
   0xa   :  { %s5612_s21 = smov [#allocation2]  }
   0xb   :  { %27 = dma.vmem_to_smem %s25_s19, 16, %s5612_s21, [#allocation4]  }
   0xc   :  { %5608 = dma.done.wait [#allocation4], 16  }
   0xd   :  { %5609 = vsyncadd [#allocation4], 4294967280 }
   0xe   :  { %51 = sfence }
   0xf   :  { %v62_v0 = vld [vmem:[%s6842_s1] sm:$0xff]  ;;  %v63_v1 = vld [vmem:[%s6842_s1 + $0x8] sm:$0xff]  ;;  %v64_v2 = vld [vmem:[%s6842_s1 + $0x10] sm:$0xff]  ;;  %s5613_s15 = smov 1e-08   ;;  %vm138_vm4 = vcmask 1043456  }
  0x10   :  { %v65_v3 = vld [vmem:[%s6842_s1 + $0x18] sm:$0xff]  ;;  %v66_v4 = vld [vmem:[%s6842_s1 + $0x20] sm:$0xff]  ;;  %v67_v5 = vld [vmem:[%s6842_s1 + $0x28] sm:$0xff]  ;;  %v70_v6 = vand.u32 2147483647, %v62_v0  ;;  %vm192_vm9 = vcmask 1041408  }
  0x11   :  { %v68_v7 = vld [vmem:[%s6842_s1 + $0x30] sm:$0xff]  ;;  %v69_v8 = vld [vmem:[%s6842_s1 + $0x38] sm:$0xff]  ;;  %v71_v9 = vand.u32 2147483647, %v63_v1  ;;  %v72_v10 = vand.u32 2147483647, %v64_v2 }
  0x12   :  { %v73_v11 = vand.u32 2147483647, %v65_v3  ;;  %v74_v12 = vand.u32 2147483647, %v66_v4  ;;  %v75_v13 = vand.u32 2147483647, %v67_v5 }
  0x13   :  { %v76_v14 = vand.u32 2147483647, %v68_v7  ;;  %v77_v15 = vand.u32 2147483647, %v69_v8  ;;  %v5342_v23 = vld [vmem:[%s6843_s2 + $0xb8] sm:$0xff]   ;;  %v5344_v25 = vld [vmem:[%s6843_s2 + $0xb0] sm:$0xff]  }
  0x14   :  { %v78_v16 = vmax.f32.f32 %v70_v6, %v74_v12  ;;  %v79_v17 = vmax.f32.f32 %v71_v9, %v75_v13  ;;  %v5343_v24 = vld [vmem:[%s6843_s2 + $0x38] sm:$0xff]   ;;  %v5345_v26 = vld [vmem:[%s6843_s2 + $0x30] sm:$0xff]   ;;  %4609 = vmatprep.subr.bf16.mxu0 %v5342_v23  ;;  %v5346_v27 = vld [vmem:[%s6843_s2 + $0xa8] sm:$0xff]   ;;  %vm691_vm10 = vcmask 1045504   ;;  %vm5615_vm15 = vmmov 0  }
  0x15   :  { %v80_v18 = vmax.f32.f32 %v72_v10, %v76_v14  ;;  %v81_v19 = vmax.f32.f32 %v73_v11, %v77_v15  ;;  %4633 = vmatprep.subr.bf16.mxu1 %v5343_v24  ;;  %v5347_v28 = vld [vmem:[%s6843_s2 + $0x28] sm:$0xff]   ;;  %4610 = vmatpush3.bf16.msra.mxu0 %v5342_v23  ;;  %v5348_v31 = vld [vmem:[%s6843_s2 + $0xa0] sm:$0xff]   ;;  %v5350_v35 = vld [vmem:[%s6843_s2 + $0x98] sm:$0xff]  }
  0x16   :  { %v82_v20 = vmax.f32.f32 %v78_v16, %v79_v17  ;;  %4634 = vmatpush3.bf16.msra.mxu1 %v5343_v24  ;;  %4611 = vmatprep.subr.bf16.mxu0 %v5344_v25  ;;  %v5349_v32 = vld [vmem:[%s6843_s2 + $0x20] sm:$0xff]   ;;  %v5351_v36 = vld [vmem:[%s6843_s2 + $0x18] sm:$0xff]   ;;  %v5352_v39 = vld [vmem:[%s6843_s2 + $0x90] sm:$0xff]  }
  0x17   :  { %v83_v21 = vmax.f32.f32 %v80_v18, %v81_v19  ;;  %4635 = vmatprep.subr.bf16.mxu1 %v5345_v26  ;;  %v5353_v40 = vld [vmem:[%s6843_s2 + $0x10] sm:$0xff]   ;;  %v5354_v41 = vld [vmem:[%s6843_s2 + $0x88] sm:$0xff]   ;;  %v5356_v44 = vld [vmem:[%s6843_s2 + $0x80] sm:$0xff]  }
  0x18   :  { %v5355_v42 = vld [vmem:[%s6843_s2 + $0x8] sm:$0xff]   ;;  %v5357_v45 = vld [vmem:[%s6843_s2] sm:$0xff]   ;;  %v5755_v46 = vld [vmem:[%s6843_s2 + $0xf8] sm:$0xff]  }
  0x19   :  { %v84_v22 = vmax.f32.f32 %v82_v20, %v83_v21  ;;  %4612 = vmatpush3.bf16.msra.mxu0 %v5344_v25  ;;  %v5760_v47 = vld [vmem:[%s6843_s2 + $0x78] sm:$0xff]   ;;  %v5568_v51 = vld [vmem:[%s6842_s1] sm:$0xff]  ;;  %v5569_v53 = vld [vmem:[%s6842_s1 + $0x10] sm:$0xff] }
  0x1a   :  { %4636 = vmatpush3.bf16.msra.mxu1 %v5345_v26  ;;  %4613 = vmatprep.subr.bf16.mxu0 %v5346_v27  ;;  %v5570_v55 = vld [vmem:[%s6842_s1 + $0x18] sm:$0xff]  ;;  %v5571_v57 = vld [vmem:[%s6842_s1 + $0x20] sm:$0xff]  ;;  %v5572_v59 = vld [vmem:[%s6842_s1 + $0x28] sm:$0xff] }
  0x1b   :  { %85 = vmax.xlane.f32.xlu0 %v84_v22  ;;  %4637 = vmatprep.subr.bf16.mxu1 %v5347_v28  ;;  %v5573_v61 = vld [vmem:[%s6842_s1 + $0x30] sm:$0xff]  ;;  %v5574_v63 = vld [vmem:[%s6842_s1 + $0x38] sm:$0xff]  ;;  %v5575_v1 = vld [vmem:[%s6842_s1 + $0x8] sm:$0xff] }
  0x1d   :  { %4614 = vmatpush3.bf16.msra.mxu0 %v5346_v27 }
  0x1e   :  { %4638 = vmatpush3.bf16.msra.mxu1 %v5347_v28  ;;  %4615 = vmatprep.subr.bf16.mxu0 %v5348_v31 }
  0x1f   :  { %4639 = vmatprep.subr.bf16.mxu1 %v5349_v32 }
  0x21   :  { %4616 = vmatpush3.bf16.msra.mxu0 %v5348_v31 }
  0x22   :  { %4640 = vmatpush3.bf16.msra.mxu1 %v5349_v32  ;;  %4617 = vmatprep.subr.bf16.mxu0 %v5350_v35 }
  0x23   :  { %4641 = vmatprep.subr.bf16.mxu1 %v5351_v36 }
  0x25   :  { %4618 = vmatpush3.bf16.msra.mxu0 %v5350_v35 }
  0x26   :  { %4642 = vmatpush3.bf16.msra.mxu1 %v5351_v36  ;;  %4619 = vmatprep.subr.bf16.mxu0 %v5352_v39 }
  0x27   :  { %4643 = vmatprep.subr.bf16.mxu1 %v5353_v40 }
  0x29   :  { %4620 = vmatpush3.bf16.msra.mxu0 %v5352_v39 }
  0x2a   :  { %4644 = vmatpush3.bf16.msra.mxu1 %v5353_v40  ;;  %4621 = vmatprep.subr.bf16.mxu0 %v5354_v41 }
  0x2b   :  { %4645 = vmatprep.subr.bf16.mxu1 %v5355_v42 }
  0x2d   :  { %4622 = vmatpush3.bf16.msra.mxu0 %v5354_v41 }
  0x2e   :  { %4646 = vmatpush3.bf16.msra.mxu1 %v5355_v42  ;;  %4623 = vmatprep.subr.bf16.mxu0 %v5356_v44 }
  0x2f   :  { %4647 = vmatprep.subr.bf16.mxu1 %v5357_v45 }
  0x31   :  { %4624 = vmatpush3.bf16.msra.mxu0 %v5356_v44 }
  0x32   :  { %4648 = vmatpush3.bf16.msra.mxu1 %v5357_v45  ;;  %4657 = vmatprep.subr.bf16.mxu0 %v5755_v46 }
  0x33   :  { %4681 = vmatprep.subr.bf16.mxu1 %v5760_v47 }
  0xa4   :  { %v86_v29 = vpop.xlane.xlu0 %85 }
  0xa5   :  { %v87_v30 = vrot.slane %v86_v29, 4 }
  0xa7   :  { %v88_v33 = vmax.f32 %v86_v29, %v87_v30 }
  0xa9   :  { %v89_v34 = vrot.slane %v88_v33, 2 }
  0xab   :  { %v90_v37 = vmax.f32 %v88_v33, %v89_v34 }
  0xad   :  { %v91_v38 = vrot.slane %v90_v37, 1 }
  0xaf   :  { %v92_v43 = vmax.f32 %v90_v37, %v91_v38 }
  0xb1   :  { %5189 = vpush %v92_v43 }
  0xe2   :  { %s5190_s14 = spop %5189 }
  0xe3   :  { %s5765_s16 = smax.f32 %s5613_s15, %s5190_s14 }
  0xe4   :  { %s97_s17 = smul.f32 0.14285715, %s5765_s16 }
  0xe6   :  { %v98_v48 = vstv %s97_s17 }
  0xe7   :  { %5558 = vrcp.f32 %v98_v48 }
  0xf4   :  { %v5559_v49 = vpop.eup %5558 }
  0xf5   :  { %5191 = vpush %v5559_v49 }
 0x126   :  { %s5192_s18 = spop %5191 }
 0x127   :  { %v101_v50 = vstv %s5192_s18 }
 0x128   :  { %v5773_v52 = vmul.f32 %v5568_v51, %v101_v50  ;;  %v5778_v54 = vmul.f32 %v5569_v53, %v101_v50  ;;  %v5783_v56 = vmul.f32 %v5570_v55, %v101_v50  ;;  %v106_v58 = vmul.f32 %v5571_v57, %v101_v50 }
 0x129   :  { %v107_v60 = vmul.f32 %v5572_v59, %v101_v50  ;;  %v5794_v62 = vmul.f32 %v5573_v61, %v101_v50  ;;  %v5799_v0 = vmul.f32 %v5574_v63, %v101_v50  ;;  %v103_v2 = vmul.f32 %v5575_v1, %v101_v50 }
 0x12a   :  { %v5211_v3 = vcvt.f32.s32 %v5778_v54  ;;  %v5219_v4 = vcvt.f32.s32 %v5783_v56  ;;  %v5225_v7 = vand.u32 2147483647, %v106_v58  ;;  %v5193_v8 = vand.u32 2147483647, %v5773_v52 }
 0x12b   :  { %v5243_v5 = vcvt.f32.s32 %v5794_v62  ;;  %v5251_v6 = vcvt.f32.s32 %v5799_v0  ;;  %v5254_v10 = vand.u32 2147483648, %v5799_v0  ;;  %v5227_v11 = vcvt.f32.s32 %v106_v58 }
 0x12c   :  { %v5809_v9 = vcvt.s32.f32 %v5219_v4  ;;  %v5233_v12 = vand.u32 2147483647, %v107_v60  ;;  %vm5812_vm0 = vcmp.lt.f32.partialorder %v5225_v7, 8388608.0  ;;  %v5230_v15 = vand.u32 2147483648, %v106_v58 }
 0x12d   :  { %v5252_v13 = vcvt.s32.f32 %v5251_v6  ;;  %v5235_v16 = vcvt.f32.s32 %v107_v60  ;;  %v5228_v17 = vcvt.s32.f32 %v5227_v11  ;;  %v5238_v19 = vand.u32 2147483648, %v107_v60 }
 0x12e   :  { %vm5816_vm1 = vcmp.lt.f32.partialorder %v5233_v12, 8388608.0  ;;  %v5195_v20 = vcvt.f32.s32 %v5773_v52  ;;  %vm5821_vm2 = vcmp.lt.f32.partialorder %v5193_v8, 8388608.0  ;;  %v5201_v23 = vand.u32 2147483647, %v103_v2 }
 0x12f   :  { %v5236_v21 = vcvt.s32.f32 %v5235_v16  ;;  %v5203_v24 = vcvt.f32.s32 %v103_v2  ;;  %v5229_v25 = vand.u32 2147483647, %v5228_v17  ;;  %v5198_v27 = vand.u32 2147483648, %v5773_v52 }
 0x130   :  { %v5196_v26 = vcvt.s32.f32 %v5195_v20  ;;  %v5241_v28 = vand.u32 2147483647, %v5794_v62  ;;  %v5206_v31 = vand.u32 2147483648, %v103_v2  ;;  %v5244_v32 = vcvt.s32.f32 %v5243_v5 }
 0x131   :  { %v5237_v29 = vand.u32 2147483647, %v5236_v21  ;;  %v5204_v30 = vcvt.s32.f32 %v5203_v24  ;;  %v5231_v33 = vor.u32 %v5230_v15, %v5229_v25  ;;  %vm5827_vm3 = vcmp.lt.f32.partialorder %v5201_v23, 8388608.0 }
 0x132   :  { %v5197_v34 = vand.u32 2147483647, %v5196_v26  ;;  %v5246_v36 = vand.u32 2147483648, %v5794_v62  ;;  %v5245_v39 = vand.u32 2147483647, %v5244_v32  ;;  %vm5835_vm5 = vcmp.lt.f32.partialorder %v5241_v28, 8388608.0 }
 0x133   :  { %v5239_v37 = vor.u32 %v5238_v19, %v5237_v29  ;;  %v5205_v38 = vand.u32 2147483647, %v5204_v30  ;;  %v5249_v40 = vand.u32 2147483647, %v5799_v0  ;;  %v5232_v41 = vsel %vm5812_vm0, %v5231_v33, %v106_v58 }
 0x134   :  { %v5199_v42 = vor.u32 %v5198_v27, %v5197_v34  ;;  %v5253_v44 = vand.u32 2147483647, %v5252_v13  ;;  %v122_v48 = vmax.f32 %v5232_v41, -8.0  ;;  %v5247_v50 = vor.u32 %v5246_v36, %v5245_v39 }
 0x135   :  { %v5240_v45 = vsel %vm5816_vm1, %v5239_v37, %v107_v60  ;;  %v5207_v49 = vor.u32 %v5206_v31, %v5205_v38  ;;  %vm5250_vm6 = vcmp.lt.f32.partialorder %v5249_v40, 8388608.0  ;;  %v5209_v6 = vand.u32 2147483647, %v5778_v54  ;;  %v5362_v31 = vld [vmem:[%s6843_s2 + $0xe8] sm:$0xff]  }
 0x136   :  { %v123_v51 = vmax.f32 %v5240_v45, -8.0  ;;  %v5200_v53 = vsel %vm5821_vm2, %v5199_v42, %v5773_v52  ;;  %v5255_v55 = vor.u32 %v5254_v10, %v5253_v44  ;;  %v5844_v57 = vmin.f32 %v122_v48, 7.0  ;;  %v5361_v48 = vld [vmem:[%s6843_s2 + $0x70] sm:$0xff]  }
 0x137   :  { %v5208_v58 = vsel %vm5827_vm3, %v5207_v49, %v103_v2  ;;  %v118_v59 = vmax.f32 %v5200_v53, -8.0  ;;  %v5248_v60 = vsel %vm5835_vm5, %v5247_v50, %v5794_v62  ;;  %v5212_v7 = vcvt.s32.f32 %v5211_v3 }
 0x138   :  { %v5851_v61 = vmin.f32 %v123_v51, 7.0  ;;  %v119_v63 = vmax.f32 %v5208_v58, -8.0  ;;  %v5256_v1 = vsel %vm5250_vm6, %v5255_v55, %v5799_v0  ;;  %v124_v4 = vmax.f32 %v5248_v60, -8.0 }
 0x139   :  { %v5854_v5 = vmin.f32 %v118_v59, 7.0  ;;  %v125_v52 = vmax.f32 %v5256_v1, -8.0  ;;  %v5214_v62 = vand.u32 2147483648, %v5778_v54  ;;  %v5213_v12 = vand.u32 2147483647, %v5212_v7  ;;  %v5364_v59 = vld [vmem:[%s6843_s2 + $0xe0] sm:$0xff]  }
 0x13a   :  { %v5859_v2 = vpack.c.bf16 %v5851_v61, %v5844_v57  ;;  %v5861_v8 = vmin.f32 %v119_v63, 7.0  ;;  %v5863_v10 = vmin.f32 %v124_v4, 7.0  ;;  %v5217_v13 = vand.u32 2147483647, %v5783_v56  ;;  %v5363_v1 = vld [vmem:[%s6843_s2 + $0x68] sm:$0xff]  }
 0x13b   :  { %v5866_v11 = vmin.f32 %v125_v52, 7.0  ;;  %v193_v0 = vrot.slane %v5854_v5, 6  ;;  %v5222_v14 = vand.u32 2147483648, %v5783_v56  ;;  %v5221_v15 = vand.u32 2147483647, %v5809_v9  ;;  %v5360_v9 = vld [vmem:[%s6843_s2 + $0xf0] sm:$0xff]  }
 0x13c   :  { %4625 = vmatprep.mubr.bf16.mxu0 %v5859_v2  ;;  %v5874_v3 = vpack.c.bf16 %v5861_v8, %v5854_v5  ;;  %vm5210_vm7 = vcmp.lt.f32.partialorder %v5209_v6, 8388608.0  ;;  %v5215_v17 = vor.u32 %v5214_v62, %v5213_v12  ;;  %v139_v18 = vrot.slane %v5844_v57, 4 }
 0x13d   :  { %v204_v16 = vsel %vm138_vm4, %v5866_v11, %v193_v0  ;;  %v5223_v20 = vor.u32 %v5222_v14, %v5221_v15  ;;  %v194_v21 = vrot.slane %v5861_v8, 6  ;;  %v140_v22 = vrot.slane %v5851_v61, 4 }
 0x13e   :  { %4649 = vmatprep.mubr.bf16.mxu1 %v5874_v3  ;;  %v5882_v19 = vpack.c.bf16 %v204_v16, %v5863_v10  ;;  %v5216_v23 = vsel %vm5210_vm7, %v5215_v17, %v5778_v54  ;;  %vm5218_vm8 = vcmp.lt.f32.partialorder %v5217_v13, 8388608.0  ;;  %v142_v24 = vrot.slane %v5863_v10, 4 }
 0x13f   :  { %v5224_v25 = vsel %vm5218_vm8, %v5223_v20, %v5783_v56  ;;  %v120_v26 = vmax.f32 %v5216_v23, -8.0  ;;  %v703_v28 = vrot.slane %v5844_v57, 6  ;;  %v195_v30 = vsel %vm192_vm9, %v193_v0, %v194_v21 }
 0x140   :  { %4626 = vmatmul.mubr.bf16.vlgmr.msra.gmra.mxu0 %v5882_v19  ;;  %v121_v27 = vmax.f32 %v5224_v25, -8.0  ;;  %v141_v54 = vsel %vm138_vm4, %v139_v18, %v140_v22  ;;  %v704_v56 = vrot.slane %v5851_v61, 6  ;;  %v706_v33 = vrot.slane %v5863_v10, 6  ;;  %v5370_v25 = vld [vmem:[%s6843_s2 + $0xc8] sm:$0xff]  }
 0x141   :  { %4658 = vmatpush3.bf16.msra.mxu0 %v5755_v46  ;;  %v5895_v29 = vmin.f32 %v120_v26, 7.0  ;;  %v143_v46 = vsel %vm138_vm4, %v140_v22, %v142_v24  ;;  %v708_v34 = vrot.slane %v5866_v11, 6  ;;  %v991_v37 = vrot.slane %v5844_v57, 2  ;;  %v5372_v26 = vld [vmem:[%s6843_s2 + $0xc0] sm:$0xff]  }
 0x142   :  { %4659 = vmatprep.subr.bf16.mxu0 %v5360_v9  ;;  %v5903_v32 = vmin.f32 %v121_v27, 7.0  ;;  %v705_v36 = vsel %vm192_vm9, %v703_v28, %v704_v56  ;;  %v992_v38 = vrot.slane %v5851_v61, 2  ;;  %v144_v41 = vrot.slane %v5866_v11, 4  ;;  %v5371_v27 = vld [vmem:[%s6843_s2 + $0x48] sm:$0xff]  }
 0x143   :  { %v196_v35 = vrot.slane %v5895_v29, 6  ;;  %v707_v42 = vsel %vm192_vm9, %v704_v56, %v706_v33  ;;  %v5923_v45 = vpack.c.bf16 %v143_v46, %v141_v54  ;;  %v5935_v53 = vsel %vm192_vm9, %v706_v33, %v708_v34  ;;  %v5373_v54 = vld [vmem:[%s6843_s2 + $0x40] sm:$0xff]   ;;  %v5375_v56 = vld [vmem:[%s6843_s2 + $0x178] sm:$0xff]  }
 0x144   :  { %v150_v39 = vsel %vm138_vm4, %v5903_v32, %v139_v18  ;;  %v198_v40 = vrot.slane %v5903_v32, 6  ;;  %v5928_v49 = vpack.c.bf16 %v707_v42, %v705_v36  ;;  %v993_v55 = vsel %vm691_vm10, %v991_v37, %v992_v38  ;;  %v5379_v36 = vld [vmem:[%s6843_s2 + $0x168] sm:$0xff]  }
 0x145   :  { %4660 = vmatpush3.bf16.msra.mxu0 %v5360_v9  ;;  %v5920_v43 = vpack.c.bf16 %v150_v39, %v5895_v29  ;;  %v197_v44 = vsel %vm192_vm9, %v194_v21, %v196_v35  ;;  %v994_v60 = vrot.slane %v5863_v10, 2  ;;  %v996_v63 = vrot.slane %v5866_v11, 2  ;;  %v5366_v21 = vld [vmem:[%s6843_s2 + $0xd8] sm:$0xff]   ;;  %v5386_v42 = vld [vmem:[%s6843_s2 + $0x108] sm:$0xff]  }
 0x146   :  { %4661 = vmatprep.subr.bf16.mxu0 %v5362_v31  ;;  %v5930_v50 = vpack.c.bf16 %v197_v44, %v195_v30  ;;  %v199_v51 = vsel %vm192_vm9, %v196_v35, %v198_v40  ;;  %v5954_v4 = vpack.c.bf16 %v5895_v29, %v5861_v8  ;;  %v1279_v52 = vrot.slane %v5854_v5, 4  ;;  %v5374_v30 = vld [vmem:[%s6843_s2 + $0x138] sm:$0xff]   ;;  %v5377_v35 = vld [vmem:[%s6843_s2 + $0x170] sm:$0xff]   ;;  %v5388_v44 = vld [vmem:[%s6843_s2 + $0x100] sm:$0xff]  }
 0x147   :  { %4650 = vmatmul.mubr.bf16.vlgmr.msra.gmra.mxu1 %v5920_v43  ;;  %v5940_v58 = vpack.c.bf16 %v199_v51, %v199_v51  ;;  %v1280_v6 = vrot.slane %v5861_v8, 4  ;;  %v995_v7 = vsel %vm691_vm10, %v992_v38, %v994_v60  ;;  %v997_v62 = vsel %vm691_vm10, %v994_v60, %v996_v63  ;;  %v5381_v38 = vld [vmem:[%s6843_s2 + $0x160] sm:$0xff]   ;;  %v5382_v39 = vld [vmem:[%s6843_s2 + $0x118] sm:$0xff]   ;;  %v5384_v40 = vld [vmem:[%s6843_s2 + $0x110] sm:$0xff]  }
 0x148   :  { %4682 = vmatpush3.bf16.msra.mxu1 %v5760_v47  ;;  %4629 = vmatprep.mubr.bf16.mxu0 %v5930_v50  ;;  %v145_v47 = vsel %vm138_vm4, %v142_v24, %v144_v41  ;;  %v1002_v0 = vsel %vm138_vm4, %v996_v63, %v5854_v5  ;;  %v1282_v12 = vrot.slane %v5895_v29, 4  ;;  %v5965_v13 = vpack.c.bf16 %v995_v7, %v993_v55  ;;  %v5367_v24 = vld [vmem:[%s6843_s2 + $0x58] sm:$0xff]   ;;  %v5389_v51 = vld [vmem:[%s6843_s2 + $0x140] sm:$0xff]   ;;  %v5392_v60 = vld [vmem:[%s6843_s2 + $0x1b0] sm:$0xff]  }
 0x149   :  { %4653 = vmatprep.mubr.bf16.mxu1 %v5923_v45  ;;  %4683 = vmatprep.subr.bf16.mxu1 %v5361_v48  ;;  %v5967_v14 = vpack.c.bf16 %v1002_v0, %v997_v62  ;;  %v1281_v15 = vsel %vm138_vm4, %v1279_v52, %v1280_v6  ;;  %v1284_v16 = vrot.slane %v5903_v32, 4  ;;  %v5974_v18 = vpack.c.bf16 %v5863_v10, %v5851_v61  ;;  %v5368_v10 = vld [vmem:[%s6843_s2 + $0xd0] sm:$0xff]   ;;  %v5383_v41 = vld [vmem:[%s6843_s2 + $0x158] sm:$0xff]   ;;  %v5395_v52 = vld [vmem:[%s6843_s2 + $0x1e8] sm:$0xff]  }
 0x14a   :  { %4630 = vmatmul.mubr.bf16.gmra.mxu0 %v5940_v58  ;;  %v1283_v17 = vsel %vm138_vm4, %v1280_v6, %v1282_v12  ;;  %v5976_v20 = vpack.c.bf16 %v145_v47, %v145_v47  ;;  %v692_v46 = vrot.slane %v5854_v5, 2  ;;  %v693_v33 = vrot.slane %v5861_v8, 2  ;;  %v5391_v63 = vld [vmem:[%s6843_s2 + $0x1f8] sm:$0xff]   ;;  %v5396_v47 = vld [vmem:[%s6843_s2 + $0x1a0] sm:$0xff]   ;;  %v5400_v6 = vld [vmem:[%s6843_s2 + $0x190] sm:$0xff]  }
 0x14b   :  { %4662 = vmatpush3.bf16.msra.mxu0 %v5362_v31  ;;  %4673 = vmatprep.mubr.bf16.mxu0 %v5859_v2  ;;  %v5365_v2 = vld [vmem:[%s6843_s2 + $0x60] sm:$0xff]   ;;  %v5984_v22 = vpack.c.bf16 %v1283_v17, %v1281_v15  ;;  %v1285_v9 = vsel %vm138_vm4, %v1282_v12, %v1284_v16  ;;  %v1290_v23 = vsel %vm138_vm4, %v1284_v16, %v5844_v57  ;;  %v5376_v31 = vld [vmem:[%s6843_s2 + $0x130] sm:$0xff]   ;;  %v695_v34 = vrot.slane %v5895_v29, 2  ;;  %v5399_v7 = vld [vmem:[%s6843_s2 + $0x1d8] sm:$0xff]  }
 0x14c   :  { %4684 = vmatpush3.bf16.msra.mxu1 %v5361_v48  ;;  %4663 = vmatprep.subr.bf16.mxu0 %v5364_v59  ;;  %v5989_v61 = vpack.c.bf16 %v1290_v23, %v1285_v9  ;;  %v694_v5 = vsel %vm691_vm10, %v692_v46, %v693_v33  ;;  %v5380_v29 = vld [vmem:[%s6843_s2 + $0x120] sm:$0xff]   ;;  %v697_v48 = vrot.slane %v5903_v32, 2  ;;  %v5393_v57 = vld [vmem:[%s6843_s2 + $0x1f0] sm:$0xff]   ;;  %v5402_v62 = vld [vmem:[%s6843_s2 + $0x188] sm:$0xff]   ;;  %v1006_v9 = vpack.c.bf16 %v5903_v32, %v5903_v32 }
 0x14d   :  { %4685 = vmatprep.subr.bf16.mxu1 %v5363_v1  ;;  %v696_v8 = vsel %vm691_vm10, %v693_v33, %v695_v34  ;;  %v5401_v0 = vld [vmem:[%s6843_s2 + $0x1d0] sm:$0xff]   ;;  %v5404_v12 = vld [vmem:[%s6843_s2 + $0x180] sm:$0xff]   ;;  %v5406_v15 = vld [vmem:[%s6843_s2 + $0x238] sm:$0xff]  }
 0x14e   :  { %v715_v37 = vpack.c.bf16 %v696_v8, %v694_v5  ;;  %v698_v55 = vsel %vm691_vm10, %v695_v34, %v697_v48  ;;  %v5405_v16 = vld [vmem:[%s6843_s2 + $0x1c0] sm:$0xff]   ;;  %v5408_v17 = vld [vmem:[%s6843_s2 + $0x230] sm:$0xff]  }
 0x14f   :  { %4654 = vmatmul.mubr.bf16.gmra.mxu1 %v5976_v20  ;;  %4664 = vmatpush3.bf16.msra.mxu0 %v5364_v59  ;;  %v5412_v23 = vld [vmem:[%s6843_s2 + $0x220] sm:$0xff]  }
 0x150   :  { %4686 = vmatpush3.bf16.msra.mxu1 %v5363_v1  ;;  %4697 = vmatprep.mubr.bf16.mxu1 %v5874_v3  ;;  %v5369_v3 = vld [vmem:[%s6843_s2 + $0x50] sm:$0xff]   ;;  %v718_v1 = vpack.c.bf16 %v5935_v53, %v5935_v53  ;;  %v5398_v53 = vld [vmem:[%s6843_s2 + $0x198] sm:$0xff]   ;;  %v5413_v32 = vld [vmem:[%s6843_s2 + $0x260] sm:$0xff]  }
 0x151   :  { %4687 = vmatprep.subr.bf16.mxu1 %v5365_v2  ;;  %4665 = vmatprep.subr.bf16.mxu0 %v5366_v21 }
 0x153   :  { %4666 = vmatpush3.bf16.msra.mxu0 %v5366_v21  ;;  %v5410_v21 = vld [vmem:[%s6843_s2 + $0x228] sm:$0xff]  }
 0x154   :  { %4688 = vmatpush3.bf16.msra.mxu1 %v5365_v2  ;;  %4667 = vmatprep.subr.bf16.mxu0 %v5368_v10  ;;  %v5409_v2 = vld [vmem:[%s6843_s2 + $0x270] sm:$0xff]  }
 0x155   :  { %4689 = vmatprep.subr.bf16.mxu1 %v5367_v24 }
 0x157   :  { %4668 = vmatpush3.bf16.msra.mxu0 %v5368_v10  ;;  %v5411_v10 = vld [vmem:[%s6843_s2 + $0x268] sm:$0xff]  }
 0x158   :  { %4690 = vmatpush3.bf16.msra.mxu1 %v5367_v24  ;;  %4669 = vmatprep.subr.bf16.mxu0 %v5370_v25  ;;  %v5415_v24 = vld [vmem:[%s6843_s2 + $0x258] sm:$0xff]  }
 0x159   :  { %4691 = vmatprep.subr.bf16.mxu1 %v5369_v3 }
 0x15b   :  { %4670 = vmatpush3.bf16.msra.mxu0 %v5370_v25  ;;  %v5418_v25 = vld [vmem:[%s6843_s2 + $0x208] sm:$0xff]  }
 0x15c   :  { %4692 = vmatpush3.bf16.msra.mxu1 %v5369_v3  ;;  %4671 = vmatprep.subr.bf16.mxu0 %v5372_v26  ;;  %v5420_v3 = vld [vmem:[%s6843_s2 + $0x200] sm:$0xff]  }
 0x15d   :  { %4693 = vmatprep.subr.bf16.mxu1 %v5371_v27 }
 0x15f   :  { %4672 = vmatpush3.bf16.msra.mxu0 %v5372_v26  ;;  %v5419_v26 = vld [vmem:[%s6843_s2 + $0x248] sm:$0xff]  }
 0x160   :  { %4694 = vmatpush3.bf16.msra.mxu1 %v5371_v27  ;;  %4705 = vmatprep.subr.bf16.mxu0 %v5374_v30  ;;  %v5421_v27 = vld [vmem:[%s6843_s2 + $0x240] sm:$0xff]  }
 0x161   :  { %4695 = vmatprep.subr.bf16.mxu1 %v5373_v54 }
 0x162   :  { %4674 = vmatmul.mubr.bf16.vlgmr.msra.gmra.mxu0 %v5882_v19  ;;  %v5378_v19 = vld [vmem:[%s6843_s2 + $0x128] sm:$0xff]  }
 0x163   :  { %4677 = vmatprep.mubr.bf16.mxu0 %v5930_v50  ;;  %4706 = vmatpush3.bf16.msra.mxu0 %v5374_v30  ;;  %v5390_v50 = vld [vmem:[%s6843_s2 + $0x1b8] sm:$0xff]   ;;  %v1294_v30 = vpack.c.bf16 %v5866_v11, %v5866_v11 }
 0x164   :  { %4696 = vmatpush3.bf16.msra.mxu1 %v5373_v54  ;;  %4707 = vmatprep.subr.bf16.mxu0 %v5376_v31 }
 0x165   :  { %4729 = vmatprep.subr.bf16.mxu1 %v5375_v56 }
 0x167   :  { %4698 = vmatmul.mubr.bf16.vlgmr.msra.gmra.mxu1 %v5920_v43  ;;  %4708 = vmatpush3.bf16.msra.mxu0 %v5376_v31  ;;  %v5385_v43 = vld [vmem:[%s6843_s2 + $0x150] sm:$0xff]  }
 0x168   :  { %4701 = vmatprep.mubr.bf16.mxu1 %v5923_v45  ;;  %4730 = vmatpush3.bf16.msra.mxu1 %v5375_v56  ;;  %v5387_v45 = vld [vmem:[%s6843_s2 + $0x148] sm:$0xff]  }
 0x169   :  { %4731 = vmatprep.subr.bf16.mxu1 %v5377_v35  ;;  %4709 = vmatprep.subr.bf16.mxu0 %v5378_v19 }
 0x16a   :  { %4678 = vmatmul.mubr.bf16.gmra.mxu0 %v5940_v58  ;;  %v714_v58 = vsel %vm138_vm4, %v697_v48, %v703_v28  ;;  %v5394_v28 = vld [vmem:[%s6843_s2 + $0x1a8] sm:$0xff]  }
 0x16b   :  { %4710 = vmatpush3.bf16.msra.mxu0 %v5378_v19  ;;  %4721 = vmatprep.mubr.bf16.mxu0 %v715_v37  ;;  %v716_v59 = vpack.c.bf16 %v714_v58, %v698_v55 }
 0x16c   :  { %4732 = vmatpush3.bf16.msra.mxu1 %v5377_v35  ;;  %4711 = vmatprep.subr.bf16.mxu0 %v5380_v29 }
 0x16d   :  { %4733 = vmatprep.subr.bf16.mxu1 %v5379_v36 }
 0x16f   :  { %4702 = vmatmul.mubr.bf16.gmra.mxu1 %v5976_v20  ;;  %4712 = vmatpush3.bf16.msra.mxu0 %v5380_v29  ;;  %v5407_v20 = vld [vmem:[%s6843_s2 + $0x278] sm:$0xff]  }
 0x170   :  { %4734 = vmatpush3.bf16.msra.mxu1 %v5379_v36  ;;  %4745 = vmatprep.mubr.bf16.mxu1 %v715_v37 }
 0x171   :  { %4735 = vmatprep.subr.bf16.mxu1 %v5381_v38  ;;  %4713 = vmatprep.subr.bf16.mxu0 %v5382_v39 }
 0x173   :  { %4714 = vmatpush3.bf16.msra.mxu0 %v5382_v39 }
 0x174   :  { %4736 = vmatpush3.bf16.msra.mxu1 %v5381_v38  ;;  %4715 = vmatprep.subr.bf16.mxu0 %v5384_v40 }
 0x175   :  { %4737 = vmatprep.subr.bf16.mxu1 %v5383_v41 }
 0x177   :  { %4716 = vmatpush3.bf16.msra.mxu0 %v5384_v40 }
 0x178   :  { %4738 = vmatpush3.bf16.msra.mxu1 %v5383_v41  ;;  %4717 = vmatprep.subr.bf16.mxu0 %v5386_v42 }
 0x179   :  { %4739 = vmatprep.subr.bf16.mxu1 %v5385_v43 }
 0x17b   :  { %4718 = vmatpush3.bf16.msra.mxu0 %v5386_v42 }
 0x17c   :  { %4740 = vmatpush3.bf16.msra.mxu1 %v5385_v43  ;;  %4719 = vmatprep.subr.bf16.mxu0 %v5388_v44 }
 0x17d   :  { %4741 = vmatprep.subr.bf16.mxu1 %v5387_v45 }
 0x17f   :  { %4720 = vmatpush3.bf16.msra.mxu0 %v5388_v44 }
 0x180   :  { %4742 = vmatpush3.bf16.msra.mxu1 %v5387_v45  ;;  %4753 = vmatprep.subr.bf16.mxu0 %v5390_v50 }
 0x181   :  { %4743 = vmatprep.subr.bf16.mxu1 %v5389_v51 }
 0x182   :  { %4722 = vmatmul.mubr.bf16.vlgmr.msra.gmra.mxu0 %v716_v59 }
 0x183   :  { %4725 = vmatprep.mubr.bf16.mxu0 %v5928_v49  ;;  %4754 = vmatpush3.bf16.msra.mxu0 %v5390_v50 }
 0x184   :  { %4744 = vmatpush3.bf16.msra.mxu1 %v5389_v51  ;;  %4755 = vmatprep.subr.bf16.mxu0 %v5392_v60 }
 0x185   :  { %4777 = vmatprep.subr.bf16.mxu1 %v5391_v63 }
 0x187   :  { %4746 = vmatmul.mubr.bf16.vlgmr.msra.gmra.mxu1 %v716_v59  ;;  %4756 = vmatpush3.bf16.msra.mxu0 %v5392_v60 }
 0x188   :  { %4749 = vmatprep.mubr.bf16.mxu1 %v5928_v49  ;;  %4778 = vmatpush3.bf16.msra.mxu1 %v5391_v63  ;;  %v5397_v49 = vld [vmem:[%s6843_s2 + $0x1e0] sm:$0xff]  }
 0x189   :  { %4779 = vmatprep.subr.bf16.mxu1 %v5393_v57  ;;  %4757 = vmatprep.subr.bf16.mxu0 %v5394_v28 }
 0x18a   :  { %4726 = vmatmul.mubr.bf16.gmra.mxu0 %v718_v1 }
 0x18b   :  { %4758 = vmatpush3.bf16.msra.mxu0 %v5394_v28  ;;  %4769 = vmatprep.mubr.bf16.mxu0 %v5965_v13 }
 0x18c   :  { %4780 = vmatpush3.bf16.msra.mxu1 %v5393_v57  ;;  %4759 = vmatprep.subr.bf16.mxu0 %v5396_v47 }
 0x18d   :  { %4781 = vmatprep.subr.bf16.mxu1 %v5395_v52 }
 0x18f   :  { %4750 = vmatmul.mubr.bf16.gmra.mxu1 %v718_v1  ;;  %4760 = vmatpush3.bf16.msra.mxu0 %v5396_v47 }
 0x190   :  { %4782 = vmatpush3.bf16.msra.mxu1 %v5395_v52  ;;  %4793 = vmatprep.mubr.bf16.mxu1 %v5965_v13  ;;  %v5403_v13 = vld [vmem:[%s6843_s2 + $0x1c8] sm:$0xff]  }
 0x191   :  { %4783 = vmatprep.subr.bf16.mxu1 %v5397_v49  ;;  %4761 = vmatprep.subr.bf16.mxu0 %v5398_v53 }
 0x193   :  { %4762 = vmatpush3.bf16.msra.mxu0 %v5398_v53 }
 0x194   :  { %4784 = vmatpush3.bf16.msra.mxu1 %v5397_v49  ;;  %4763 = vmatprep.subr.bf16.mxu0 %v5400_v6 }
 0x195   :  { %4785 = vmatprep.subr.bf16.mxu1 %v5399_v7 }
 0x197   :  { %4764 = vmatpush3.bf16.msra.mxu0 %v5400_v6 }
 0x198   :  { %4786 = vmatpush3.bf16.msra.mxu1 %v5399_v7  ;;  %4765 = vmatprep.subr.bf16.mxu0 %v5402_v62 }
 0x199   :  { %4787 = vmatprep.subr.bf16.mxu1 %v5401_v0 }
 0x19b   :  { %4766 = vmatpush3.bf16.msra.mxu0 %v5402_v62 }
 0x19c   :  { %4788 = vmatpush3.bf16.msra.mxu1 %v5401_v0  ;;  %4767 = vmatprep.subr.bf16.mxu0 %v5404_v12 }
 0x19d   :  { %4789 = vmatprep.subr.bf16.mxu1 %v5403_v13 }
 0x19f   :  { %4768 = vmatpush3.bf16.msra.mxu0 %v5404_v12 }
 0x1a0   :  { %4790 = vmatpush3.bf16.msra.mxu1 %v5403_v13  ;;  %4801 = vmatprep.subr.bf16.mxu0 %v5406_v15 }
 0x1a1   :  { %4791 = vmatprep.subr.bf16.mxu1 %v5405_v16 }
 0x1a2   :  { %4770 = vmatmul.mubr.bf16.vlgmr.msra.gmra.mxu0 %v5967_v14 }
 0x1a3   :  { %4773 = vmatprep.mubr.bf16.mxu0 %v5954_v4  ;;  %4802 = vmatpush3.bf16.msra.mxu0 %v5406_v15 }
 0x1a4   :  { %4792 = vmatpush3.bf16.msra.mxu1 %v5405_v16  ;;  %4803 = vmatprep.subr.bf16.mxu0 %v5408_v17 }
 0x1a5   :  { %4825 = vmatprep.subr.bf16.mxu1 %v5407_v20 }
 0x1a7   :  { %4794 = vmatmul.mubr.bf16.vlgmr.msra.gmra.mxu1 %v5967_v14  ;;  %4804 = vmatpush3.bf16.msra.mxu0 %v5408_v17  ;;  %v5416_v14 = vld [vmem:[%s6843_s2 + $0x210] sm:$0xff]  }
 0x1a8   :  { %4797 = vmatprep.mubr.bf16.mxu1 %v5954_v4  ;;  %4826 = vmatpush3.bf16.msra.mxu1 %v5407_v20  ;;  %v5414_v4 = vld [vmem:[%s6843_s2 + $0x218] sm:$0xff]  }
 0x1a9   :  { %4827 = vmatprep.subr.bf16.mxu1 %v5409_v2  ;;  %4805 = vmatprep.subr.bf16.mxu0 %v5410_v21 }
 0x1aa   :  { %4774 = vmatmul.mubr.bf16.gmra.mxu0 %v1006_v9 }
 0x1ab   :  { %4806 = vmatpush3.bf16.msra.mxu0 %v5410_v21  ;;  %4817 = vmatprep.mubr.bf16.mxu0 %v5984_v22 }
 0x1ac   :  { %4828 = vmatpush3.bf16.msra.mxu1 %v5409_v2  ;;  %4807 = vmatprep.subr.bf16.mxu0 %v5412_v23 }
 0x1ad   :  { %4829 = vmatprep.subr.bf16.mxu1 %v5411_v10 }
 0x1af   :  { %4798 = vmatmul.mubr.bf16.gmra.mxu1 %v1006_v9  ;;  %4808 = vmatpush3.bf16.msra.mxu0 %v5412_v23 }
 0x1b0   :  { %4830 = vmatpush3.bf16.msra.mxu1 %v5411_v10  ;;  %4841 = vmatprep.mubr.bf16.mxu1 %v5984_v22  ;;  %v5417_v22 = vld [vmem:[%s6843_s2 + $0x250] sm:$0xff]   ;;  %s53_s2 = sld [smem:[#allocation2]] }
 0x1b1   :  { %4831 = vmatprep.subr.bf16.mxu1 %v5413_v32  ;;  %4809 = vmatprep.subr.bf16.mxu0 %v5414_v4 }
 0x1b3   :  { %4810 = vmatpush3.bf16.msra.mxu0 %v5414_v4 }
 0x1b4   :  { %4832 = vmatpush3.bf16.msra.mxu1 %v5413_v32  ;;  %4811 = vmatprep.subr.bf16.mxu0 %v5416_v14 }
 0x1b5   :  { %4833 = vmatprep.subr.bf16.mxu1 %v5415_v24 }
 0x1b6   :  { %s1593_s13 = smul.f32 %s97_s17, %s53_s2 }
 0x1b7   :  { %4812 = vmatpush3.bf16.msra.mxu0 %v5416_v14 }
 0x1b8   :  { %4834 = vmatpush3.bf16.msra.mxu1 %v5415_v24  ;;  %4813 = vmatprep.subr.bf16.mxu0 %v5418_v25 }
 0x1b9   :  { %4835 = vmatprep.subr.bf16.mxu1 %v5417_v22 }
 0x1bb   :  { %4814 = vmatpush3.bf16.msra.mxu0 %v5418_v25 }
 0x1bc   :  { %4836 = vmatpush3.bf16.msra.mxu1 %v5417_v22  ;;  %4815 = vmatprep.subr.bf16.mxu0 %v5420_v3 }
 0x1bd   :  { %4837 = vmatprep.subr.bf16.mxu1 %v5419_v26 }
 0x1bf   :  { %4816 = vmatpush3.bf16.msra.mxu0 %v5420_v3 }
 0x1c0   :  { %4838 = vmatpush3.bf16.msra.mxu1 %v5419_v26 }
 0x1c1   :  { %4839 = vmatprep.subr.bf16.mxu1 %v5421_v27 }
 0x1c2   :  { %4818 = vmatmul.mubr.bf16.vlgmr.msra.gmra.mxu0 %v5989_v61 }
 0x1c3   :  { %4821 = vmatprep.mubr.bf16.mxu0 %v5974_v18 }
 0x1c4   :  { %4840 = vmatpush3.bf16.msra.mxu1 %v5421_v27 }
 0x1c7   :  { %4842 = vmatmul.mubr.bf16.vlgmr.msra.gmra.mxu1 %v5989_v61 }
 0x1c8   :  { %4845 = vmatprep.mubr.bf16.mxu1 %v5974_v18 }
 0x1ca   :  { %4822 = vmatmul.mubr.bf16.gmra.mxu0 %v1294_v30 }
 0x1cf   :  { %4846 = vmatmul.mubr.bf16.gmra.mxu1 %v1294_v30 }
 0x200   :  { %v4627_v54 = vpop.f32.mrf.mxu0 }
 0x202   :  { %v308_v31 = vpop.f32.mrf.mxu0 }
 0x204   :  { %v4628_v56 = vpop.f32.mrf.mxu0 }
 0x206   :  { %v311_v46 = vpop.f32.mrf.mxu0 }
 0x207   :  { %v4651_v33 = vpop.f32.mrf.mxu1 }
 0x208   :  { %v429_v34 = vadd.f32 %v4651_v33, %v4627_v54 }
 0x209   :  { %v420_v35 = vpop.f32.mrf.mxu1 }
 0x20a   :  { %v421_v19 = vadd.f32 %v420_v35, %v308_v31  ;;  %v4631_v5 = vpop.f32.mrf.mxu0 }
 0x20b   :  { %v4652_v8 = vpop.f32.mrf.mxu1 }
 0x20c   :  { %v432_v29 = vadd.f32 %v4652_v8, %v4628_v56  ;;  %v324_v36 = vpop.f32.mrf.mxu0 }
 0x20d   :  { %v423_v61 = vpop.f32.mrf.mxu1 }
 0x20e   :  { %v424_v37 = vadd.f32 %v423_v61, %v311_v46  ;;  %v4632_v18 = vpop.f32.mrf.mxu0 }
 0x20f   :  { %v4655_v38 = vpop.f32.mrf.mxu1 }
 0x210   :  { %v445_v39 = vadd.f32 %v4655_v38, %v4631_v5  ;;  %v327_v42 = vpop.f32.mrf.mxu0 }
 0x211   :  { %v436_v11 = vpop.f32.mrf.mxu1 }
 0x212   :  { %v437_v40 = vadd.f32 %v436_v11, %v324_v36 }
 0x213   :  { %v4656_v41 = vpop.f32.mrf.mxu1 }
 0x215   :  { %v439_v43 = vpop.f32.mrf.mxu1 }
 0x216   :  { %v6194_v44 = vadd.f32 %v439_v43, %v327_v42 }
 0x222   :  { %v4675_v45 = vpop.f32.mrf.mxu0 }
 0x224   :  { %v549_v48 = vpop.f32.mrf.mxu0 }
 0x226   :  { %v4676_v50 = vpop.f32.mrf.mxu0 }
 0x227   :  { %v4699_v51 = vpop.f32.mrf.mxu1 }
 0x228   :  { %v670_v55 = vadd.f32 %v4699_v51, %v4675_v45  ;;  %v552_v58 = vpop.f32.mrf.mxu0 }
 0x229   :  { %v661_v59 = vpop.f32.mrf.mxu1 }
 0x22a   :  { %v662_v60 = vadd.f32 %v661_v59, %v549_v48  ;;  %v4679_v63 = vpop.f32.mrf.mxu0 }
 0x22b   :  { %v4700_v57 = vpop.f32.mrf.mxu1 }
 0x22c   :  { %v673_v28 = vadd.f32 %v4700_v57, %v4676_v50  ;;  %v565_v1 = vpop.f32.mrf.mxu0 }
 0x22d   :  { %v664_v47 = vpop.f32.mrf.mxu1 }
 0x22e   :  { %v665_v52 = vadd.f32 %v664_v47, %v552_v58  ;;  %v4680_v49 = vpop.f32.mrf.mxu0 }
 0x22f   :  { %v4703_v53 = vpop.f32.mrf.mxu1 }
 0x230   :  { %v686_v6 = vadd.f32 %v4703_v53, %v4679_v63  ;;  %v568_v12 = vpop.f32.mrf.mxu0 }
 0x231   :  { %v677_v7 = vpop.f32.mrf.mxu1 }
 0x232   :  { %v678_v62 = vadd.f32 %v677_v7, %v565_v1 }
 0x233   :  { %v4704_v0 = vpop.f32.mrf.mxu1 }
 0x235   :  { %v680_v13 = vpop.f32.mrf.mxu1 }
 0x236   :  { %v6196_v15 = vadd.f32 %v680_v13, %v568_v12 }
 0x242   :  { %v4723_v16 = vpop.f32.mrf.mxu0 }
 0x243   :  { %v850_v17 = vadd.f32 %v4723_v16, %v429_v34 }
 0x244   :  { %v818_v20 = vpop.f32.mrf.mxu0 }
 0x245   :  { %v848_v2 = vadd.f32 %v818_v20, %v421_v19 }
 0x246   :  { %v4724_v21 = vpop.f32.mrf.mxu0 }
 0x247   :  { %v4747_v9 = vpop.f32.mrf.mxu1  ;;  %v851_v23 = vadd.f32 %v4724_v21, %v432_v29 }
 0x248   :  { %v986_v10 = vadd.f32 %v4747_v9, %v670_v55  ;;  %v821_v32 = vpop.f32.mrf.mxu0 }
 0x249   :  { %v954_v4 = vpop.f32.mrf.mxu1  ;;  %v849_v14 = vadd.f32 %v821_v32, %v424_v37 }
 0x24a   :  { %v984_v24 = vadd.f32 %v954_v4, %v662_v60  ;;  %v4727_v25 = vpop.f32.mrf.mxu0 }
 0x24b   :  { %v4748_v22 = vpop.f32.mrf.mxu1  ;;  %v854_v3 = vadd.f32 %v4727_v25, %v445_v39 }
 0x24c   :  { %v987_v26 = vadd.f32 %v4748_v22, %v673_v28  ;;  %v834_v27 = vpop.f32.mrf.mxu0 }
 0x24d   :  { %v957_v30 = vpop.f32.mrf.mxu1  ;;  %v852_v54 = vadd.f32 %v834_v27, %v437_v40 }
 0x24e   :  { %v985_v31 = vadd.f32 %v957_v30, %v665_v52  ;;  %v4728_v56 = vpop.f32.mrf.mxu0 }
 0x24f   :  { %v4751_v46 = vpop.f32.mrf.mxu1 }
 0x250   :  { %v990_v33 = vadd.f32 %v4751_v46, %v686_v6  ;;  %v837_v5 = vpop.f32.mrf.mxu0 }
 0x251   :  { %v970_v34 = vpop.f32.mrf.mxu1  ;;  %v853_v30 = vadd.f32 %v837_v5, %v6194_v44 }
 0x252   :  { %v988_v35 = vadd.f32 %v970_v34, %v678_v62 }
 0x253   :  { %v4752_v19 = vpop.f32.mrf.mxu1 }
 0x255   :  { %v973_v36 = vpop.f32.mrf.mxu1 }
 0x262   :  { %v4771_v8 = vpop.f32.mrf.mxu0 }
 0x263   :  { %v1138_v55 = vadd.f32 %v4771_v8, %v850_v17 }
 0x264   :  { %v1106_v29 = vpop.f32.mrf.mxu0 }
 0x265   :  { %v1136_v63 = vadd.f32 %v1106_v29, %v848_v2  ;;  %v989_v29 = vadd.f32 %v973_v36, %v6196_v15 }
 0x266   :  { %v4772_v61 = vpop.f32.mrf.mxu0 }
 0x267   :  { %v4795_v37 = vpop.f32.mrf.mxu1  ;;  %v1139_v52 = vadd.f32 %v4772_v61, %v851_v23 }
 0x268   :  { %v1109_v18 = vpop.f32.mrf.mxu0  ;;  %v1274_v60 = vadd.f32 %v4795_v37, %v986_v10 }
 0x269   :  { %v1242_v38 = vpop.f32.mrf.mxu1  ;;  %v1137_v7 = vadd.f32 %v1109_v18, %v849_v14 }
 0x26a   :  { %v4775_v39 = vpop.f32.mrf.mxu0  ;;  %v1272_v47 = vadd.f32 %v1242_v38, %v984_v24 }
 0x26b   :  { %v4796_v11 = vpop.f32.mrf.mxu1  ;;  %v1142_v20 = vadd.f32 %v4775_v39, %v854_v3 }
 0x26c   :  { %v1122_v41 = vpop.f32.mrf.mxu0  ;;  %v1275_v0 = vadd.f32 %v4796_v11, %v987_v26 }
 0x26d   :  { %v1245_v42 = vpop.f32.mrf.mxu1  ;;  %v1140_v23 = vadd.f32 %v1122_v41, %v852_v54 }
 0x26e   :  { %v4776_v40 = vpop.f32.mrf.mxu0  ;;  %v1273_v21 = vadd.f32 %v1245_v42, %v985_v31 }
 0x26f   :  { %v4799_v43 = vpop.f32.mrf.mxu1  ;;  %v1594_v40 = vstv %s1593_s13 }
 0x270   :  { %v1125_v50 = vpop.f32.mrf.mxu0  ;;  %v1278_v25 = vadd.f32 %v4799_v43, %v990_v33 }
 0x271   :  { %v1258_v45 = vpop.f32.mrf.mxu1  ;;  %v1141_v61 = vadd.f32 %v1125_v50, %v853_v30  ;;  %v5431_v30 = vld [vmem:[%s6845_s4 + $0x18] sm:$0xff]  }
 0x272   :  { %v1276_v46 = vadd.f32 %v1258_v45, %v988_v35 }
 0x273   :  { %v4800_v48 = vpop.f32.mrf.mxu1 }
 0x274   :  { %v3978_v48 = vld [vmem:[%s6844_s3] ss:$0 sm:$0xff] }
 0x275   :  { %v1261_v59 = vpop.f32.mrf.mxu1 }
 0x276   :  { %v1277_v18 = vadd.f32 %v1261_v59, %v989_v29  ;;  %v6288_v29 = vld [vmem:[%s6845_s4 + $0x78] sm:$0xff]  }
 0x282   :  { %v4819_v51 = vpop.f32.mrf.mxu0 }
 0x283   :  { %v6198_v57 = vadd.f32 %v4819_v51, %v1138_v55 }
 0x284   :  { %v1394_v58 = vpop.f32.mrf.mxu0 }
 0x285   :  { %v1424_v53 = vadd.f32 %v1394_v58, %v1136_v63 }
 0x286   :  { %v4820_v28 = vpop.f32.mrf.mxu0 }
 0x287   :  { %v4843_v1 = vpop.f32.mrf.mxu1  ;;  %v1427_v16 = vadd.f32 %v4820_v28, %v1139_v52 }
 0x288   :  { %v1562_v49 = vadd.f32 %v4843_v1, %v1274_v60  ;;  %v1397_v6 = vpop.f32.mrf.mxu0 }
 0x289   :  { %v1530_v62 = vpop.f32.mrf.mxu1  ;;  %v1425_v32 = vadd.f32 %v1397_v6, %v1137_v7 }
 0x28a   :  { %v1569_v12 = vmax.f32 %v6198_v57, %v1562_v49  ;;  %v1560_v13 = vadd.f32 %v1530_v62, %v1272_v47  ;;  %v4823_v17 = vpop.f32.mrf.mxu0 }
 0x28b   :  { %v4844_v2 = vpop.f32.mrf.mxu1  ;;  %v1430_v26 = vadd.f32 %v4823_v17, %v1142_v20  ;;  %v5423_v17 = vld [vmem:[%s6845_s4 + $0x38] sm:$0xff]   ;;  %v5424_v20 = vld [vmem:[%s6845_s4 + $0xb0] sm:$0xff]  }
 0x28c   :  { %v1567_v9 = vmax.f32 %v1424_v53, %v1560_v13  ;;  %v1563_v10 = vadd.f32 %v4844_v2, %v1275_v0  ;;  %v1410_v4 = vpop.f32.mrf.mxu0  ;;  %v5425_v2 = vld [vmem:[%s6845_s4 + $0x30] sm:$0xff]   ;;  %4869 = vmatprep.subr.bf16.mxu1 %v5423_v17 }
 0x28d   :  { %v1533_v24 = vpop.f32.mrf.mxu1  ;;  %v1428_v19 = vadd.f32 %v1410_v4, %v1140_v23  ;;  %4870 = vmatpush3.bf16.msra.mxu1 %v5423_v17 }
 0x28e   :  { %v1570_v22 = vmax.f32 %v1427_v16, %v1563_v10  ;;  %v1561_v14 = vadd.f32 %v1533_v24, %v1273_v21  ;;  %v4824_v27 = vpop.f32.mrf.mxu0  ;;  %v5422_v16 = vld [vmem:[%s6845_s4 + $0xb8] sm:$0xff]   ;;  %4871 = vmatprep.subr.bf16.mxu1 %v5425_v2  ;;  %v5426_v24 = vld [vmem:[%s6845_s4 + $0xa8] sm:$0xff]  }
 0x28f   :  { %v4847_v56 = vpop.f32.mrf.mxu1  ;;  %4849 = vmatprep.subr.bf16.mxu0 %v5422_v16  ;;  %v5430_v27 = vld [vmem:[%s6845_s4 + $0x98] sm:$0xff]  }
 0x290   :  { %v1568_v34 = vmax.f32 %v1425_v32, %v1561_v14  ;;  %v1566_v3 = vadd.f32 %v4847_v56, %v1278_v25  ;;  %v1413_v8 = vpop.f32.mrf.mxu0  ;;  %v1578_v5 = vrot.slane %v1570_v22, 4  ;;  %4850 = vmatpush3.bf16.msra.mxu0 %v5422_v16  ;;  %v5428_v14 = vld [vmem:[%s6845_s4 + $0xa0] sm:$0xff]   ;;  %v5432_v56 = vld [vmem:[%s6845_s4 + $0x90] sm:$0xff]  }
 0x291   :  { %v1546_v31 = vpop.f32.mrf.mxu1  ;;  %v1429_v11 = vadd.f32 %v1413_v8, %v1141_v61  ;;  %4851 = vmatprep.subr.bf16.mxu0 %v5424_v20  ;;  %4872 = vmatpush3.bf16.msra.mxu1 %v5425_v2  ;;  %v6283_v8 = vld [vmem:[%s6845_s4 + $0xf8] sm:$0xff]  }
 0x292   :  { %v1573_v54 = vmax.f32 %v1430_v26, %v1566_v3  ;;  %v1564_v37 = vadd.f32 %v1546_v31, %v1276_v46  ;;  %v5429_v26 = vld [vmem:[%s6845_s4 + $0x20] sm:$0xff]   ;;  %v5433_v46 = vld [vmem:[%s6845_s4 + $0x10] sm:$0xff]   ;;  %v5435_v3 = vld [vmem:[%s6845_s4 + $0x8] sm:$0xff]  }
 0x293   :  { %v4848_v33 = vpop.f32.mrf.mxu1  ;;  %v5437_v31 = vld [vmem:[%s6845_s4] sm:$0xff]  }
 0x294   :  { %v1583_v38 = vrot.slane %v1573_v54, 4  ;;  %v1571_v39 = vmax.f32 %v1428_v19, %v1564_v37  ;;  %4852 = vmatpush3.bf16.msra.mxu0 %v5424_v20  ;;  %v5436_v19 = vld [vmem:[%s6845_s4 + $0x80] sm:$0xff]  }
 0x295   :  { %v1549_v44 = vpop.f32.mrf.mxu1  ;;  %4853 = vmatprep.subr.bf16.mxu0 %v5426_v24 }
 0x296   :  { %v1592_v35 = vmax.f32 %v1570_v22, %v1583_v38  ;;  %v1579_v41 = vrot.slane %v1571_v39, 4  ;;  %v1565_v42 = vadd.f32 %v1549_v44, %v1277_v18  ;;  %v5427_v22 = vld [vmem:[%s6845_s4 + $0x28] sm:$0xff]  }
 0x297   :  { %4873 = vmatprep.subr.bf16.mxu1 %v5427_v22 }
 0x298   :  { %v1598_v43 = vmul.f32 %v1594_v40, %v1592_v35  ;;  %v1580_v45 = vsel %vm138_vm4, %v1578_v5, %v1579_v41  ;;  %v1572_v15 = vmax.f32 %v1429_v11, %v1565_v42  ;;  %4854 = vmatpush3.bf16.msra.mxu0 %v5426_v24  ;;  %4874 = vmatpush3.bf16.msra.mxu1 %v5427_v22 }
 0x299   :  { %v1589_v36 = vmax.f32 %v1567_v9, %v1580_v45  ;;  %4855 = vmatprep.subr.bf16.mxu0 %v5428_v14  ;;  %4875 = vmatprep.subr.bf16.mxu1 %v5429_v26 }
 0x29a   :  { %v1581_v50 = vrot.slane %v1572_v15, 4  ;;  %v6211_v59 = vadd.f32 %v3978_v48, %v1598_v43 }
 0x29b   :  { %v1595_v51 = vmul.f32 %v1594_v40, %v1589_v36 }
 0x29c   :  { %v1582_v55 = vsel %vm138_vm4, %v1579_v41, %v1581_v50  ;;  %v1584_v58 = vsel %vm138_vm4, %v1581_v50, %v1583_v38  ;;  %v1612_v47 = vmax.f32 %v6211_v59, 0.0  ;;  %4856 = vmatpush3.bf16.msra.mxu0 %v5428_v14  ;;  %4876 = vmatpush3.bf16.msra.mxu1 %v5429_v26 }
 0x29d   :  { %v1590_v60 = vmax.f32 %v1568_v34, %v1582_v55  ;;  %v1591_v63 = vmax.f32 %v1569_v12, %v1584_v58  ;;  %v6213_v1 = vadd.f32 %v3978_v48, %v1595_v51  ;;  %4857 = vmatprep.subr.bf16.mxu0 %v5430_v27  ;;  %4877 = vmatprep.subr.bf16.mxu1 %v5431_v30  ;;  %v5434_v34 = vld [vmem:[%s6845_s4 + $0x88] sm:$0xff]  }
 0x29e   :  { %v1613_v62 = vsel %vm138_vm4, %v1612_v47, -inf }
 0x29f   :  { %v1596_v57 = vmul.f32 %v1594_v40, %v1590_v60  ;;  %v1597_v28 = vmul.f32 %v1594_v40, %v1591_v63  ;;  %v1609_v53 = vmax.f32 %v6213_v1, 0.0 }
 0x2a0   :  { %4858 = vmatpush3.bf16.msra.mxu0 %v5430_v27  ;;  %4878 = vmatpush3.bf16.msra.mxu1 %v5431_v30 }
 0x2a1   :  { %v6216_v52 = vadd.f32 %v3978_v48, %v1596_v57  ;;  %v6218_v49 = vadd.f32 %v3978_v48, %v1597_v28  ;;  %4859 = vmatprep.subr.bf16.mxu0 %v5432_v56  ;;  %4879 = vmatprep.subr.bf16.mxu1 %v5433_v46 }
 0x2a3   :  { %v1610_v6 = vmax.f32 %v6216_v52, 0.0  ;;  %v1611_v7 = vmax.f32 %v6218_v49, 0.0 }
 0x2a4   :  { %4860 = vmatpush3.bf16.msra.mxu0 %v5432_v56  ;;  %4880 = vmatpush3.bf16.msra.mxu1 %v5433_v46 }
 0x2a5   :  { %v1614_v0 = vmax.f32 %v1609_v53, %v1610_v6  ;;  %v1615_v12 = vmax.f32 %v1611_v7, %v1613_v62  ;;  %4861 = vmatprep.subr.bf16.mxu0 %v5434_v34  ;;  %4881 = vmatprep.subr.bf16.mxu1 %v5435_v3 }
 0x2a7   :  { %v1616_v13 = vmax.f32 %v1614_v0, %v1615_v12 }
 0x2a8   :  { %4862 = vmatpush3.bf16.msra.mxu0 %v5434_v34  ;;  %4882 = vmatpush3.bf16.msra.mxu1 %v5435_v3 }
 0x2a9   :  { %1617 = vmax.xlane.f32.xlu0 %v1616_v13  ;;  %4863 = vmatprep.subr.bf16.mxu0 %v5436_v19 }
 0x2aa   :  { %4883 = vmatprep.subr.bf16.mxu1 %v5437_v31 }
 0x2ac   :  { %4864 = vmatpush3.bf16.msra.mxu0 %v5436_v19  ;;  %4884 = vmatpush3.bf16.msra.mxu1 %v5437_v31 }
 0x2ad   :  { %4889 = vmatprep.subr.bf16.mxu0 %v6283_v8  ;;  %4909 = vmatprep.subr.bf16.mxu1 %v6288_v29 }
 0x332   :  { %v1618_v21 = vpop.xlane.xlu0 %1617 }
 0x333   :  { %v1619_v9 = vrot.slane %v1618_v21, 4 }
 0x335   :  { %v1620_v10 = vmax.f32 %v1618_v21, %v1619_v9 }
 0x337   :  { %v1621_v32 = vrot.slane %v1620_v10, 2 }
 0x339   :  { %v1622_v4 = vmax.f32 %v1620_v10, %v1621_v32 }
 0x33b   :  { %v1623_v23 = vrot.slane %v1622_v4, 1 }
 0x33d   :  { %v1624_v25 = vmax.f32 %v1622_v4, %v1623_v23 }
 0x33f   :  { %5257 = vpush %v1624_v25 }
 0x370   :  { %s5258_s28 = spop %5257 }
 0x371   :  { %s6293_s29 = smax.f32 %s5613_s15, %s5258_s28 }
 0x372   :  { %s1629_s30 = smul.f32 0.06666667, %s6293_s29 }
 0x374   :  { %v1630_v61 = vstv %s1629_s30 }
 0x375   :  { %5560 = vrcp.f32 %v1630_v61 }
 0x382   :  { %v5561_v54 = vpop.eup %5560 }
 0x383   :  { %5259 = vpush %v5561_v54 }
 0x3b4   :  { %s5260_s12 = spop %5259 }
 0x3b5   :  { %v1633_v37 = vstv %s5260_s12 }
 0x3b6   :  { %v1634_v33 = vmul.f32 %v1633_v37, %v1609_v53  ;;  %v1635_v18 = vmul.f32 %v1633_v37, %v1610_v6  ;;  %v1636_v38 = vmul.f32 %v1633_v37, %v1611_v7  ;;  %v1637_v39 = vmul.f32 %v1633_v37, %v1612_v47 }
 0x3b8   :  { %v5263_v11 = vcvt.f32.s32 %v1634_v33  ;;  %v5271_v44 = vcvt.f32.s32 %v1635_v18  ;;  %v5279_v5 = vcvt.f32.s32 %v1636_v38  ;;  %v5261_v35 = vand.u32 2147483647, %v1634_v33 }
 0x3b9   :  { %v5269_v42 = vand.u32 2147483647, %v1635_v18  ;;  %v5266_v15 = vand.u32 2147483648, %v1634_v33  ;;  %v5277_v36 = vand.u32 2147483647, %v1636_v38  ;;  %v5287_v48 = vcvt.f32.s32 %v1637_v39 }
 0x3ba   :  { %v5264_v41 = vcvt.s32.f32 %v5263_v11  ;;  %v5272_v40 = vcvt.s32.f32 %v5271_v44  ;;  %v5280_v43 = vcvt.s32.f32 %v5279_v5  ;;  %v5274_v51 = vand.u32 2147483648, %v1635_v18 }
 0x3bb   :  { %v5282_v58 = vand.u32 2147483648, %v1636_v38  ;;  %vm5262_vm11 = vcmp.lt.f32.partialorder %v5261_v35, 8388608.0  ;;  %v5288_v59 = vcvt.s32.f32 %v5287_v48  ;;  %vm5270_vm12 = vcmp.lt.f32.partialorder %v5269_v42, 8388608.0 }
 0x3bc   :  { %v5265_v45 = vand.u32 2147483647, %v5264_v41  ;;  %v5273_v50 = vand.u32 2147483647, %v5272_v40  ;;  %v5281_v55 = vand.u32 2147483647, %v5280_v43 }
 0x3bd   :  { %v5285_v28 = vand.u32 2147483647, %v1637_v39  ;;  %vm5278_vm13 = vcmp.lt.f32.partialorder %v5277_v36, 8388608.0  ;;  %v5289_v47 = vand.u32 2147483647, %v5288_v59  ;;  %v5290_v52 = vand.u32 2147483648, %v1637_v39 }
 0x3be   :  { %v5267_v60 = vor.u32 %v5266_v15, %v5265_v45  ;;  %v5275_v63 = vor.u32 %v5274_v51, %v5273_v50  ;;  %v5283_v57 = vor.u32 %v5282_v58, %v5281_v55  ;;  %v5440_v41 = vld [vmem:[%s6845_s4 + $0xf0] sm:$0xff]   ;;  %v5442_v58 = vld [vmem:[%s6845_s4 + $0xe8] sm:$0xff]   ;;  %v5444_v59 = vld [vmem:[%s6845_s4 + $0xe0] sm:$0xff]  }
 0x3bf   :  { %v5291_v7 = vor.u32 %v5290_v52, %v5289_v47  ;;  %vm5286_vm14 = vcmp.lt.f32.partialorder %v5285_v28, 8388608.0  ;;  %v5441_v15 = vld [vmem:[%s6845_s4 + $0x70] sm:$0xff]   ;;  %v5450_v47 = vld [vmem:[%s6845_s4 + $0xc8] sm:$0xff]  }
 0x3c0   :  { %v5268_v1 = vsel %vm5262_vm11, %v5267_v60, %v1634_v33  ;;  %v5276_v49 = vsel %vm5270_vm12, %v5275_v63, %v1635_v18  ;;  %v5284_v53 = vsel %vm5278_vm13, %v5283_v57, %v1636_v38  ;;  %v5445_v63 = vld [vmem:[%s6845_s4 + $0x60] sm:$0xff]   ;;  %v5447_v57 = vld [vmem:[%s6845_s4 + $0x58] sm:$0xff]   ;;  %v5448_v28 = vld [vmem:[%s6845_s4 + $0xd0] sm:$0xff]  }
 0x3c1   :  { %v1642_v6 = vmax.f32 %v5268_v1, 0.0  ;;  %v1643_v62 = vmax.f32 %v5276_v49, 0.0  ;;  %v1644_v0 = vmax.f32 %v5284_v53, 0.0  ;;  %v5292_v13 = vsel %vm5286_vm14, %v5291_v7, %v1637_v39  ;;  %v5449_v1 = vld [vmem:[%s6845_s4 + $0x50] sm:$0xff]   ;;  %v5451_v52 = vld [vmem:[%s6845_s4 + $0x48] sm:$0xff]   ;;  %v5452_v49 = vld [vmem:[%s6845_s4 + $0xc0] sm:$0xff]  }
 0x3c2   :  { %v1645_v20 = vmax.f32 %v5292_v13, 0.0  ;;  %v5453_v53 = vld [vmem:[%s6845_s4 + $0x40] sm:$0xff]   ;;  %v5457_v13 = vld [vmem:[%s6845_s4 + $0x170] sm:$0xff]  }
 0x3c3   :  { %v1646_v12 = vmin.f32 %v1642_v6, 15.0  ;;  %v1648_v16 = vmin.f32 %v1644_v0, 15.0  ;;  %v1647_v17 = vmin.f32 %v1643_v62, 15.0  ;;  %v5454_v6 = vld [vmem:[%s6845_s4 + $0x138] sm:$0xff]   ;;  %v5456_v0 = vld [vmem:[%s6845_s4 + $0x130] sm:$0xff]  }
 0x3c4   :  { %v1649_v23 = vmin.f32 %v1645_v20, 15.0  ;;  %v5455_v62 = vld [vmem:[%s6845_s4 + $0x178] sm:$0xff]   ;;  %v5460_v20 = vld [vmem:[%s6845_s4 + $0x120] sm:$0xff]  }
 0x3c5   :  { %v1651_v2 = vrot.slane %v1646_v12, 2  ;;  %v1669_v21 = vrot.slane %v1646_v12, 4  ;;  %v1654_v9 = vrot.slane %v1647_v17, 4  ;;  %v1656_v10 = vrot.slane %v1647_v17, 6 }
 0x3c6   :  { %v1659_v32 = vrot.slane %v1648_v16, 2  ;;  %v1671_v4 = vrot.slane %v1648_v16, 4  ;;  %v1662_v30 = vrot.slane %v1649_v23, 4  ;;  %v1673_v46 = vrot.slane %v1649_v23, 6  ;;  %v5467_v23 = vld [vmem:[%s6845_s4 + $0x148] sm:$0xff]  }
 0x3c7   :  { %v1664_v24 = vsel %vm192_vm9, %v1646_v12, %v1651_v2  ;;  %v1675_v25 = vsel %vm192_vm9, %v1651_v2, %v1669_v21  ;;  %v5461_v2 = vld [vmem:[%s6845_s4 + $0x160] sm:$0xff]   ;;  %v5462_v21 = vld [vmem:[%s6845_s4 + $0x118] sm:$0xff]  }
 0x3c8   :  { %v1665_v22 = vsel %vm138_vm4, %v1664_v24, %v1654_v9  ;;  %v1676_v14 = vsel %vm138_vm4, %v1675_v25, %v1656_v10  ;;  %v1678_v26 = vsel %vm192_vm9, %v1659_v32, %v1671_v4  ;;  %v1667_v27 = vsel %vm192_vm9, %v1648_v16, %v1659_v32  ;;  %v5458_v16 = vld [vmem:[%s6845_s4 + $0x128] sm:$0xff]   ;;  %v5463_v9 = vld [vmem:[%s6845_s4 + $0x158] sm:$0xff]   ;;  %v5465_v32 = vld [vmem:[%s6845_s4 + $0x150] sm:$0xff]  }
 0x3c9   :  { %v1666_v56 = vsel %vm691_vm10, %v1665_v22, %v1656_v10  ;;  %v6314_v34 = vsel %vm691_vm10, %v1676_v14, %v1647_v17  ;;  %v6318_v19 = vsel %vm138_vm4, %v1678_v26, %v1673_v46  ;;  %v1668_v31 = vsel %vm138_vm4, %v1667_v27, %v1662_v30  ;;  %v5459_v17 = vld [vmem:[%s6845_s4 + $0x168] sm:$0xff]   ;;  %v5464_v10 = vld [vmem:[%s6845_s4 + $0x110] sm:$0xff]   ;;  %v5468_v24 = vld [vmem:[%s6845_s4 + $0x100] sm:$0xff]  }
 0x3ca   :  { %v1682_v3 = vrot.slane %v6314_v34, 6  ;;  %v2146_v61 = vrot.slane %v1666_v56, 2  ;;  %v1683_v54 = vrot.slane %v6318_v19, 6  ;;  %v1723_v37 = vsel %vm192_vm9, %v6318_v19, %v1666_v56  ;;  %v5466_v4 = vld [vmem:[%s6845_s4 + $0x108] sm:$0xff]   ;;  %v5469_v25 = vld [vmem:[%s6845_s4 + $0x140] sm:$0xff]   ;;  %v5470_v22 = vld [vmem:[%s6845_s4 + $0x1b8] sm:$0xff]  }
 0x3cb   :  { %v2386_v18 = vrot.slane %v6314_v34, 2  ;;  %v1724_v38 = vpack.c.bf16 %v1723_v37, %v6314_v34  ;;  %v6327_v11 = vrot.slane %v1668_v31, 2  ;;  %v2626_v44 = vrot.slane %v1666_v56, 4  ;;  %v5471_v14 = vld [vmem:[%s6845_s4 + $0x1f8] sm:$0xff]   ;;  %v5472_v27 = vld [vmem:[%s6845_s4 + $0x1b0] sm:$0xff]   ;;  %v5475_v46 = vld [vmem:[%s6845_s4 + $0x1e8] sm:$0xff]  }
 0x3cc   :  { %v1687_v33 = vsel %vm192_vm9, %v1668_v31, %v1682_v3  ;;  %v6329_v5 = vpack.c.bf16 %v1668_v31, %v1668_v31  ;;  %v1684_v35 = vsel %vm192_vm9, %v1682_v3, %v1683_v54  ;;  %v6336_v42 = vrot.slane %v6318_v19, 2  ;;  %v5473_v30 = vld [vmem:[%s6845_s4 + $0x1f0] sm:$0xff]   ;;  %v5477_v3 = vld [vmem:[%s6845_s4 + $0x1e0] sm:$0xff]   ;;  %v5482_v37 = vld [vmem:[%s6845_s4 + $0x188] sm:$0xff]  }
 0x3cd   :  { %v1688_v39 = vpack.c.bf16 %v1687_v33, %v1666_v56  ;;  %v2627_v40 = vrot.slane %v1668_v31, 4  ;;  %4865 = vmatprep.mubr.bf16.mxu0 %v1724_v38  ;;  %v6338_v43 = vpack.c.bf16 %v1684_v35, %v1684_v35  ;;  %v2148_v45 = vsel %vm691_vm10, %v2146_v61, %v6327_v11  ;;  %v5474_v56 = vld [vmem:[%s6845_s4 + $0x1a8] sm:$0xff]   ;;  %v5479_v31 = vld [vmem:[%s6845_s4 + $0x1d8] sm:$0xff]   ;;  %v5480_v61 = vld [vmem:[%s6845_s4 + $0x190] sm:$0xff]  }
 0x3ce   :  { %4866 = vmatmul.mubr.bf16.vlgmr.msra.gmra.mxu0 %v6329_v5  ;;  %v2388_v36 = vsel %vm691_vm10, %v2386_v18, %v6336_v42  ;;  %v2391_v48 = vsel %vm192_vm9, %v6336_v42, %v2148_v45  ;;  %v2151_v7 = vsel %vm192_vm9, %v6327_v11, %v6314_v34  ;;  %v2153_v26 = vpack.c.bf16 %v6318_v19, %v6318_v19  ;;  %v5476_v34 = vld [vmem:[%s6845_s4 + $0x1a0] sm:$0xff]   ;;  %v5478_v19 = vld [vmem:[%s6845_s4 + $0x198] sm:$0xff]   ;;  %v5481_v54 = vld [vmem:[%s6845_s4 + $0x1d0] sm:$0xff]  }
 0x3cf   :  { %4885 = vmatprep.mubr.bf16.mxu1 %v1688_v39  ;;  %4890 = vmatpush3.bf16.msra.mxu0 %v6283_v8  ;;  %v6351_v50 = vpack.c.bf16 %v2391_v48, %v2388_v36  ;;  %v2628_v51 = vsel %vm138_vm4, %v2626_v44, %v2627_v40  ;;  %v2631_v55 = vsel %vm192_vm9, %v2627_v40, %v2388_v36  ;;  %v5443_v8 = vld [vmem:[%s6845_s4 + $0x68] sm:$0xff]   ;;  %v5484_v18 = vld [vmem:[%s6845_s4 + $0x180] sm:$0xff]   ;;  %v5487_v44 = vld [vmem:[%s6845_s4 + $0x278] sm:$0xff]  }
 0x3d0   :  { %4905 = vmatprep.mubr.bf16.mxu0 %v1724_v38  ;;  %4886 = vmatmul.mubr.bf16.vlgmr.msra.gmra.mxu1 %v6338_v43  ;;  %v6359_v60 = vpack.c.bf16 %v2631_v55, %v2628_v51  ;;  %v2152_v12 = vpack.c.bf16 %v2151_v7, %v2148_v45  ;;  %v5483_v33 = vld [vmem:[%s6845_s4 + $0x1c8] sm:$0xff]   ;;  %v5485_v38 = vld [vmem:[%s6845_s4 + $0x1c0] sm:$0xff]   ;;  %v5488_v35 = vld [vmem:[%s6845_s4 + $0x230] sm:$0xff]  }
 0x3d1   :  { %4891 = vmatprep.subr.bf16.mxu0 %v5440_v41  ;;  %4910 = vmatpush3.bf16.msra.mxu1 %v6288_v29  ;;  %v5446_v29 = vld [vmem:[%s6845_s4 + $0xd8] sm:$0xff]   ;;  %v5491_v40 = vld [vmem:[%s6845_s4 + $0x268] sm:$0xff]   ;;  %v5493_v45 = vld [vmem:[%s6845_s4 + $0x260] sm:$0xff]  }
 0x3d2   :  { %4925 = vmatprep.mubr.bf16.mxu1 %v1688_v39  ;;  %4911 = vmatprep.subr.bf16.mxu1 %v5441_v15  ;;  %v5486_v39 = vld [vmem:[%s6845_s4 + $0x238] sm:$0xff]   ;;  %v5496_v48 = vld [vmem:[%s6845_s4 + $0x210] sm:$0xff]   ;;  %v5498_v51 = vld [vmem:[%s6845_s4 + $0x208] sm:$0xff]  }
 0x3d3   :  { %4892 = vmatpush3.bf16.msra.mxu0 %v5440_v41  ;;  %v5489_v41 = vld [vmem:[%s6845_s4 + $0x270] sm:$0xff]   ;;  %v5495_v36 = vld [vmem:[%s6845_s4 + $0x258] sm:$0xff]   ;;  %v5499_v55 = vld [vmem:[%s6845_s4 + $0x248] sm:$0xff]  }
 0x3d4   :  { %4893 = vmatprep.subr.bf16.mxu0 %v5442_v58 }
 0x3d5   :  { %4912 = vmatpush3.bf16.msra.mxu1 %v5441_v15  ;;  %v5494_v15 = vld [vmem:[%s6845_s4 + $0x218] sm:$0xff]  }
 0x3d6   :  { %4913 = vmatprep.subr.bf16.mxu1 %v5443_v8 }
 0x3d7   :  { %4894 = vmatpush3.bf16.msra.mxu0 %v5442_v58  ;;  %v5500_v58 = vld [vmem:[%s6845_s4 + $0x200] sm:$0xff]  }
 0x3d8   :  { %4895 = vmatprep.subr.bf16.mxu0 %v5444_v59 }
 0x3d9   :  { %4914 = vmatpush3.bf16.msra.mxu1 %v5443_v8  ;;  %v2633_v8 = vpack.c.bf16 %v6336_v42, %v6336_v42 }
 0x3da   :  { %4915 = vmatprep.subr.bf16.mxu1 %v5445_v63 }
 0x3db   :  { %4896 = vmatpush3.bf16.msra.mxu0 %v5444_v59 }
 0x3dc   :  { %4897 = vmatprep.subr.bf16.mxu0 %v5446_v29 }
 0x3dd   :  { %4916 = vmatpush3.bf16.msra.mxu1 %v5445_v63 }
 0x3de   :  { %4917 = vmatprep.subr.bf16.mxu1 %v5447_v57 }
 0x3df   :  { %4898 = vmatpush3.bf16.msra.mxu0 %v5446_v29 }
 0x3e0   :  { %4899 = vmatprep.subr.bf16.mxu0 %v5448_v28 }
 0x3e1   :  { %4918 = vmatpush3.bf16.msra.mxu1 %v5447_v57 }
 0x3e2   :  { %4919 = vmatprep.subr.bf16.mxu1 %v5449_v1 }
 0x3e3   :  { %4900 = vmatpush3.bf16.msra.mxu0 %v5448_v28 }
 0x3e4   :  { %4901 = vmatprep.subr.bf16.mxu0 %v5450_v47 }
 0x3e5   :  { %4920 = vmatpush3.bf16.msra.mxu1 %v5449_v1 }
 0x3e6   :  { %4921 = vmatprep.subr.bf16.mxu1 %v5451_v52 }
 0x3e7   :  { %4902 = vmatpush3.bf16.msra.mxu0 %v5450_v47 }
 0x3e8   :  { %4903 = vmatprep.subr.bf16.mxu0 %v5452_v49 }
 0x3e9   :  { %4922 = vmatpush3.bf16.msra.mxu1 %v5451_v52 }
 0x3ea   :  { %4923 = vmatprep.subr.bf16.mxu1 %v5453_v53 }
 0x3eb   :  { %4904 = vmatpush3.bf16.msra.mxu0 %v5452_v49 }
 0x3ec   :  { %4929 = vmatprep.subr.bf16.mxu0 %v5454_v6 }
 0x3ed   :  { %4924 = vmatpush3.bf16.msra.mxu1 %v5453_v53 }
 0x3ee   :  { %4906 = vmatmul.mubr.bf16.vlgmr.msra.gmra.mxu0 %v6329_v5  ;;  %4949 = vmatprep.subr.bf16.mxu1 %v5455_v62  ;;  %v2393_v5 = vpack.c.bf16 %v6327_v11, %v6327_v11  ;;  %v5490_v11 = vld [vmem:[%s6845_s4 + $0x228] sm:$0xff]  }
 0x3ef   :  { %4930 = vmatpush3.bf16.msra.mxu0 %v5454_v6  ;;  %4945 = vmatprep.mubr.bf16.mxu0 %v2152_v12 }
 0x3f0   :  { %4926 = vmatmul.mubr.bf16.vlgmr.msra.gmra.mxu1 %v6338_v43  ;;  %4931 = vmatprep.subr.bf16.mxu0 %v5456_v0  ;;  %v5492_v43 = vld [vmem:[%s6845_s4 + $0x220] sm:$0xff]  }
 0x3f1   :  { %4950 = vmatpush3.bf16.msra.mxu1 %v5455_v62  ;;  %4965 = vmatprep.mubr.bf16.mxu1 %v2152_v12 }
 0x3f2   :  { %4951 = vmatprep.subr.bf16.mxu1 %v5457_v13 }
 0x3f3   :  { %4932 = vmatpush3.bf16.msra.mxu0 %v5456_v0 }
 0x3f4   :  { %4933 = vmatprep.subr.bf16.mxu0 %v5458_v16 }
 0x3f5   :  { %4952 = vmatpush3.bf16.msra.mxu1 %v5457_v13 }
 0x3f6   :  { %4953 = vmatprep.subr.bf16.mxu1 %v5459_v17 }
 0x3f7   :  { %4934 = vmatpush3.bf16.msra.mxu0 %v5458_v16 }
 0x3f8   :  { %4935 = vmatprep.subr.bf16.mxu0 %v5460_v20 }
 0x3f9   :  { %4954 = vmatpush3.bf16.msra.mxu1 %v5459_v17 }
 0x3fa   :  { %4955 = vmatprep.subr.bf16.mxu1 %v5461_v2 }
 0x3fb   :  { %4936 = vmatpush3.bf16.msra.mxu0 %v5460_v20 }
 0x3fc   :  { %4937 = vmatprep.subr.bf16.mxu0 %v5462_v21 }
 0x3fd   :  { %4956 = vmatpush3.bf16.msra.mxu1 %v5461_v2 }
 0x3fe   :  { %4957 = vmatprep.subr.bf16.mxu1 %v5463_v9 }
 0x3ff   :  { %4938 = vmatpush3.bf16.msra.mxu0 %v5462_v21 }
 0x400   :  { %4939 = vmatprep.subr.bf16.mxu0 %v5464_v10 }
 0x401   :  { %4958 = vmatpush3.bf16.msra.mxu1 %v5463_v9 }
 0x402   :  { %4959 = vmatprep.subr.bf16.mxu1 %v5465_v32 }
 0x403   :  { %4940 = vmatpush3.bf16.msra.mxu0 %v5464_v10 }
 0x404   :  { %4941 = vmatprep.subr.bf16.mxu0 %v5466_v4 }
 0x405   :  { %4960 = vmatpush3.bf16.msra.mxu1 %v5465_v32 }
 0x406   :  { %4961 = vmatprep.subr.bf16.mxu1 %v5467_v23 }
 0x407   :  { %4942 = vmatpush3.bf16.msra.mxu0 %v5466_v4 }
 0x408   :  { %4943 = vmatprep.subr.bf16.mxu0 %v5468_v24 }
 0x409   :  { %4962 = vmatpush3.bf16.msra.mxu1 %v5467_v23 }
 0x40a   :  { %4963 = vmatprep.subr.bf16.mxu1 %v5469_v25 }
 0x40b   :  { %4944 = vmatpush3.bf16.msra.mxu0 %v5468_v24 }
 0x40c   :  { %4969 = vmatprep.subr.bf16.mxu0 %v5470_v22 }
 0x40d   :  { %4964 = vmatpush3.bf16.msra.mxu1 %v5469_v25 }
 0x40e   :  { %4946 = vmatmul.mubr.bf16.vlgmr.msra.gmra.mxu0 %v2153_v26  ;;  %4989 = vmatprep.subr.bf16.mxu1 %v5471_v14 }
 0x40f   :  { %4970 = vmatpush3.bf16.msra.mxu0 %v5470_v22  ;;  %4985 = vmatprep.mubr.bf16.mxu0 %v6351_v50 }
 0x410   :  { %4966 = vmatmul.mubr.bf16.vlgmr.msra.gmra.mxu1 %v2153_v26  ;;  %4971 = vmatprep.subr.bf16.mxu0 %v5472_v27 }
 0x411   :  { %4990 = vmatpush3.bf16.msra.mxu1 %v5471_v14  ;;  %5005 = vmatprep.mubr.bf16.mxu1 %v6351_v50  ;;  %v5497_v50 = vld [vmem:[%s6845_s4 + $0x250] sm:$0xff]  }
 0x412   :  { %4991 = vmatprep.subr.bf16.mxu1 %v5473_v30 }
 0x413   :  { %4972 = vmatpush3.bf16.msra.mxu0 %v5472_v27 }
 0x414   :  { %4973 = vmatprep.subr.bf16.mxu0 %v5474_v56 }
 0x415   :  { %4992 = vmatpush3.bf16.msra.mxu1 %v5473_v30 }
 0x416   :  { %4993 = vmatprep.subr.bf16.mxu1 %v5475_v46 }
 0x417   :  { %4974 = vmatpush3.bf16.msra.mxu0 %v5474_v56 }
 0x418   :  { %4975 = vmatprep.subr.bf16.mxu0 %v5476_v34 }
 0x419   :  { %4994 = vmatpush3.bf16.msra.mxu1 %v5475_v46 }
 0x41a   :  { %4995 = vmatprep.subr.bf16.mxu1 %v5477_v3 }
 0x41b   :  { %4976 = vmatpush3.bf16.msra.mxu0 %v5476_v34 }
 0x41c   :  { %4977 = vmatprep.subr.bf16.mxu0 %v5478_v19 }
 0x41d   :  { %4996 = vmatpush3.bf16.msra.mxu1 %v5477_v3 }
 0x41e   :  { %4997 = vmatprep.subr.bf16.mxu1 %v5479_v31 }
 0x41f   :  { %4978 = vmatpush3.bf16.msra.mxu0 %v5478_v19 }
 0x420   :  { %4979 = vmatprep.subr.bf16.mxu0 %v5480_v61 }
 0x421   :  { %4998 = vmatpush3.bf16.msra.mxu1 %v5479_v31 }
 0x422   :  { %4999 = vmatprep.subr.bf16.mxu1 %v5481_v54 }
 0x423   :  { %4980 = vmatpush3.bf16.msra.mxu0 %v5480_v61 }
 0x424   :  { %4981 = vmatprep.subr.bf16.mxu0 %v5482_v37 }
 0x425   :  { %5000 = vmatpush3.bf16.msra.mxu1 %v5481_v54 }
 0x426   :  { %5001 = vmatprep.subr.bf16.mxu1 %v5483_v33 }
 0x427   :  { %4982 = vmatpush3.bf16.msra.mxu0 %v5482_v37 }
 0x428   :  { %4983 = vmatprep.subr.bf16.mxu0 %v5484_v18 }
 0x429   :  { %5002 = vmatpush3.bf16.msra.mxu1 %v5483_v33 }
 0x42a   :  { %5003 = vmatprep.subr.bf16.mxu1 %v5485_v38 }
 0x42b   :  { %4984 = vmatpush3.bf16.msra.mxu0 %v5484_v18 }
 0x42c   :  { %5009 = vmatprep.subr.bf16.mxu0 %v5486_v39 }
 0x42d   :  { %5004 = vmatpush3.bf16.msra.mxu1 %v5485_v38 }
 0x42e   :  { %4986 = vmatmul.mubr.bf16.vlgmr.msra.gmra.mxu0 %v2393_v5  ;;  %5029 = vmatprep.subr.bf16.mxu1 %v5487_v44 }
 0x42f   :  { %5010 = vmatpush3.bf16.msra.mxu0 %v5486_v39  ;;  %5025 = vmatprep.mubr.bf16.mxu0 %v6359_v60 }
 0x430   :  { %5006 = vmatmul.mubr.bf16.vlgmr.msra.gmra.mxu1 %v2393_v5  ;;  %5011 = vmatprep.subr.bf16.mxu0 %v5488_v35 }
 0x431   :  { %5030 = vmatpush3.bf16.msra.mxu1 %v5487_v44  ;;  %5045 = vmatprep.mubr.bf16.mxu1 %v6359_v60  ;;  %v5501_v60 = vld [vmem:[%s6845_s4 + $0x240] sm:$0xff]   ;;  %s3750_s4 = sld [smem:[#allocation2 + $0x1]] }
 0x432   :  { %5031 = vmatprep.subr.bf16.mxu1 %v5489_v41 }
 0x433   :  { %5012 = vmatpush3.bf16.msra.mxu0 %v5488_v35 }
 0x434   :  { %5013 = vmatprep.subr.bf16.mxu0 %v5490_v11 }
 0x435   :  { %5032 = vmatpush3.bf16.msra.mxu1 %v5489_v41 }
 0x436   :  { %5033 = vmatprep.subr.bf16.mxu1 %v5491_v40 }
 0x437   :  { %5014 = vmatpush3.bf16.msra.mxu0 %v5490_v11  ;;  %s2878_s3 = smul.f32 %s3750_s4, %s1629_s30 }
 0x438   :  { %5015 = vmatprep.subr.bf16.mxu0 %v5492_v43 }
 0x439   :  { %5034 = vmatpush3.bf16.msra.mxu1 %v5491_v40 }
 0x43a   :  { %5035 = vmatprep.subr.bf16.mxu1 %v5493_v45 }
 0x43b   :  { %5016 = vmatpush3.bf16.msra.mxu0 %v5492_v43 }
 0x43c   :  { %5017 = vmatprep.subr.bf16.mxu0 %v5494_v15 }
 0x43d   :  { %5036 = vmatpush3.bf16.msra.mxu1 %v5493_v45 }
 0x43e   :  { %5037 = vmatprep.subr.bf16.mxu1 %v5495_v36 }
 0x43f   :  { %5018 = vmatpush3.bf16.msra.mxu0 %v5494_v15 }
 0x440   :  { %5019 = vmatprep.subr.bf16.mxu0 %v5496_v48 }
 0x441   :  { %5038 = vmatpush3.bf16.msra.mxu1 %v5495_v36 }
 0x442   :  { %5039 = vmatprep.subr.bf16.mxu1 %v5497_v50 }
 0x443   :  { %5020 = vmatpush3.bf16.msra.mxu0 %v5496_v48 }
 0x444   :  { %5021 = vmatprep.subr.bf16.mxu0 %v5498_v51 }
 0x445   :  { %5040 = vmatpush3.bf16.msra.mxu1 %v5497_v50 }
 0x446   :  { %5041 = vmatprep.subr.bf16.mxu1 %v5499_v55 }
 0x447   :  { %5022 = vmatpush3.bf16.msra.mxu0 %v5498_v51 }
 0x448   :  { %5023 = vmatprep.subr.bf16.mxu0 %v5500_v58 }
 0x449   :  { %5042 = vmatpush3.bf16.msra.mxu1 %v5499_v55 }
 0x44a   :  { %5043 = vmatprep.subr.bf16.mxu1 %v5501_v60 }
 0x44b   :  { %5024 = vmatpush3.bf16.msra.mxu0 %v5500_v58 }
 0x44d   :  { %5044 = vmatpush3.bf16.msra.mxu1 %v5501_v60 }
 0x44e   :  { %5026 = vmatmul.mubr.bf16.vlgmr.msra.gmra.mxu0 %v2633_v8 }
 0x450   :  { %5046 = vmatmul.mubr.bf16.vlgmr.msra.gmra.mxu1 %v2633_v8 }
 0x48e   :  { %v4867_v59 = vpop.f32.mrf.mxu0 }
 0x490   :  { %v1825_v63 = vpop.f32.mrf.mxu0  ;;  %v4887_v29 = vpop.f32.mrf.mxu1 }
 0x491   :  { %v1930_v57 = vadd.f32 %v4887_v29, %v4867_v59 }
 0x492   :  { %v4868_v28 = vpop.f32.mrf.mxu0  ;;  %v1921_v1 = vpop.f32.mrf.mxu1 }
 0x493   :  { %v1922_v47 = vadd.f32 %v1921_v1, %v1825_v63 }
 0x494   :  { %v4888_v52 = vpop.f32.mrf.mxu1  ;;  %v1828_v49 = vpop.f32.mrf.mxu0 }
 0x495   :  { %v4203_v52 = vld [vmem:[%s6846_s5] ss:$0 sm:$0xff] }
 0x496   :  { %v1924_v53 = vpop.f32.mrf.mxu1 }
 0x497   :  { %v1925_v6 = vadd.f32 %v1924_v53, %v1828_v49 }
 0x4ae   :  { %v4907_v7 = vpop.f32.mrf.mxu0 }
 0x4b0   :  { %v2034_v62 = vpop.f32.mrf.mxu0  ;;  %v4927_v0 = vpop.f32.mrf.mxu1 }
 0x4b1   :  { %v2139_v12 = vadd.f32 %v4927_v0, %v4907_v7 }
 0x4b2   :  { %v4908_v13 = vpop.f32.mrf.mxu0  ;;  %v2130_v42 = vpop.f32.mrf.mxu1 }
 0x4b3   :  { %v2131_v16 = vadd.f32 %v2130_v42, %v2034_v62 }
 0x4b4   :  { %v4928_v17 = vpop.f32.mrf.mxu1  ;;  %v2037_v20 = vpop.f32.mrf.mxu0 }
 0x4b5   :  { %v5502_v17 = vld [vmem:[%s6847_s6 + $0x38] sm:$0xff]  }
 0x4b6   :  { %v2133_v2 = vpop.f32.mrf.mxu1 }
 0x4b7   :  { %v2134_v21 = vadd.f32 %v2133_v2, %v2037_v20  ;;  %v5503_v20 = vld [vmem:[%s6847_s6 + $0x78] sm:$0xff]   ;;  %v5614_v2 = vmov 0.0  }
 0x4b8   :  { %5069 = vmatprep.subr.bf16.mxu1 %v5614_v2  ;;  %5049 = vmatprep.subr.bf16.mxu0 %v5614_v2 }
 0x4b9   :  { %5070 = vmatpush3.bf16.msra.mxu1 %v5502_v17  ;;  %5050 = vmatpush3.bf16.msra.mxu0 %v5503_v20 }
 0x4ba   :  { %5071 = vmatprep.subr.bf16.mxu1 %v5614_v2  ;;  %5051 = vmatprep.subr.bf16.mxu0 %v5614_v2 }
 0x4bb   :  { %5085 = vmatprep.mubr.msk.bf16.mxu1 %vm5615_vm15, %v5614_v2  ;;  %5065 = vmatprep.mubr.msk.bf16.mxu0 %vm5615_vm15, %v5614_v2 }
 0x4ce   :  { %v4947_v9 = vpop.f32.mrf.mxu0 }
 0x4cf   :  { %v2269_v10 = vadd.f32 %v4947_v9, %v1930_v57  ;;  %v5505_v9 = vld [vmem:[%s6847_s6 + $0x70] sm:$0xff]  }
 0x4d0   :  { %v2253_v32 = vpop.f32.mrf.mxu0  ;;  %v4967_v4 = vpop.f32.mrf.mxu1  ;;  %5052 = vmatpush3.bf16.msra.mxu0 %v5505_v9 }
 0x4d1   :  { %v2267_v23 = vadd.f32 %v2253_v32, %v1922_v47  ;;  %v2385_v24 = vadd.f32 %v4967_v4, %v2139_v12  ;;  %v2879_v47 = vstv %s2878_s3  ;;  %v5507_v32 = vld [vmem:[%s6847_s6 + $0x68] sm:$0xff]   ;;  %5053 = vmatprep.subr.bf16.mxu0 %v5614_v2  ;;  %v5508_v4 = vld [vmem:[%s6847_s6 + $0x20] sm:$0xff]  }
 0x4d2   :  { %v4948_v25 = vpop.f32.mrf.mxu0  ;;  %v2369_v22 = vpop.f32.mrf.mxu1 }
 0x4d3   :  { %v2383_v14 = vadd.f32 %v2369_v22, %v2131_v16 }
 0x4d4   :  { %v4968_v26 = vpop.f32.mrf.mxu1  ;;  %v2256_v27 = vpop.f32.mrf.mxu0  ;;  %5054 = vmatpush3.bf16.msra.mxu0 %v5507_v32  ;;  %v5539_v32 = vld [vmem:[%s6847_s6 + $0x110] sm:$0xff]  }
 0x4d5   :  { %v2268_v11 = vadd.f32 %v2256_v27, %v1925_v6  ;;  %5055 = vmatprep.subr.bf16.mxu0 %v5614_v2  ;;  %v5509_v26 = vld [vmem:[%s6847_s6 + $0x60] sm:$0xff]  }
 0x4d6   :  { %v2372_v30 = vpop.f32.mrf.mxu1 }
 0x4d7   :  { %v2384_v45 = vadd.f32 %v2372_v30, %v2134_v21  ;;  %v5504_v21 = vld [vmem:[%s6847_s6 + $0x30] sm:$0xff]   ;;  %v5510_v30 = vld [vmem:[%s6847_s6 + $0x18] sm:$0xff]  }
 0x4d8   :  { %5072 = vmatpush3.bf16.msra.mxu1 %v5504_v21  ;;  %5056 = vmatpush3.bf16.msra.mxu0 %v5509_v26  ;;  %v5538_v21 = vld [vmem:[%s6847_s6 + $0x118] sm:$0xff]  }
 0x4d9   :  { %5073 = vmatprep.subr.bf16.mxu1 %v5614_v2  ;;  %5057 = vmatprep.subr.bf16.mxu0 %v5614_v2 }
 0x4ee   :  { %v4987_v56 = vpop.f32.mrf.mxu0 }
 0x4ef   :  { %v2509_v33 = vadd.f32 %v4987_v56, %v2269_v10  ;;  %v5506_v10 = vld [vmem:[%s6847_s6 + $0x28] sm:$0xff]  }
 0x4f0   :  { %v2493_v46 = vpop.f32.mrf.mxu0  ;;  %v5007_v34 = vpop.f32.mrf.mxu1  ;;  %5074 = vmatpush3.bf16.msra.mxu1 %v5506_v10 }
 0x4f1   :  { %v2625_v18 = vadd.f32 %v5007_v34, %v2385_v24  ;;  %v2507_v44 = vadd.f32 %v2493_v46, %v2267_v23  ;;  %5075 = vmatprep.subr.bf16.mxu1 %v5614_v2  ;;  %v5511_v46 = vld [vmem:[%s6847_s6 + $0x58] sm:$0xff]   ;;  %v5512_v34 = vld [vmem:[%s6847_s6 + $0x10] sm:$0xff]  }
 0x4f2   :  { %v4988_v3 = vpop.f32.mrf.mxu0  ;;  %v2609_v19 = vpop.f32.mrf.mxu1  ;;  %5058 = vmatpush3.bf16.msra.mxu0 %v5511_v46 }
 0x4f3   :  { %v2623_v5 = vadd.f32 %v2609_v19, %v2383_v14  ;;  %v5513_v3 = vld [vmem:[%s6847_s6 + $0x50] sm:$0xff]   ;;  %5059 = vmatprep.subr.bf16.mxu0 %v5614_v2  ;;  %v5514_v19 = vld [vmem:[%s6847_s6 + $0x8] sm:$0xff]  }
 0x4f4   :  { %v5008_v31 = vpop.f32.mrf.mxu1  ;;  %v2496_v61 = vpop.f32.mrf.mxu0  ;;  %5076 = vmatpush3.bf16.msra.mxu1 %v5508_v4 }
 0x4f5   :  { %v2508_v55 = vadd.f32 %v2496_v61, %v2268_v11  ;;  %5077 = vmatprep.subr.bf16.mxu1 %v5614_v2  ;;  %v5515_v31 = vld [vmem:[%s6847_s6 + $0x48] sm:$0xff]   ;;  %v5516_v61 = vld [vmem:[%s6847_s6] sm:$0xff]  }
 0x4f6   :  { %v2612_v54 = vpop.f32.mrf.mxu1  ;;  %5060 = vmatpush3.bf16.msra.mxu0 %v5513_v3 }
 0x4f7   :  { %v2624_v58 = vadd.f32 %v2612_v54, %v2384_v45  ;;  %5061 = vmatprep.subr.bf16.mxu0 %v5614_v2  ;;  %v5517_v54 = vld [vmem:[%s6847_s6 + $0x40] sm:$0xff]  }
 0x4f8   :  { %5078 = vmatpush3.bf16.msra.mxu1 %v5510_v30 }
 0x4f9   :  { %5079 = vmatprep.subr.bf16.mxu1 %v5614_v2 }
 0x4fa   :  { %5062 = vmatpush3.bf16.msra.mxu0 %v5515_v31 }
 0x4fb   :  { %5063 = vmatprep.subr.bf16.mxu0 %v5614_v2 }
 0x4fc   :  { %5080 = vmatpush3.bf16.msra.mxu1 %v5512_v34 }
 0x4fd   :  { %5081 = vmatprep.subr.bf16.mxu1 %v5614_v2 }
 0x4fe   :  { %5064 = vmatpush3.bf16.msra.mxu0 %v5517_v54 }
 0x4ff   :  { %5089 = vmatprep.subr.bf16.mxu0 %v5614_v2 }
 0x500   :  { %5082 = vmatpush3.bf16.msra.mxu1 %v5514_v19 }
 0x501   :  { %5083 = vmatprep.subr.bf16.mxu1 %v5614_v2 }
 0x504   :  { %5084 = vmatpush3.bf16.msra.mxu1 %v5516_v61 }
 0x505   :  { %5109 = vmatprep.subr.bf16.mxu1 %v5614_v2 }
 0x50e   :  { %v5027_v37 = vpop.f32.mrf.mxu0 }
 0x50f   :  { %v2749_v35 = vadd.f32 %v5027_v37, %v2509_v33 }
 0x510   :  { %v2733_v38 = vpop.f32.mrf.mxu0  ;;  %v5047_v39 = vpop.f32.mrf.mxu1 }
 0x511   :  { %v2865_v41 = vadd.f32 %v5047_v39, %v2625_v18  ;;  %v2747_v15 = vadd.f32 %v2733_v38, %v2507_v44 }
 0x512   :  { %v5028_v40 = vpop.f32.mrf.mxu0  ;;  %v2849_v43 = vpop.f32.mrf.mxu1 }
 0x513   :  { %v2868_v36 = vmax.f32 %v2749_v35, %v2865_v41  ;;  %v2863_v48 = vadd.f32 %v2849_v43, %v2623_v5 }
 0x514   :  { %v2736_v50 = vpop.f32.mrf.mxu0  ;;  %v5048_v51 = vpop.f32.mrf.mxu1 }
 0x515   :  { %v2866_v60 = vmax.f32 %v2747_v15, %v2863_v48  ;;  %v2748_v59 = vadd.f32 %v2736_v50, %v2508_v55  ;;  %v2872_v29 = vrot.slane %v2868_v36, 2  ;;  %v5518_v15 = vld [vmem:[%s6847_s6 + $0xf8] sm:$0xff]   ;;  %v5520_v51 = vld [vmem:[%s6847_s6 + $0xf0] sm:$0xff]  }
 0x516   :  { %v2852_v8 = vpop.f32.mrf.mxu1  ;;  %v5519_v48 = vld [vmem:[%s6847_s6 + $0xb8] sm:$0xff]   ;;  %v5521_v55 = vld [vmem:[%s6847_s6 + $0xb0] sm:$0xff]  }
 0x517   :  { %v2864_v63 = vadd.f32 %v2852_v8, %v2624_v58  ;;  %v5522_v58 = vld [vmem:[%s6847_s6 + $0xe8] sm:$0xff]   ;;  %v5524_v8 = vld [vmem:[%s6847_s6 + $0xe0] sm:$0xff]  }
 0x519   :  { %v2867_v57 = vmax.f32 %v2748_v59, %v2864_v63  ;;  %v5525_v59 = vld [vmem:[%s6847_s6 + $0xa0] sm:$0xff]   ;;  %v5526_v63 = vld [vmem:[%s6847_s6 + $0xd8] sm:$0xff]  }
 0x51b   :  { %v2871_v28 = vrot.slane %v2867_v57, 2  ;;  %v2877_v1 = vmax.f32 %v2867_v57, %v2872_v29  ;;  %v5528_v57 = vld [vmem:[%s6847_s6 + $0xd0] sm:$0xff]  }
 0x51d   :  { %v2873_v49 = vsel %vm691_vm10, %v2871_v28, %v2872_v29  ;;  %v2881_v53 = vmul.f32 %v2879_v47, %v2877_v1  ;;  %v5527_v29 = vld [vmem:[%s6847_s6 + $0x98] sm:$0xff]   ;;  %v5529_v28 = vld [vmem:[%s6847_s6 + $0x90] sm:$0xff]   ;;  %v5530_v1 = vld [vmem:[%s6847_s6 + $0xc8] sm:$0xff]  }
 0x51e   :  { %v2876_v6 = vmax.f32 %v2866_v60, %v2873_v49  ;;  %v5523_v60 = vld [vmem:[%s6847_s6 + $0xa8] sm:$0xff]   ;;  %v5533_v49 = vld [vmem:[%s6847_s6 + $0x80] sm:$0xff]  }
 0x51f   :  { %v6560_v7 = vadd.f32 %v4203_v52, %v2881_v53 }
 0x520   :  { %v2880_v62 = vmul.f32 %v2879_v47, %v2876_v6  ;;  %v5531_v47 = vld [vmem:[%s6847_s6 + $0x88] sm:$0xff]   ;;  %v5534_v6 = vld [vmem:[%s6847_s6 + $0x138] sm:$0xff]  }
 0x521   :  { %v2891_v0 = vmax.f32 %v6560_v7, 0.0  ;;  %v5536_v7 = vld [vmem:[%s6847_s6 + $0x128] sm:$0xff]  }
 0x522   :  { %v6563_v12 = vadd.f32 %v4203_v52, %v2880_v62  ;;  %v5532_v52 = vld [vmem:[%s6847_s6 + $0xc0] sm:$0xff]  }
 0x523   :  { %v2892_v42 = vsel %vm192_vm9, %v2891_v0, -inf }
 0x524   :  { %v2890_v13 = vmax.f32 %v6563_v12, 0.0 }
 0x526   :  { %v2893_v16 = vmax.f32 %v2890_v13, %v2892_v42 }
 0x528   :  { %2894 = vmax.xlane.f32.xlu1 %v2893_v16  ;;  %v5537_v16 = vld [vmem:[%s6847_s6 + $0x120] sm:$0xff]  }
 0x5b1   :  { %v2895_v23 = vpop.xlane.xlu1 %2894 }
 0x5b2   :  { %v2896_v24 = vrot.slane %v2895_v23, 4 }
 0x5b4   :  { %v2897_v25 = vmax.f32 %v2895_v23, %v2896_v24  ;;  %v5540_v23 = vld [vmem:[%s6847_s6 + $0x108] sm:$0xff]  }
 0x5b6   :  { %v2898_v22 = vrot.slane %v2897_v25, 2 }
 0x5b8   :  { %v2899_v14 = vmax.f32 %v2897_v25, %v2898_v22  ;;  %v5541_v25 = vld [vmem:[%s6847_s6 + $0x100] sm:$0xff]  }
 0x5ba   :  { %v2900_v27 = vrot.slane %v2899_v14, 1 }
 0x5bc   :  { %v2901_v56 = vmax.f32 %v2899_v14, %v2900_v27 }
 0x5be   :  { %5293 = vpush %v2901_v56 }
 0x5ef   :  { %s5294_s23 = spop %5293 }
 0x5f0   :  { %s6642_s24 = smax.f32 %s5613_s15, %s5294_s23 }
 0x5f1   :  { %s2906_s25 = smul.f32 0.06666667, %s6642_s24 }
 0x5f3   :  { %v2907_v37 = vstv %s2906_s25 }
 0x5f4   :  { %5562 = vrcp.f32 %v2907_v37 }
 0x601   :  { %v5563_v33 = vpop.eup %5562 }
 0x602   :  { %5295 = vpush %v5563_v33 }
 0x633   :  { %s6647_s0 = spop %5295 }
 0x634   :  { %v2910_v18 = vstv %s6647_s0 }
 0x635   :  { %v2911_v38 = vmul.f32 %v2910_v18, %v2890_v13  ;;  %v2912_v12 = vmul.f32 %v2910_v18, %v2891_v0  ;;  %v5535_v13 = vld [vmem:[%s6847_s6 + $0x130] sm:$0xff]   ;;  %s3751_s6 = sld [smem:[#allocation2 + $0x2]] }
 0x637   :  { %v5299_v39 = vcvt.f32.s32 %v2911_v38  ;;  %v5297_v5 = vand.u32 2147483647, %v2911_v38  ;;  %v5302_v41 = vand.u32 2147483648, %v2911_v38  ;;  %v5307_v42 = vcvt.f32.s32 %v2912_v12 }
 0x638   :  { %v5310_v20 = vand.u32 2147483648, %v2912_v12  ;;  %v5305_v9 = vand.u32 2147483647, %v2912_v12 }
 0x639   :  { %v5300_v44 = vcvt.s32.f32 %v5299_v39  ;;  %vm5298_vm0 = vcmp.lt.f32.partialorder %v5297_v5, 8388608.0  ;;  %v5308_v0 = vcvt.s32.f32 %v5307_v42 }
 0x63a   :  { %vm5306_vm1 = vcmp.lt.f32.partialorder %v5305_v9, 8388608.0 }
 0x63b   :  { %v5301_v35 = vand.u32 2147483647, %v5300_v44  ;;  %v5309_v17 = vand.u32 2147483647, %v5308_v0  ;;  %s3455_s13 = smul.f32 %s3751_s6, %s2906_s25 }
 0x63d   :  { %v5303_v11 = vor.u32 %v5302_v41, %v5301_v35  ;;  %v5311_v10 = vor.u32 %v5310_v20, %v5309_v17 }
 0x63f   :  { %v5304_v40 = vsel %vm5298_vm0, %v5303_v11, %v2911_v38  ;;  %v5312_v4 = vsel %vm5306_vm1, %v5311_v10, %v2912_v12 }
 0x640   :  { %v2915_v43 = vmax.f32 %v5304_v40, 0.0  ;;  %v2916_v24 = vmax.f32 %v5312_v4, 0.0  ;;  %v3456_v40 = vstv %s3455_s13 }
 0x642   :  { %v2917_v45 = vmin.f32 %v2915_v43, 15.0  ;;  %v2918_v22 = vmin.f32 %v2916_v24, 15.0  ;;  %v4317_v24 = vld [vmem:[%s6850_s9] ss:$0 sm:$0xff] }
 0x644   :  { %v2919_v36 = vpack.c.bf16 %v2917_v45, %v2917_v45  ;;  %v3348_v14 = vpack.c.bf16 %v2918_v22, %v2918_v22  ;;  %v4308_v45 = vld [vmem:[%s6848_s7] ss:$0 sm:$0xff] }
 0x646   :  { %5086 = vmatmul.mubr.bf16.vlgmr.msra.gmra.mxu1 %v2919_v36  ;;  %v2954_v50 = vrot.slane %v2919_v36, 1  ;;  %v3257_v53 = vrot.slane %v2919_v36, 3  ;;  %v3149_v62 = vrot.slane %v2919_v36, 2 }
 0x647   :  { %5110 = vmatpush3.bf16.msra.mxu1 %v5518_v15  ;;  %5125 = vmatprep.mubr.msk.bf16.mxu1 %vm5615_vm15, %v5614_v2 }
 0x648   :  { %5066 = vmatmul.mubr.bf16.vlgmr.msra.gmra.mxu0 %v2954_v50  ;;  %5111 = vmatprep.subr.bf16.mxu1 %v5614_v2 }
 0x649   :  { %5090 = vmatpush3.bf16.msra.mxu0 %v5519_v48  ;;  %5105 = vmatprep.mubr.msk.bf16.mxu0 %vm5615_vm15, %v5614_v2 }
 0x64a   :  { %5091 = vmatprep.subr.bf16.mxu0 %v5614_v2 }
 0x64b   :  { %5112 = vmatpush3.bf16.msra.mxu1 %v5520_v51 }
 0x64c   :  { %5113 = vmatprep.subr.bf16.mxu1 %v5614_v2 }
 0x64d   :  { %5092 = vmatpush3.bf16.msra.mxu0 %v5521_v55 }
 0x64e   :  { %5093 = vmatprep.subr.bf16.mxu0 %v5614_v2 }
 0x64f   :  { %5114 = vmatpush3.bf16.msra.mxu1 %v5522_v58  ;;  %v5542_v58 = vld [vmem:[%s6849_s8 + $0x38] sm:$0xff]  }
 0x650   :  { %5115 = vmatprep.subr.bf16.mxu1 %v5614_v2 }
 0x651   :  { %5094 = vmatpush3.bf16.msra.mxu0 %v5523_v60  ;;  %v5543_v60 = vld [vmem:[%s6849_s8 + $0x30] sm:$0xff]  }
 0x652   :  { %5095 = vmatprep.subr.bf16.mxu0 %v5614_v2 }
 0x653   :  { %5116 = vmatpush3.bf16.msra.mxu1 %v5524_v8  ;;  %v5544_v8 = vld [vmem:[%s6849_s8 + $0x28] sm:$0xff]  }
 0x654   :  { %5117 = vmatprep.subr.bf16.mxu1 %v5614_v2 }
 0x655   :  { %5096 = vmatpush3.bf16.msra.mxu0 %v5525_v59 }
 0x656   :  { %5097 = vmatprep.subr.bf16.mxu0 %v5614_v2 }
 0x657   :  { %5118 = vmatpush3.bf16.msra.mxu1 %v5526_v63 }
 0x658   :  { %5119 = vmatprep.subr.bf16.mxu1 %v5614_v2 }
 0x659   :  { %5098 = vmatpush3.bf16.msra.mxu0 %v5527_v29 }
 0x65a   :  { %5099 = vmatprep.subr.bf16.mxu0 %v5614_v2 }
 0x65b   :  { %5120 = vmatpush3.bf16.msra.mxu1 %v5528_v57 }
 0x65c   :  { %5121 = vmatprep.subr.bf16.mxu1 %v5614_v2 }
 0x65d   :  { %5100 = vmatpush3.bf16.msra.mxu0 %v5529_v28  ;;  %v5545_v28 = vld [vmem:[%s6849_s8 + $0x20] sm:$0xff]  }
 0x65e   :  { %5101 = vmatprep.subr.bf16.mxu0 %v5614_v2 }
 0x65f   :  { %5122 = vmatpush3.bf16.msra.mxu1 %v5530_v1 }
 0x660   :  { %5123 = vmatprep.subr.bf16.mxu1 %v5614_v2 }
 0x661   :  { %5102 = vmatpush3.bf16.msra.mxu0 %v5531_v47 }
 0x662   :  { %5103 = vmatprep.subr.bf16.mxu0 %v5614_v2 }
 0x663   :  { %5124 = vmatpush3.bf16.msra.mxu1 %v5532_v52  ;;  %v5546_v52 = vld [vmem:[%s6849_s8 + $0x18] sm:$0xff]  }
 0x664   :  { %5149 = vmatprep.subr.bf16.mxu1 %v5614_v2 }
 0x665   :  { %5104 = vmatpush3.bf16.msra.mxu0 %v5533_v49 }
 0x666   :  { %5126 = vmatmul.mubr.bf16.vlgmr.msra.gmra.mxu1 %v3257_v53  ;;  %5129 = vmatprep.subr.bf16.mxu0 %v5614_v2  ;;  %v5547_v53 = vld [vmem:[%s6849_s8 + $0x10] sm:$0xff]  }
 0x667   :  { %5165 = vmatprep.mubr.msk.bf16.mxu1 %vm5615_vm15, %v5614_v2  ;;  %5150 = vmatpush3.bf16.msra.mxu1 %v5542_v58 }
 0x668   :  { %5106 = vmatmul.mubr.bf16.vlgmr.msra.gmra.mxu0 %v3149_v62  ;;  %5151 = vmatprep.subr.bf16.mxu1 %v5614_v2  ;;  %v5549_v62 = vld [vmem:[%s6849_s8] sm:$0xff]  }
 0x669   :  { %5130 = vmatpush3.bf16.msra.mxu0 %v5534_v6  ;;  %5145 = vmatprep.mubr.msk.bf16.mxu0 %vm5615_vm15, %v5614_v2  ;;  %v5548_v6 = vld [vmem:[%s6849_s8 + $0x8] sm:$0xff]   ;;  %s3752_s8 = sld [smem:[#allocation2 + $0x3]] }
 0x66a   :  { %5131 = vmatprep.subr.bf16.mxu0 %v5614_v2 }
 0x66b   :  { %5152 = vmatpush3.bf16.msra.mxu1 %v5543_v60 }
 0x66c   :  { %5153 = vmatprep.subr.bf16.mxu1 %v5614_v2 }
 0x66d   :  { %5132 = vmatpush3.bf16.msra.mxu0 %v5535_v13 }
 0x66e   :  { %5133 = vmatprep.subr.bf16.mxu0 %v5614_v2 }
 0x66f   :  { %5154 = vmatpush3.bf16.msra.mxu1 %v5544_v8 }
 0x670   :  { %5155 = vmatprep.subr.bf16.mxu1 %v5614_v2 }
 0x671   :  { %5134 = vmatpush3.bf16.msra.mxu0 %v5536_v7 }
 0x672   :  { %5135 = vmatprep.subr.bf16.mxu0 %v5614_v2 }
 0x673   :  { %5156 = vmatpush3.bf16.msra.mxu1 %v5545_v28 }
 0x674   :  { %5157 = vmatprep.subr.bf16.mxu1 %v5614_v2 }
 0x675   :  { %5136 = vmatpush3.bf16.msra.mxu0 %v5537_v16 }
 0x676   :  { %5137 = vmatprep.subr.bf16.mxu0 %v5614_v2 }
 0x677   :  { %5158 = vmatpush3.bf16.msra.mxu1 %v5546_v52 }
 0x678   :  { %5159 = vmatprep.subr.bf16.mxu1 %v5614_v2 }
 0x679   :  { %5138 = vmatpush3.bf16.msra.mxu0 %v5538_v21 }
 0x67a   :  { %5139 = vmatprep.subr.bf16.mxu0 %v5614_v2 }
 0x67b   :  { %5160 = vmatpush3.bf16.msra.mxu1 %v5547_v53 }
 0x67c   :  { %5161 = vmatprep.subr.bf16.mxu1 %v5614_v2 }
 0x67d   :  { %5140 = vmatpush3.bf16.msra.mxu0 %v5539_v32 }
 0x67e   :  { %5141 = vmatprep.subr.bf16.mxu0 %v5614_v2 }
 0x67f   :  { %5162 = vmatpush3.bf16.msra.mxu1 %v5548_v6 }
 0x680   :  { %5163 = vmatprep.subr.bf16.mxu1 %v5614_v2 }
 0x681   :  { %5142 = vmatpush3.bf16.msra.mxu0 %v5540_v23 }
 0x682   :  { %5143 = vmatprep.subr.bf16.mxu0 %v5614_v2 }
 0x683   :  { %5164 = vmatpush3.bf16.msra.mxu1 %v5549_v62 }
 0x685   :  { %5144 = vmatpush3.bf16.msra.mxu0 %v5541_v25 }
 0x686   :  { %5169 = vmatprep.subr.bf16.mxu0 %v5614_v2 }
 0x688   :  { %5146 = vmatmul.mubr.bf16.vlgmr.msra.gmra.mxu0 %v3348_v14 }
 0x689   :  { %5185 = vmatprep.mubr.msk.bf16.mxu0 %vm5615_vm15, %v5614_v2 }
 0x706   :  { %v3126_v26 = vpop.f32.mrf.mxu1 }
 0x708   :  { %v3038_v27 = vpop.f32.mrf.mxu0  ;;  %v5087_v30 = vpop.f32.mrf.mxu1 }
 0x709   :  { %v3127_v44 = vadd.f32 %v3126_v26, %v3038_v27 }
 0x70a   :  { %v5067_v56 = vpop.f32.mrf.mxu0  ;;  %v3129_v46 = vpop.f32.mrf.mxu1 }
 0x70c   :  { %v3041_v34 = vpop.f32.mrf.mxu0  ;;  %v5088_v3 = vpop.f32.mrf.mxu1 }
 0x70d   :  { %v5550_v3 = vld [vmem:[%s6851_s10 + $0x38] sm:$0xff]  }
 0x70e   :  { %v5068_v19 = vpop.f32.mrf.mxu0  ;;  %5170 = vmatpush3.bf16.msra.mxu0 %v5550_v3 }
 0x70f   :  { %v5551_v19 = vld [vmem:[%s6851_s10 + $0x30] sm:$0xff]   ;;  %5171 = vmatprep.subr.bf16.mxu0 %v5614_v2 }
 0x712   :  { %5172 = vmatpush3.bf16.msra.mxu0 %v5551_v19 }
 0x713   :  { %5173 = vmatprep.subr.bf16.mxu0 %v5614_v2 }
 0x726   :  { %v3341_v31 = vpop.f32.mrf.mxu1 }
 0x728   :  { %v3233_v61 = vpop.f32.mrf.mxu0  ;;  %v5127_v54 = vpop.f32.mrf.mxu1 }
 0x729   :  { %v3239_v5 = vadd.f32 %v3233_v61, %v3127_v44  ;;  %v5554_v44 = vld [vmem:[%s6851_s10 + $0x18] sm:$0xff]  }
 0x72a   :  { %v5107_v37 = vpop.f32.mrf.mxu0  ;;  %v3344_v33 = vpop.f32.mrf.mxu1 }
 0x72b   :  { %v3347_v35 = vadd.f32 %v3341_v31, %v3239_v5  ;;  %v5552_v31 = vld [vmem:[%s6851_s10 + $0x28] sm:$0xff]  }
 0x72c   :  { %v3236_v18 = vpop.f32.mrf.mxu0  ;;  %v5128_v38 = vpop.f32.mrf.mxu1  ;;  %5174 = vmatpush3.bf16.msra.mxu0 %v5552_v31 }
 0x72d   :  { %5175 = vmatprep.subr.bf16.mxu0 %v5614_v2  ;;  %v5553_v18 = vld [vmem:[%s6851_s10 + $0x20] sm:$0xff]  }
 0x72e   :  { %v5108_v39 = vpop.f32.mrf.mxu0 }
 0x730   :  { %5176 = vmatpush3.bf16.msra.mxu0 %v5553_v18 }
 0x731   :  { %5177 = vmatprep.subr.bf16.mxu0 %v5614_v2 }
 0x734   :  { %5178 = vmatpush3.bf16.msra.mxu0 %v5554_v44 }
 0x735   :  { %5179 = vmatprep.subr.bf16.mxu0 %v5614_v2 }
 0x748   :  { %v3448_v41 = vpop.f32.mrf.mxu0 }
 0x749   :  { %v3454_v11 = vadd.f32 %v3448_v41, %v3347_v35  ;;  %v5555_v35 = vld [vmem:[%s6851_s10 + $0x10] sm:$0xff]   ;;  %v5556_v41 = vld [vmem:[%s6851_s10 + $0x8] sm:$0xff]  }
 0x74a   :  { %v5147_v43 = vpop.f32.mrf.mxu0  ;;  %5180 = vmatpush3.bf16.msra.mxu0 %v5555_v35 }
 0x74b   :  { %v3457_v15 = vmul.f32 %v3456_v40, %v3454_v11  ;;  %5181 = vmatprep.subr.bf16.mxu0 %v5614_v2  ;;  %v5557_v11 = vld [vmem:[%s6851_s10] sm:$0xff]   ;;  %s3753_s10 = sld [smem:[#allocation2 + $0x4]] }
 0x74c   :  { %v3451_v36 = vpop.f32.mrf.mxu0 }
 0x74d   :  { %v3464_v48 = vadd.f32 %v4308_v45, %v3457_v15 }
 0x74e   :  { %v5148_v50 = vpop.f32.mrf.mxu0  ;;  %5182 = vmatpush3.bf16.msra.mxu0 %v5556_v41 }
 0x74f   :  { %v3465_v51 = vmax.f32 %v3464_v48, 0.0  ;;  %5183 = vmatprep.subr.bf16.mxu0 %v5614_v2 }
 0x751   :  { %v3466_v55 = vsel %vm192_vm9, %v3465_v51, -inf }
 0x752   :  { %3467 = vmax.xlane.f32.xlu1 %v3466_v55  ;;  %5184 = vmatpush3.bf16.msra.mxu0 %v5557_v11 }
 0x7db   :  { %v3468_v59 = vpop.xlane.xlu1 %3467 }
 0x7dc   :  { %v3469_v63 = vrot.slane %v3468_v59, 4 }
 0x7de   :  { %v3470_v29 = vmax.f32 %v3468_v59, %v3469_v63 }
 0x7e0   :  { %v3471_v57 = vrot.slane %v3470_v29, 2 }
 0x7e2   :  { %v3472_v1 = vmax.f32 %v3470_v29, %v3471_v57 }
 0x7e4   :  { %v3473_v47 = vrot.slane %v3472_v1, 1 }
 0x7e6   :  { %v3474_v49 = vmax.f32 %v3472_v1, %v3473_v47 }
 0x7e8   :  { %5313 = vpush %v3474_v49 }
 0x819   :  { %s5314_s23 = spop %5313 }
 0x81a   :  { %s3476_s26 = smax.f32 %s5613_s15, %s5314_s23  ;;  %s5616_s23 = smov [#allocation5]  }
 0x81b   :  { %s3479_s27 = smul.f32 0.06666667, %s3476_s26  ;;  %s3741_s26 = sshll.u32 %s5616_s23, 4  ;;  %s3742_s26 = int_to_ptr.vmem [resolvable:$true] %s3741_s26 }
 0x81c   :  { %p5593_p6 = scmp.lt.s32.totalorder %s3742_s26, %s3742_s26 }
 0x81d   :  { %v3480_v12 = vstv %s3479_s27  ;;  %s3593_s12 = smul.f32 %s3752_s8, %s3479_s27  ;;  %s5588_s27 = scalar_lea.vmem %s3742_s26, 32 }
 0x81e   :  { %5564 = vrcp.f32 %v3480_v12  ;;  %p5589_p5 = scmp.ne.s32.totalorder %s3742_s26, %s5588_s27  ;;  %p5594_p7 = scmp.lt.s32.totalorder %s5588_s27, %s5588_s27 }
 0x81f   :  { %v3594_v22 = vstv %s3593_s12 }
 0x820   :  { %p5595_p8 = por %p5594_p7, %p5593_p6 }
 0x822   :  { %p5596_p9 = pnand %p5595_p8, %p5589_p5 }
 0x82b   :  { %v5565_v13 = vpop.eup %5564 }
 0x82c   :  { %5315 = vpush %v5565_v13 }
 0x85d   :  { %s5316_s28 = spop %5315 }
 0x85e   :  { %v3483_v42 = vstv %s5316_s28 }
 0x85f   :  { %v3484_v7 = vmul.f32 %v3483_v42, %v3465_v51 }
 0x861   :  { %v5319_v0 = vcvt.f32.s32 %v3484_v7  ;;  %v5317_v17 = vand.u32 2147483647, %v3484_v7  ;;  %v5322_v21 = vand.u32 2147483648, %v3484_v7 }
 0x863   :  { %v5320_v16 = vcvt.s32.f32 %v5319_v0  ;;  %vm5318_vm2 = vcmp.lt.f32.partialorder %v5317_v17, 8388608.0 }
 0x865   :  { %v5321_v20 = vand.u32 2147483647, %v5320_v16 }
 0x867   :  { %v5323_v9 = vor.u32 %v5322_v21, %v5321_v20 }
 0x869   :  { %v5324_v10 = vsel %vm5318_vm2, %v5323_v9, %v3484_v7 }
 0x86a   :  { %v3486_v32 = vmax.f32 %v5324_v10, 0.0 }
 0x86c   :  { %v3487_v4 = vmin.f32 %v3486_v32, 15.0 }
 0x86e   :  { %v3488_v23 = vpack.c.bf16 %v3487_v4, %v3487_v4 }
 0x870   :  { %5166 = vmatmul.mubr.bf16.vlgmr.msra.gmra.mxu1 %v3488_v23 }
 0x930   :  { %v3587_v25 = vpop.f32.mrf.mxu1 }
 0x931   :  { %v3595_v14 = vmul.f32 %v3594_v22, %v3587_v25 }
 0x932   :  { %v5167_v26 = vpop.f32.mrf.mxu1 }
 0x933   :  { %v3602_v27 = vadd.f32 %v4317_v24, %v3595_v14 }
 0x934   :  { %v3590_v30 = vpop.f32.mrf.mxu1 }
 0x935   :  { %v3603_v56 = vmax.f32 %v3602_v27, 0.0 }
 0x936   :  { %v5168_v46 = vpop.f32.mrf.mxu1 }
 0x937   :  { %v3604_v34 = vsel %vm192_vm9, %v3603_v56, -inf }
 0x938   :  { %3605 = vmax.xlane.f32.xlu0 %v3604_v34 }
 0x9c1   :  { %v3606_v61 = vpop.xlane.xlu0 %3605 }
 0x9c2   :  { %v3607_v54 = vrot.slane %v3606_v61, 4 }
 0x9c4   :  { %v3608_v37 = vmax.f32 %v3606_v61, %v3607_v54 }
 0x9c6   :  { %v3609_v33 = vrot.slane %v3608_v37, 2 }
 0x9c8   :  { %v3610_v38 = vmax.f32 %v3608_v37, %v3609_v33 }
 0x9ca   :  { %v3611_v39 = vrot.slane %v3610_v38, 1 }
 0x9cc   :  { %v3612_v5 = vmax.f32 %v3610_v38, %v3611_v39 }
 0x9ce   :  { %5325 = vpush %v3612_v5 }
 0x9ff   :  { %s5326_s0 = spop %5325 }
 0xa00   :  { %s3614_s20 = smax.f32 %s5613_s15, %s5326_s0 }
 0xa01   :  { %s3617_s21 = smul.f32 0.06666667, %s3614_s20 }
 0xa03   :  { %v3618_v40 = vstv %s3617_s21  ;;  %s3731_s15 = smul.f32 %s3753_s10, %s3617_s21 }
 0xa04   :  { %5566 = vrcp.f32 %v3618_v40 }
 0xa05   :  { %v3732_v29 = vstv %s3731_s15 }
 0xa11   :  { %v5567_v43 = vpop.eup %5566 }
 0xa12   :  { %5327 = vpush %v5567_v43 }
 0xa43   :  { %s5328_s22 = spop %5327 }
 0xa44   :  { %v3621_v45 = vstv %s5328_s22 }
 0xa45   :  { %v3622_v15 = vmul.f32 %v3621_v45, %v3603_v56 }
 0xa47   :  { %v5331_v36 = vcvt.f32.s32 %v3622_v15  ;;  %v5329_v50 = vand.u32 2147483647, %v3622_v15  ;;  %v5334_v55 = vand.u32 2147483648, %v3622_v15 }
 0xa49   :  { %v5332_v48 = vcvt.s32.f32 %v5331_v36  ;;  %vm5330_vm3 = vcmp.lt.f32.partialorder %v5329_v50, 8388608.0 }
 0xa4b   :  { %v5333_v51 = vand.u32 2147483647, %v5332_v48 }
 0xa4d   :  { %v5335_v58 = vor.u32 %v5334_v55, %v5333_v51 }
 0xa4f   :  { %v5336_v2 = vsel %vm5330_vm3, %v5335_v58, %v3622_v15 }
 0xa50   :  { %v3624_v60 = vmax.f32 %v5336_v2, 0.0 }
 0xa52   :  { %v3625_v8 = vmin.f32 %v3624_v60, 15.0 }
 0xa54   :  { %v3626_v59 = vpack.c.bf16 %v3625_v8, %v3625_v8 }
 0xa56   :  { %5186 = vmatmul.mubr.bf16.vlgmr.msra.gmra.mxu0 %v3626_v59 }
 0xb16   :  { %v3725_v63 = vpop.f32.mrf.mxu0 }
 0xb17   :  { %v3733_v57 = vmul.f32 %v3732_v29, %v3725_v63 }
 0xb18   :  { %v5187_v28 = vpop.f32.mrf.mxu0 }
 0xb19   :  { %3734 = vst [vmem:[#allocation5] sm:$0x3] %v3733_v57 }
 0xb1a   :  { %v3728_v1 = vpop.f32.mrf.mxu0 }
 0xb1b   :  { %5599 = shalt.err (!%p5596_p9)
}
 0xb1c   :  { %3744 = dma.vmem_to_hbm [thread:$0]  %s3742_s26, 32, %s6852_s11, [#allocation3]   ;;  %v5188_v47 = vpop.f32.mrf.mxu0 }
 0xb1d   :  { %5610 = dma.done.wait [#allocation3], 32  }
 0xb1e   :  { %5611 = vsyncadd [#allocation3], 4294967264 }
 0xb1f   :  { %3748 = vsyncpa [#allocation3], 1 }
 0xb20   :  { %3749 = vsyncpa [#allocation4], 1 }

</bundles_post_ra>
